<compile_context>
chip_gen: v7x
topology: tpu7x:2x2x1
jax: 0.10.0
libtpu: 0.0.40
codegen_flags: <defaults>
</compile_context>

<pallas_src>
import functools

import jax
import jax.numpy as jnp
from jax import lax
from jax.experimental import pallas as pl
from jax.experimental.pallas import tpu as pltpu


# ----------------------------------------------------------------------------
# FixedAttention: out = x * sigmoid(x @ W_eff + b_eff)   (1x1 convs folded)
# ----------------------------------------------------------------------------
def _attention_kernel(x_ref, w_ref, b_ref, o_ref):
    x = x_ref[...]                                              # (tile, CP)
    logits = jnp.dot(x, w_ref[...],
                     preferred_element_type=jnp.float32) + b_ref[...]
    o_ref[...] = (x * jax.nn.sigmoid(logits)).astype(o_ref.dtype)


def fixed_attention(feat_nhwc, w1, b1, w2, b2, *, row_tile=1024):
    """feat_nhwc: (B,H,W,C).  w1:(C,C//8) b1:(C//8,) w2:(C//8,C) b2:(C,)."""
    B, H, W, C = feat_nhwc.shape

    # Fold the two 1x1 convs (no nonlinearity between them) into one linear map.
    w_eff = jnp.dot(w1, w2, precision=lax.Precision.HIGHEST)        # (C, C)
    b_eff = jnp.dot(b1, w2, precision=lax.Precision.HIGHEST) + b2   # (C,)

    # Pack pixels so the lane dim is a full 128 (lane-dense loads/stores).
    n_pix = B * H * W
    pack = 1
    if C < 128 and 128 % C == 0 and n_pix % (128 // C) == 0:
        pack = 128 // C
    cp = C * pack
    n_rows = n_pix // pack
    x_rows = feat_nhwc.reshape(n_rows, cp)          # free reshape (contiguous NHWC)

    if pack > 1:
        w_mat = jnp.kron(jnp.eye(pack, dtype=w_eff.dtype), w_eff)   # block-diagonal
        b_vec = jnp.tile(b_eff, pack)
    else:
        w_mat, b_vec = w_eff, b_eff
    b_mat = b_vec.reshape(1, cp)

    # Large row tiles; pad rows with cdiv instead of asserting divisibility.
    tile = min(row_tile, n_rows)
    if n_rows > tile or n_rows % 8 == 0:
        tile = max(8, (tile // 8) * 8)
    if n_rows == tile and tile % 16 == 0:
        tile //= 2                      # >=2 grid steps so multi-core chips get work
    n_rows_p = pl.cdiv(n_rows, tile) * tile
    if n_rows_p != n_rows:
        x_rows = jnp.pad(x_rows, ((0, n_rows_p - n_rows), (0, 0)))

    out = pl.pallas_call(
        _attention_kernel,
        out_shape=jax.ShapeDtypeStruct((n_rows_p, cp), x_rows.dtype),
        grid_spec=pltpu.PrefetchScalarGridSpec(
            num_scalar_prefetch=0,
            grid=(n_rows_p // tile,),
            in_specs=[
                pl.BlockSpec((tile, cp), lambda i: (i, 0)),   # x tile (lane-dense)
                pl.BlockSpec((cp, cp), lambda i: (0, 0)),     # folded weight (resident)
                pl.BlockSpec((1, cp), lambda i: (0, 0)),      # folded bias
            ],
            out_specs=pl.BlockSpec((tile, cp), lambda i: (i, 0)),
        ),
        compiler_params=pltpu.CompilerParams(dimension_semantics=("parallel",)),
    )(x_rows, w_mat, b_mat)

    out = out[:n_rows]
    return out.reshape(B, H, W, C)


# ----------------------------------------------------------------------------
# 3x3 conv (pad=1, stride=1) with fused bias / ReLU / residual / tanh.
# Grid = (B, H); one output row per step; the three needed input rows arrive via
# three row-shifted BlockSpec views of the zero-padded input.
# ----------------------------------------------------------------------------
def _conv3x3_kernel(*refs, apply_relu, apply_tanh, has_residual):
    if has_residual:
        x0, x1, x2, w_ref, b_ref, res_ref, o_ref = refs
    else:
        x0, x1, x2, w_ref, b_ref, o_ref = refs
        res_ref = None

    wp = o_ref.shape[2]          # output width
    cout = o_ref.shape[3]
    rows = (x0, x1, x2)

    acc = jnp.zeros((wp, cout), dtype=jnp.float32)
    for dy in range(3):
        for dx in range(3):
            patch = rows[dy][0, 0, dx:dx + wp, :]                 # (wp, Cin)
            acc = acc + jnp.dot(patch, w_ref[3 * dy + dx],
                                preferred_element_type=jnp.float32)
    acc = acc + b_ref[...]
    if apply_relu:
        acc = jnp.maximum(acc, 0.0)
    if res_ref is not None:
        acc = acc + res_ref[0, 0]
    if apply_tanh:
        acc = jnp.tanh(acc)
    o_ref[0, 0] = acc.astype(o_ref.dtype)


def _shifted_row_spec(dy, wpad, cin):
    return pl.BlockSpec((1, 1, wpad, cin), lambda b, h: (b, h + dy, 0, 0))


def conv3x3(x, w, b, *, apply_relu=False, apply_tanh=False, residual=None):
    """x: (B,H,W,Cin), w: (3,3,Cin,Cout) (HWIO), b: (Cout,)."""
    B, H, W, Cin = x.shape
    Cout = w.shape[-1]

    # Zero-pad spatially; pad tiny channel counts up to 8 (keeps matmul shapes tame).
    if Cin < 8:
        pad_c = 8 - Cin
        xp = jnp.pad(x, ((0, 0), (1, 1), (1, 1), (0, pad_c)))
        w_use = jnp.pad(w, ((0, 0), (0, 0), (0, pad_c), (0, 0)))
        Cin_p = 8
    else:
        xp = jnp.pad(x, ((0, 0), (1, 1), (1, 1), (0, 0)))
        w_use = w
        Cin_p = Cin

    w9 = w_use.reshape(9, Cin_p, Cout)
    b2 = b.reshape(1, Cout)

    in_specs = [_shifted_row_spec(dy, W + 2, Cin_p) for dy in range(3)]
    in_specs += [
        pl.BlockSpec((9, Cin_p, Cout), lambda bb, hh: (0, 0, 0)),   # weights (resident)
        pl.BlockSpec((1, Cout), lambda bb, hh: (0, 0)),             # bias (resident)
    ]
    args = [xp, xp, xp, w9, b2]
    if residual is not None:
        in_specs.append(pl.BlockSpec((1, 1, W, Cout), lambda bb, hh: (bb, hh, 0, 0)))
        args.append(residual)

    kernel = functools.partial(
        _conv3x3_kernel,
        apply_relu=apply_relu,
        apply_tanh=apply_tanh,
        has_residual=residual is not None)

    return pl.pallas_call(
        kernel,
        out_shape=jax.ShapeDtypeStruct((B, H, W, Cout), x.dtype),
        grid_spec=pltpu.PrefetchScalarGridSpec(
            num_scalar_prefetch=0,
            grid=(B, H),
            in_specs=in_specs,
            out_specs=pl.BlockSpec((1, 1, W, Cout), lambda bb, hh: (bb, hh, 0, 0)),
        ),
        compiler_params=pltpu.CompilerParams(
            dimension_semantics=("parallel", "arbitrary")),
    )(*args)


# ----------------------------------------------------------------------------
# Full generator forward pass (NHWC internally; NCHW only at the boundary).
# ----------------------------------------------------------------------------
def fixed_deblur_generator(x_nchw, p):
    x = jnp.transpose(x_nchw, (0, 2, 3, 1))                     # (B,H,W,3)
    f = conv3x3(x, p["w_init"], p["b_init"], apply_relu=True)   # initial
    f = fixed_attention(f, p["att_w1"], p["att_b1"], p["att_w2"], p["att_b2"])
    for i in range(4):                                          # deblur blocks
        r = f
        f = conv3x3(f, p[f"blk{i}_w1"], p[f"blk{i}_b1"], apply_relu=True)
        f = conv3x3(f, p[f"blk{i}_w2"], p[f"blk{i}_b2"], residual=r)
    f = conv3x3(f, p["out_w1"], p["out_b1"], apply_relu=True)   # output head
    f = conv3x3(f, p["out_w2"], p["out_b2"], apply_tanh=True)
    return jnp.transpose(f, (0, 3, 1, 2))                       # back to NCHW


# ----------------------------------------------------------------------------
# Pure-JAX reference of the same math.
# ----------------------------------------------------------------------------
def _ref_conv(x, w, b):
    return lax.conv_general_dilated(
        x, w, window_strides=(1, 1), padding="SAME",
        dimension_numbers=("NHWC", "HWIO", "NHWC"),
        precision=lax.Precision.HIGHEST) + b


def reference_generator(x_nchw, p):
    x = jnp.transpose(x_nchw, (0, 2, 3, 1))
    f = jax.nn.relu(_ref_conv(x, p["w_init"], p["b_init"]))
    h = jnp.einsum("bhwc,cd->bhwd", f, p["att_w1"],
                   precision=lax.Precision.HIGHEST) + p["att_b1"]
    att = jax.nn.sigmoid(
        jnp.einsum("bhwd,dc->bhwc", h, p["att_w2"],
                   precision=lax.Precision.HIGHEST) + p["att_b2"])
    f = f * att
    for i in range(4):
        r = f
        f = jax.nn.relu(_ref_conv(f, p[f"blk{i}_w1"], p[f"blk{i}_b1"]))
        f = _ref_conv(f, p[f"blk{i}_w2"], p[f"blk{i}_b2"]) + r
    f = jax.nn.relu(_ref_conv(f, p["out_w1"], p["out_b1"]))
    f = jnp.tanh(_ref_conv(f, p["out_w2"], p["out_b2"]))
    return jnp.transpose(f, (0, 3, 1, 2))


if __name__ == "__main__":
    key = jax.random.PRNGKey(0)
    B, H, W = 2, 16, 16
    C = 64
    Ch = C // 8

    keys = iter(jax.random.split(key, 64))

    def nrm(shape, scale):
        return scale * jax.random.normal(next(keys), shape, dtype=jnp.float32)

    x = nrm((B, 3, H, W), 1.0)

    p = {}
    p["w_init"] = nrm((3, 3, 3, C), 0.2)
    p["b_init"] = nrm((C,), 0.1)
    p["att_w1"] = nrm((C, Ch), 0.1)      # conv1 (1x1): C -> C//8
    p["att_b1"] = nrm((Ch,), 0.1)
    p["att_w2"] = nrm((Ch, C), 0.1)      # conv2 (1x1): C//8 -> C
    p["att_b2"] = nrm((C,), 0.1)
    for i in range(4):
        p[f"blk{i}_w1"] = nrm((3, 3, C, C), 0.04)
        p[f"blk{i}_b1"] = nrm((C,), 0.05)
        p[f"blk{i}_w2"] = nrm((3, 3, C, C), 0.04)
        p[f"blk{i}_b2"] = nrm((C,), 0.05)
    p["out_w1"] = nrm((3, 3, C, C), 0.04)
    p["out_b1"] = nrm((C,), 0.05)
    p["out_w2"] = nrm((3, 3, C, 3), 0.1)
    p["out_b2"] = nrm((3,), 0.05)

    run = jax.jit(fixed_deblur_generator)
    out = jax.block_until_ready(run(x, p))
    ref = jax.block_until_ready(reference_generator(x, p))

    assert out.shape == (B, 3, H, W)
    max_err = float(jnp.max(jnp.abs(out - ref)))
    assert jnp.allclose(out, ref, atol=1e-3, rtol=1e-3), max_err

    print("KERNEL_OK")
</pallas_src>

<mosaic_0001>
module attributes {stable_mosaic.version = 11 : i64} {
  func.func @_conv3x3_kernel(%arg0: i32, %arg1: i32, %arg2: memref<1x1x18x8xf32, #tpu.memory_space<vmem>>, %arg3: memref<1x1x18x8xf32, #tpu.memory_space<vmem>>, %arg4: memref<1x1x18x8xf32, #tpu.memory_space<vmem>>, %arg5: memref<9x8x64xf32, #tpu.memory_space<vmem>>, %arg6: memref<1x64xf32, #tpu.memory_space<vmem>>, %arg7: memref<1x1x16x64xf32, #tpu.memory_space<vmem>>) attributes {dimension_semantics = [#tpu.dimension_semantics<parallel>, #tpu.dimension_semantics<arbitrary>], iteration_bounds = array<i64: 2, 16>, scalar_prefetch = 0 : i64, scratch_operands = 0 : i64, tpu.core_type = #tpu.core_type<tc>, window_params = [{transform_indices = @transform_0, window_bounds = array<i64: 1, 1, 18, 8>}, {transform_indices = @transform_1, window_bounds = array<i64: 1, 1, 18, 8>}, {transform_indices = @transform_2, window_bounds = array<i64: 1, 1, 18, 8>}, {pipeline_mode = #tpu.pipeline_mode<synchronous>, transform_indices = @transform_3, window_bounds = array<i64: 9, 8, 64>}, {pipeline_mode = #tpu.pipeline_mode<synchronous>, transform_indices = @transform_4, window_bounds = array<i64: 1, 64>}, {transform_indices = @transform_5, window_bounds = array<i64: 1, 1, 16, 64>}]} {
    %cst = arith.constant 0.000000e+00 : f32
    %0 = vector.broadcast %cst : f32 to vector<16x64xf32>
    %c0 = arith.constant 0 : index
    %c0_0 = arith.constant 0 : index
    %c0_1 = arith.constant 0 : index
    %c0_2 = arith.constant 0 : index
    %1 = vector.load %arg2[%c0, %c0_0, %c0_1, %c0_2] : memref<1x1x18x8xf32, #tpu.memory_space<vmem>>, vector<1x1x16x8xf32>
    %2 = vector.shape_cast %1 : vector<1x1x16x8xf32> to vector<16x8xf32>
    %c0_3 = arith.constant 0 : index
    %c0_4 = arith.constant 0 : index
    %c0_5 = arith.constant 0 : index
    %3 = vector.load %arg5[%c0_3, %c0_4, %c0_5] : memref<9x8x64xf32, #tpu.memory_space<vmem>>, vector<1x8x64xf32>
    %4 = vector.shape_cast %3 : vector<1x8x64xf32> to vector<8x64xf32>
    %cst_6 = arith.constant dense<0.000000e+00> : vector<16x64xf32>
    %5 = tpu.matmul %2, %4, %cst_6 {dimension_numbers = #tpu.dot_dimension_numbers<[1], [0], [0], [1], [0, 0, 1, 1], [], []>} : vector<16x8xf32>, vector<8x64xf32>, vector<16x64xf32> -> vector<16x64xf32>
    %6 = arith.addf %0, %5 : vector<16x64xf32>
    %c0_7 = arith.constant 0 : index
    %c0_8 = arith.constant 0 : index
    %c1 = arith.constant 1 : index
    %c0_9 = arith.constant 0 : index
    %7 = vector.load %arg2[%c0_7, %c0_8, %c1, %c0_9] : memref<1x1x18x8xf32, #tpu.memory_space<vmem>>, vector<1x1x16x8xf32>
    %8 = vector.shape_cast %7 : vector<1x1x16x8xf32> to vector<16x8xf32>
    %c1_10 = arith.constant 1 : index
    %c0_11 = arith.constant 0 : index
    %c0_12 = arith.constant 0 : index
    %9 = vector.load %arg5[%c1_10, %c0_11, %c0_12] : memref<9x8x64xf32, #tpu.memory_space<vmem>>, vector<1x8x64xf32>
    %10 = vector.shape_cast %9 : vector<1x8x64xf32> to vector<8x64xf32>
    %cst_13 = arith.constant dense<0.000000e+00> : vector<16x64xf32>
    %11 = tpu.matmul %8, %10, %cst_13 {dimension_numbers = #tpu.dot_dimension_numbers<[1], [0], [0], [1], [0, 0, 1, 1], [], []>} : vector<16x8xf32>, vector<8x64xf32>, vector<16x64xf32> -> vector<16x64xf32>
    %12 = arith.addf %6, %11 : vector<16x64xf32>
    %c0_14 = arith.constant 0 : index
    %c0_15 = arith.constant 0 : index
    %c2 = arith.constant 2 : index
    %c0_16 = arith.constant 0 : index
    %13 = vector.load %arg2[%c0_14, %c0_15, %c2, %c0_16] : memref<1x1x18x8xf32, #tpu.memory_space<vmem>>, vector<1x1x16x8xf32>
    %14 = vector.shape_cast %13 : vector<1x1x16x8xf32> to vector<16x8xf32>
    %c2_17 = arith.constant 2 : index
    %c0_18 = arith.constant 0 : index
    %c0_19 = arith.constant 0 : index
    %15 = vector.load %arg5[%c2_17, %c0_18, %c0_19] : memref<9x8x64xf32, #tpu.memory_space<vmem>>, vector<1x8x64xf32>
    %16 = vector.shape_cast %15 : vector<1x8x64xf32> to vector<8x64xf32>
    %cst_20 = arith.constant dense<0.000000e+00> : vector<16x64xf32>
    %17 = tpu.matmul %14, %16, %cst_20 {dimension_numbers = #tpu.dot_dimension_numbers<[1], [0], [0], [1], [0, 0, 1, 1], [], []>} : vector<16x8xf32>, vector<8x64xf32>, vector<16x64xf32> -> vector<16x64xf32>
    %18 = arith.addf %12, %17 : vector<16x64xf32>
    %c0_21 = arith.constant 0 : index
    %c0_22 = arith.constant 0 : index
    %c0_23 = arith.constant 0 : index
    %c0_24 = arith.constant 0 : index
    %19 = vector.load %arg3[%c0_21, %c0_22, %c0_23, %c0_24] : memref<1x1x18x8xf32, #tpu.memory_space<vmem>>, vector<1x1x16x8xf32>
    %20 = vector.shape_cast %19 : vector<1x1x16x8xf32> to vector<16x8xf32>
    %c3 = arith.constant 3 : index
    %c0_25 = arith.constant 0 : index
    %c0_26 = arith.constant 0 : index
    %21 = vector.load %arg5[%c3, %c0_25, %c0_26] : memref<9x8x64xf32, #tpu.memory_space<vmem>>, vector<1x8x64xf32>
    %22 = vector.shape_cast %21 : vector<1x8x64xf32> to vector<8x64xf32>
    %cst_27 = arith.constant dense<0.000000e+00> : vector<16x64xf32>
    %23 = tpu.matmul %20, %22, %cst_27 {dimension_numbers = #tpu.dot_dimension_numbers<[1], [0], [0], [1], [0, 0, 1, 1], [], []>} : vector<16x8xf32>, vector<8x64xf32>, vector<16x64xf32> -> vector<16x64xf32>
    %24 = arith.addf %18, %23 : vector<16x64xf32>
    %c0_28 = arith.constant 0 : index
    %c0_29 = arith.constant 0 : index
    %c1_30 = arith.constant 1 : index
    %c0_31 = arith.constant 0 : index
    %25 = vector.load %arg3[%c0_28, %c0_29, %c1_30, %c0_31] : memref<1x1x18x8xf32, #tpu.memory_space<vmem>>, vector<1x1x16x8xf32>
    %26 = vector.shape_cast %25 : vector<1x1x16x8xf32> to vector<16x8xf32>
    %c4 = arith.constant 4 : index
    %c0_32 = arith.constant 0 : index
    %c0_33 = arith.constant 0 : index
    %27 = vector.load %arg5[%c4, %c0_32, %c0_33] : memref<9x8x64xf32, #tpu.memory_space<vmem>>, vector<1x8x64xf32>
    %28 = vector.shape_cast %27 : vector<1x8x64xf32> to vector<8x64xf32>
    %cst_34 = arith.constant dense<0.000000e+00> : vector<16x64xf32>
    %29 = tpu.matmul %26, %28, %cst_34 {dimension_numbers = #tpu.dot_dimension_numbers<[1], [0], [0], [1], [0, 0, 1, 1], [], []>} : vector<16x8xf32>, vector<8x64xf32>, vector<16x64xf32> -> vector<16x64xf32>
    %30 = arith.addf %24, %29 : vector<16x64xf32>
    %c0_35 = arith.constant 0 : index
    %c0_36 = arith.constant 0 : index
    %c2_37 = arith.constant 2 : index
    %c0_38 = arith.constant 0 : index
    %31 = vector.load %arg3[%c0_35, %c0_36, %c2_37, %c0_38] : memref<1x1x18x8xf32, #tpu.memory_space<vmem>>, vector<1x1x16x8xf32>
    %32 = vector.shape_cast %31 : vector<1x1x16x8xf32> to vector<16x8xf32>
    %c5 = arith.constant 5 : index
    %c0_39 = arith.constant 0 : index
    %c0_40 = arith.constant 0 : index
    %33 = vector.load %arg5[%c5, %c0_39, %c0_40] : memref<9x8x64xf32, #tpu.memory_space<vmem>>, vector<1x8x64xf32>
    %34 = vector.shape_cast %33 : vector<1x8x64xf32> to vector<8x64xf32>
    %cst_41 = arith.constant dense<0.000000e+00> : vector<16x64xf32>
    %35 = tpu.matmul %32, %34, %cst_41 {dimension_numbers = #tpu.dot_dimension_numbers<[1], [0], [0], [1], [0, 0, 1, 1], [], []>} : vector<16x8xf32>, vector<8x64xf32>, vector<16x64xf32> -> vector<16x64xf32>
    %36 = arith.addf %30, %35 : vector<16x64xf32>
    %c0_42 = arith.constant 0 : index
    %c0_43 = arith.constant 0 : index
    %c0_44 = arith.constant 0 : index
    %c0_45 = arith.constant 0 : index
    %37 = vector.load %arg4[%c0_42, %c0_43, %c0_44, %c0_45] : memref<1x1x18x8xf32, #tpu.memory_space<vmem>>, vector<1x1x16x8xf32>
    %38 = vector.shape_cast %37 : vector<1x1x16x8xf32> to vector<16x8xf32>
    %c6 = arith.constant 6 : index
    %c0_46 = arith.constant 0 : index
    %c0_47 = arith.constant 0 : index
    %39 = vector.load %arg5[%c6, %c0_46, %c0_47] : memref<9x8x64xf32, #tpu.memory_space<vmem>>, vector<1x8x64xf32>
    %40 = vector.shape_cast %39 : vector<1x8x64xf32> to vector<8x64xf32>
    %cst_48 = arith.constant dense<0.000000e+00> : vector<16x64xf32>
    %41 = tpu.matmul %38, %40, %cst_48 {dimension_numbers = #tpu.dot_dimension_numbers<[1], [0], [0], [1], [0, 0, 1, 1], [], []>} : vector<16x8xf32>, vector<8x64xf32>, vector<16x64xf32> -> vector<16x64xf32>
    %42 = arith.addf %36, %41 : vector<16x64xf32>
    %c0_49 = arith.constant 0 : index
    %c0_50 = arith.constant 0 : index
    %c1_51 = arith.constant 1 : index
    %c0_52 = arith.constant 0 : index
    %43 = vector.load %arg4[%c0_49, %c0_50, %c1_51, %c0_52] : memref<1x1x18x8xf32, #tpu.memory_space<vmem>>, vector<1x1x16x8xf32>
    %44 = vector.shape_cast %43 : vector<1x1x16x8xf32> to vector<16x8xf32>
    %c7 = arith.constant 7 : index
    %c0_53 = arith.constant 0 : index
    %c0_54 = arith.constant 0 : index
    %45 = vector.load %arg5[%c7, %c0_53, %c0_54] : memref<9x8x64xf32, #tpu.memory_space<vmem>>, vector<1x8x64xf32>
    %46 = vector.shape_cast %45 : vector<1x8x64xf32> to vector<8x64xf32>
    %cst_55 = arith.constant dense<0.000000e+00> : vector<16x64xf32>
    %47 = tpu.matmul %44, %46, %cst_55 {dimension_numbers = #tpu.dot_dimension_numbers<[1], [0], [0], [1], [0, 0, 1, 1], [], []>} : vector<16x8xf32>, vector<8x64xf32>, vector<16x64xf32> -> vector<16x64xf32>
    %48 = arith.addf %42, %47 : vector<16x64xf32>
    %c0_56 = arith.constant 0 : index
    %c0_57 = arith.constant 0 : index
    %c2_58 = arith.constant 2 : index
    %c0_59 = arith.constant 0 : index
    %49 = vector.load %arg4[%c0_56, %c0_57, %c2_58, %c0_59] : memref<1x1x18x8xf32, #tpu.memory_space<vmem>>, vector<1x1x16x8xf32>
    %50 = vector.shape_cast %49 : vector<1x1x16x8xf32> to vector<16x8xf32>
    %c8 = arith.constant 8 : index
    %c0_60 = arith.constant 0 : index
    %c0_61 = arith.constant 0 : index
    %51 = vector.load %arg5[%c8, %c0_60, %c0_61] : memref<9x8x64xf32, #tpu.memory_space<vmem>>, vector<1x8x64xf32>
    %52 = vector.shape_cast %51 : vector<1x8x64xf32> to vector<8x64xf32>
    %cst_62 = arith.constant dense<0.000000e+00> : vector<16x64xf32>
    %53 = tpu.matmul %50, %52, %cst_62 {dimension_numbers = #tpu.dot_dimension_numbers<[1], [0], [0], [1], [0, 0, 1, 1], [], []>} : vector<16x8xf32>, vector<8x64xf32>, vector<16x64xf32> -> vector<16x64xf32>
    %54 = arith.addf %48, %53 : vector<16x64xf32>
    %c0_63 = arith.constant 0 : index
    %c0_64 = arith.constant 0 : index
    %55 = vector.load %arg6[%c0_63, %c0_64] : memref<1x64xf32, #tpu.memory_space<vmem>>, vector<1x64xf32>
    %56 = vector.broadcast %55 : vector<1x64xf32> to vector<16x64xf32>
    %57 = arith.addf %54, %56 : vector<16x64xf32>
    %cst_65 = arith.constant 0.000000e+00 : f32
    %58 = vector.broadcast %cst_65 : f32 to vector<16x64xf32>
    %59 = arith.maximumf %57, %58 : vector<16x64xf32>
    %c0_66 = arith.constant 0 : index
    %c0_67 = arith.constant 0 : index
    %c0_68 = arith.constant 0 : index
    %c0_69 = arith.constant 0 : index
    %60 = vector.load %arg7[%c0_66, %c0_67, %c0_68, %c0_69] : memref<1x1x16x64xf32, #tpu.memory_space<vmem>>, vector<1x1x16x64xf32>
    %61 = vector.shape_cast %60 : vector<1x1x16x64xf32> to vector<16x64xf32>
    %62 = vector.shape_cast %59 : vector<16x64xf32> to vector<1x1x16x64xf32>
    tpu.vector_store %arg7[%c0_66, %c0_67, %c0_68, %c0_69], %62 {strides = array<i32>} : memref<1x1x16x64xf32, #tpu.memory_space<vmem>>, vector<1x1x16x64xf32>,
    return
  }
  func.func @transform_0(%arg0: i32, %arg1: i32) -> (i32, i32, i32, i32) {
    %c0_i32 = arith.constant 0 : i32
    %0 = arith.addi %arg1, %c0_i32 : i32
    %c0_i32_0 = arith.constant 0 : i32
    %c0_i32_1 = arith.constant 0 : i32
    %c0_i32_2 = arith.constant 0 : i32
    return %arg0, %0, %c0_i32_0, %c0_i32_1 : i32, i32, i32, i32
  }
  func.func @transform_1(%arg0: i32, %arg1: i32) -> (i32, i32, i32, i32) {
    %c1_i32 = arith.constant 1 : i32
    %0 = arith.addi %arg1, %c1_i32 : i32
    %c0_i32 = arith.constant 0 : i32
    %c0_i32_0 = arith.constant 0 : i32
    %c0_i32_1 = arith.constant 0 : i32
    return %arg0, %0, %c0_i32, %c0_i32_0 : i32, i32, i32, i32
  }
  func.func @transform_2(%arg0: i32, %arg1: i32) -> (i32, i32, i32, i32) {
    %c2_i32 = arith.constant 2 : i32
    %0 = arith.addi %arg1, %c2_i32 : i32
    %c0_i32 = arith.constant 0 : i32
    %c0_i32_0 = arith.constant 0 : i32
    %c0_i32_1 = arith.constant 0 : i32
    return %arg0, %0, %c0_i32, %c0_i32_0 : i32, i32, i32, i32
  }
  func.func @transform_3(%arg0: i32, %arg1: i32) -> (i32, i32, i32) {
    %c0_i32 = arith.constant 0 : i32
    %c0_i32_0 = arith.constant 0 : i32
    %c0_i32_1 = arith.constant 0 : i32
    %c0_i32_2 = arith.constant 0 : i32
    return %c0_i32, %c0_i32_0, %c0_i32_1 : i32, i32, i32
  }
  func.func @transform_4(%arg0: i32, %arg1: i32) -> (i32, i32) {
    %c0_i32 = arith.constant 0 : i32
    %c0_i32_0 = arith.constant 0 : i32
    %c0_i32_1 = arith.constant 0 : i32
    return %c0_i32, %c0_i32_0 : i32, i32
  }
  func.func @transform_5(%arg0: i32, %arg1: i32) -> (i32, i32, i32, i32) {
    %c0_i32 = arith.constant 0 : i32
    %c0_i32_0 = arith.constant 0 : i32
    %c0_i32_1 = arith.constant 0 : i32
    return %arg0, %arg1, %c0_i32, %c0_i32_0 : i32, i32, i32, i32
  }
}

module attributes {stable_mosaic.version = 11 : i64} {
  func.func @_attention_kernel(%arg0: i32, %arg1: memref<128x128xf32, #tpu.memory_space<vmem>>, %arg2: memref<128x128xf32, #tpu.memory_space<vmem>>, %arg3: memref<1x128xf32, #tpu.memory_space<vmem>>, %arg4: memref<128x128xf32, #tpu.memory_space<vmem>>) attributes {dimension_semantics = [#tpu.dimension_semantics<parallel>], iteration_bounds = array<i64: 2>, scalar_prefetch = 0 : i64, scratch_operands = 0 : i64, tpu.core_type = #tpu.core_type<tc>, window_params = [{transform_indices = @transform_0, window_bounds = array<i64: 128, 128>}, {pipeline_mode = #tpu.pipeline_mode<synchronous>, transform_indices = @transform_1, window_bounds = array<i64: 128, 128>}, {pipeline_mode = #tpu.pipeline_mode<synchronous>, transform_indices = @transform_2, window_bounds = array<i64: 1, 128>}, {transform_indices = @transform_3, window_bounds = array<i64: 128, 128>}]} {
    %c0 = arith.constant 0 : index
    %c0_0 = arith.constant 0 : index
    %0 = vector.load %arg1[%c0, %c0_0] : memref<128x128xf32, #tpu.memory_space<vmem>>, vector<128x128xf32>
    %c0_1 = arith.constant 0 : index
    %c0_2 = arith.constant 0 : index
    %1 = vector.load %arg2[%c0_1, %c0_2] : memref<128x128xf32, #tpu.memory_space<vmem>>, vector<128x128xf32>
    %cst = arith.constant dense<0.000000e+00> : vector<128x128xf32>
    %2 = tpu.matmul %0, %1, %cst {dimension_numbers = #tpu.dot_dimension_numbers<[1], [0], [0], [1], [0, 0, 1, 1], [], []>} : vector<128x128xf32>, vector<128x128xf32>, vector<128x128xf32> -> vector<128x128xf32>
    %c0_3 = arith.constant 0 : index
    %c0_4 = arith.constant 0 : index
    %3 = vector.load %arg3[%c0_3, %c0_4] : memref<1x128xf32, #tpu.memory_space<vmem>>, vector<1x128xf32>
    %4 = vector.broadcast %3 : vector<1x128xf32> to vector<128x128xf32>
    %5 = arith.addf %2, %4 : vector<128x128xf32>
    %6 = arith.negf %5 : vector<128x128xf32>
    %7 = math.exp %6 : vector<128x128xf32>
    %cst_5 = arith.constant 1.000000e+00 : f32
    %8 = vector.broadcast %cst_5 : f32 to vector<128x128xf32>
    %9 = arith.addf %8, %7 : vector<128x128xf32>
    %10 = arith.divf %8, %9 : vector<128x128xf32>
    %11 = arith.mulf %0, %10 : vector<128x128xf32>
    %c0_6 = arith.constant 0 : index
    %c0_7 = arith.constant 0 : index
    %12 = vector.load %arg4[%c0_6, %c0_7] : memref<128x128xf32, #tpu.memory_space<vmem>>, vector<128x128xf32>
    tpu.vector_store %arg4[%c0_6, %c0_7], %11 {strides = array<i32>} : memref<128x128xf32, #tpu.memory_space<vmem>>, vector<128x128xf32>,
    return
  }
  func.func @transform_0(%arg0: i32) -> (i32, i32) {
    %c0_i32 = arith.constant 0 : i32
    %c0_i32_0 = arith.constant 0 : i32
    return %arg0, %c0_i32 : i32, i32
  }
  func.func @transform_1(%arg0: i32) -> (i32, i32) {
    %c0_i32 = arith.constant 0 : i32
    %c0_i32_0 = arith.constant 0 : i32
    %c0_i32_1 = arith.constant 0 : i32
    return %c0_i32, %c0_i32_0 : i32, i32
  }
  func.func @transform_2(%arg0: i32) -> (i32, i32) {
    %c0_i32 = arith.constant 0 : i32
    %c0_i32_0 = arith.constant 0 : i32
    %c0_i32_1 = arith.constant 0 : i32
    return %c0_i32, %c0_i32_0 : i32, i32
  }
  func.func @transform_3(%arg0: i32) -> (i32, i32) {
    %c0_i32 = arith.constant 0 : i32
    %c0_i32_0 = arith.constant 0 : i32
    return %arg0, %c0_i32 : i32, i32
  }
}

module attributes {stable_mosaic.version = 11 : i64} {
  func.func @_conv3x3_kernel(%arg0: i32, %arg1: i32, %arg2: memref<1x1x18x64xf32, #tpu.memory_space<vmem>>, %arg3: memref<1x1x18x64xf32, #tpu.memory_space<vmem>>, %arg4: memref<1x1x18x64xf32, #tpu.memory_space<vmem>>, %arg5: memref<9x64x64xf32, #tpu.memory_space<vmem>>, %arg6: memref<1x64xf32, #tpu.memory_space<vmem>>, %arg7: memref<1x1x16x64xf32, #tpu.memory_space<vmem>>, %arg8: memref<1x1x16x64xf32, #tpu.memory_space<vmem>>) attributes {dimension_semantics = [#tpu.dimension_semantics<parallel>, #tpu.dimension_semantics<arbitrary>], iteration_bounds = array<i64: 2, 16>, scalar_prefetch = 0 : i64, scratch_operands = 0 : i64, tpu.core_type = #tpu.core_type<tc>, window_params = [{transform_indices = @transform_0, window_bounds = array<i64: 1, 1, 18, 64>}, {transform_indices = @transform_1, window_bounds = array<i64: 1, 1, 18, 64>}, {transform_indices = @transform_2, window_bounds = array<i64: 1, 1, 18, 64>}, {pipeline_mode = #tpu.pipeline_mode<synchronous>, transform_indices = @transform_3, window_bounds = array<i64: 9, 64, 64>}, {pipeline_mode = #tpu.pipeline_mode<synchronous>, transform_indices = @transform_4, window_bounds = array<i64: 1, 64>}, {transform_indices = @transform_5, window_bounds = array<i64: 1, 1, 16, 64>}, {transform_indices = @transform_6, window_bounds = array<i64: 1, 1, 16, 64>}]} {
    %cst = arith.constant 0.000000e+00 : f32
    %0 = vector.broadcast %cst : f32 to vector<16x64xf32>
    %c0 = arith.constant 0 : index
    %c0_0 = arith.constant 0 : index
    %c0_1 = arith.constant 0 : index
    %c0_2 = arith.constant 0 : index
    %1 = vector.load %arg2[%c0, %c0_0, %c0_1, %c0_2] : memref<1x1x18x64xf32, #tpu.memory_space<vmem>>, vector<1x1x16x64xf32>
    %2 = vector.shape_cast %1 : vector<1x1x16x64xf32> to vector<16x64xf32>
    %c0_3 = arith.constant 0 : index
    %c0_4 = arith.constant 0 : index
    %c0_5 = arith.constant 0 : index
    %3 = vector.load %arg5[%c0_3, %c0_4, %c0_5] : memref<9x64x64xf32, #tpu.memory_space<vmem>>, vector<1x64x64xf32>
    %4 = vector.shape_cast %3 : vector<1x64x64xf32> to vector<64x64xf32>
    %cst_6 = arith.constant dense<0.000000e+00> : vector<16x64xf32>
    %5 = tpu.matmul %2, %4, %cst_6 {dimension_numbers = #tpu.dot_dimension_numbers<[1], [0], [0], [1], [0, 0, 1, 1], [], []>} : vector<16x64xf32>, vector<64x64xf32>, vector<16x64xf32> -> vector<16x64xf32>
    %6 = arith.addf %0, %5 : vector<16x64xf32>
    %c0_7 = arith.constant 0 : index
    %c0_8 = arith.constant 0 : index
    %c1 = arith.constant 1 : index
    %c0_9 = arith.constant 0 : index
    %7 = vector.load %arg2[%c0_7, %c0_8, %c1, %c0_9] : memref<1x1x18x64xf32, #tpu.memory_space<vmem>>, vector<1x1x16x64xf32>
    %8 = vector.shape_cast %7 : vector<1x1x16x64xf32> to vector<16x64xf32>
    %c1_10 = arith.constant 1 : index
    %c0_11 = arith.constant 0 : index
    %c0_12 = arith.constant 0 : index
    %9 = vector.load %arg5[%c1_10, %c0_11, %c0_12] : memref<9x64x64xf32, #tpu.memory_space<vmem>>, vector<1x64x64xf32>
    %10 = vector.shape_cast %9 : vector<1x64x64xf32> to vector<64x64xf32>
    %cst_13 = arith.constant dense<0.000000e+00> : vector<16x64xf32>
    %11 = tpu.matmul %8, %10, %cst_13 {dimension_numbers = #tpu.dot_dimension_numbers<[1], [0], [0], [1], [0, 0, 1, 1], [], []>} : vector<16x64xf32>, vector<64x64xf32>, vector<16x64xf32> -> vector<16x64xf32>
    %12 = arith.addf %6, %11 : vector<16x64xf32>
    %c0_14 = arith.constant 0 : index
    %c0_15 = arith.constant 0 : index
    %c2 = arith.constant 2 : index
    %c0_16 = arith.constant 0 : index
    %13 = vector.load %arg2[%c0_14, %c0_15, %c2, %c0_16] : memref<1x1x18x64xf32, #tpu.memory_space<vmem>>, vector<1x1x16x64xf32>
    %14 = vector.shape_cast %13 : vector<1x1x16x64xf32> to vector<16x64xf32>
    %c2_17 = arith.constant 2 : index
    %c0_18 = arith.constant 0 : index
    %c0_19 = arith.constant 0 : index
    %15 = vector.load %arg5[%c2_17, %c0_18, %c0_19] : memref<9x64x64xf32, #tpu.memory_space<vmem>>, vector<1x64x64xf32>
    %16 = vector.shape_cast %15 : vector<1x64x64xf32> to vector<64x64xf32>
    %cst_20 = arith.constant dense<0.000000e+00> : vector<16x64xf32>
    %17 = tpu.matmul %14, %16, %cst_20 {dimension_numbers = #tpu.dot_dimension_numbers<[1], [0], [0], [1], [0, 0, 1, 1], [], []>} : vector<16x64xf32>, vector<64x64xf32>, vector<16x64xf32> -> vector<16x64xf32>
    %18 = arith.addf %12, %17 : vector<16x64xf32>
    %c0_21 = arith.constant 0 : index
    %c0_22 = arith.constant 0 : index
    %c0_23 = arith.constant 0 : index
    %c0_24 = arith.constant 0 : index
    %19 = vector.load %arg3[%c0_21, %c0_22, %c0_23, %c0_24] : memref<1x1x18x64xf32, #tpu.memory_space<vmem>>, vector<1x1x16x64xf32>
    %20 = vector.shape_cast %19 : vector<1x1x16x64xf32> to vector<16x64xf32>
    %c3 = arith.constant 3 : index
    %c0_25 = arith.constant 0 : index
    %c0_26 = arith.constant 0 : index
    %21 = vector.load %arg5[%c3, %c0_25, %c0_26] : memref<9x64x64xf32, #tpu.memory_space<vmem>>, vector<1x64x64xf32>
    %22 = vector.shape_cast %21 : vector<1x64x64xf32> to vector<64x64xf32>
    %cst_27 = arith.constant dense<0.000000e+00> : vector<16x64xf32>
    %23 = tpu.matmul %20, %22, %cst_27 {dimension_numbers = #tpu.dot_dimension_numbers<[1], [0], [0], [1], [0, 0, 1, 1], [], []>} : vector<16x64xf32>, vector<64x64xf32>, vector<16x64xf32> -> vector<16x64xf32>
    %24 = arith.addf %18, %23 : vector<16x64xf32>
    %c0_28 = arith.constant 0 : index
    %c0_29 = arith.constant 0 : index
    %c1_30 = arith.constant 1 : index
    %c0_31 = arith.constant 0 : index
    %25 = vector.load %arg3[%c0_28, %c0_29, %c1_30, %c0_31] : memref<1x1x18x64xf32, #tpu.memory_space<vmem>>, vector<1x1x16x64xf32>
    %26 = vector.shape_cast %25 : vector<1x1x16x64xf32> to vector<16x64xf32>
    %c4 = arith.constant 4 : index
    %c0_32 = arith.constant 0 : index
    %c0_33 = arith.constant 0 : index
    %27 = vector.load %arg5[%c4, %c0_32, %c0_33] : memref<9x64x64xf32, #tpu.memory_space<vmem>>, vector<1x64x64xf32>
    %28 = vector.shape_cast %27 : vector<1x64x64xf32> to vector<64x64xf32>
    %cst_34 = arith.constant dense<0.000000e+00> : vector<16x64xf32>
    %29 = tpu.matmul %26, %28, %cst_34 {dimension_numbers = #tpu.dot_dimension_numbers<[1], [0], [0], [1], [0, 0, 1, 1], [], []>} : vector<16x64xf32>, vector<64x64xf32>, vector<16x64xf32> -> vector<16x64xf32>
    %30 = arith.addf %24, %29 : vector<16x64xf32>
    %c0_35 = arith.constant 0 : index
    %c0_36 = arith.constant 0 : index
    %c2_37 = arith.constant 2 : index
    %c0_38 = arith.constant 0 : index
    %31 = vector.load %arg3[%c0_35, %c0_36, %c2_37, %c0_38] : memref<1x1x18x64xf32, #tpu.memory_space<vmem>>, vector<1x1x16x64xf32>
    %32 = vector.shape_cast %31 : vector<1x1x16x64xf32> to vector<16x64xf32>
    %c5 = arith.constant 5 : index
    %c0_39 = arith.constant 0 : index
    %c0_40 = arith.constant 0 : index
    %33 = vector.load %arg5[%c5, %c0_39, %c0_40] : memref<9x64x64xf32, #tpu.memory_space<vmem>>, vector<1x64x64xf32>
    %34 = vector.shape_cast %33 : vector<1x64x64xf32> to vector<64x64xf32>
    %cst_41 = arith.constant dense<0.000000e+00> : vector<16x64xf32>
    %35 = tpu.matmul %32, %34, %cst_41 {dimension_numbers = #tpu.dot_dimension_numbers<[1], [0], [0], [1], [0, 0, 1, 1], [], []>} : vector<16x64xf32>, vector<64x64xf32>, vector<16x64xf32> -> vector<16x64xf32>
    %36 = arith.addf %30, %35 : vector<16x64xf32>
    %c0_42 = arith.constant 0 : index
    %c0_43 = arith.constant 0 : index
    %c0_44 = arith.constant 0 : index
    %c0_45 = arith.constant 0 : index
    %37 = vector.load %arg4[%c0_42, %c0_43, %c0_44, %c0_45] : memref<1x1x18x64xf32, #tpu.memory_space<vmem>>, vector<1x1x16x64xf32>
    %38 = vector.shape_cast %37 : vector<1x1x16x64xf32> to vector<16x64xf32>
    %c6 = arith.constant 6 : index
    %c0_46 = arith.constant 0 : index
    %c0_47 = arith.constant 0 : index
    %39 = vector.load %arg5[%c6, %c0_46, %c0_47] : memref<9x64x64xf32, #tpu.memory_space<vmem>>, vector<1x64x64xf32>
    %40 = vector.shape_cast %39 : vector<1x64x64xf32> to vector<64x64xf32>
    %cst_48 = arith.constant dense<0.000000e+00> : vector<16x64xf32>
    %41 = tpu.matmul %38, %40, %cst_48 {dimension_numbers = #tpu.dot_dimension_numbers<[1], [0], [0], [1], [0, 0, 1, 1], [], []>} : vector<16x64xf32>, vector<64x64xf32>, vector<16x64xf32> -> vector<16x64xf32>
    %42 = arith.addf %36, %41 : vector<16x64xf32>
    %c0_49 = arith.constant 0 : index
    %c0_50 = arith.constant 0 : index
    %c1_51 = arith.constant 1 : index
    %c0_52 = arith.constant 0 : index
    %43 = vector.load %arg4[%c0_49, %c0_50, %c1_51, %c0_52] : memref<1x1x18x64xf32, #tpu.memory_space<vmem>>, vector<1x1x16x64xf32>
    %44 = vector.shape_cast %43 : vector<1x1x16x64xf32> to vector<16x64xf32>
    %c7 = arith.constant 7 : index
    %c0_53 = arith.constant 0 : index
    %c0_54 = arith.constant 0 : index
    %45 = vector.load %arg5[%c7, %c0_53, %c0_54] : memref<9x64x64xf32, #tpu.memory_space<vmem>>, vector<1x64x64xf32>
    %46 = vector.shape_cast %45 : vector<1x64x64xf32> to vector<64x64xf32>
    %cst_55 = arith.constant dense<0.000000e+00> : vector<16x64xf32>
    %47 = tpu.matmul %44, %46, %cst_55 {dimension_numbers = #tpu.dot_dimension_numbers<[1], [0], [0], [1], [0, 0, 1, 1], [], []>} : vector<16x64xf32>, vector<64x64xf32>, vector<16x64xf32> -> vector<16x64xf32>
    %48 = arith.addf %42, %47 : vector<16x64xf32>
    %c0_56 = arith.constant 0 : index
    %c0_57 = arith.constant 0 : index
    %c2_58 = arith.constant 2 : index
    %c0_59 = arith.constant 0 : index
    %49 = vector.load %arg4[%c0_56, %c0_57, %c2_58, %c0_59] : memref<1x1x18x64xf32, #tpu.memory_space<vmem>>, vector<1x1x16x64xf32>
    %50 = vector.shape_cast %49 : vector<1x1x16x64xf32> to vector<16x64xf32>
    %c8 = arith.constant 8 : index
    %c0_60 = arith.constant 0 : index
    %c0_61 = arith.constant 0 : index
    %51 = vector.load %arg5[%c8, %c0_60, %c0_61] : memref<9x64x64xf32, #tpu.memory_space<vmem>>, vector<1x64x64xf32>
    %52 = vector.shape_cast %51 : vector<1x64x64xf32> to vector<64x64xf32>
    %cst_62 = arith.constant dense<0.000000e+00> : vector<16x64xf32>
    %53 = tpu.matmul %50, %52, %cst_62 {dimension_numbers = #tpu.dot_dimension_numbers<[1], [0], [0], [1], [0, 0, 1, 1], [], []>} : vector<16x64xf32>, vector<64x64xf32>, vector<16x64xf32> -> vector<16x64xf32>
    %54 = arith.addf %48, %53 : vector<16x64xf32>
    %c0_63 = arith.constant 0 : index
    %c0_64 = arith.constant 0 : index
    %55 = vector.load %arg6[%c0_63, %c0_64] : memref<1x64xf32, #tpu.memory_space<vmem>>, vector<1x64xf32>
    %56 = vector.broadcast %55 : vector<1x64xf32> to vector<16x64xf32>
    %57 = arith.addf %54, %56 : vector<16x64xf32>
    %c0_65 = arith.constant 0 : index
    %c0_66 = arith.constant 0 : index
    %c0_67 = arith.constant 0 : index
    %c0_68 = arith.constant 0 : index
    %58 = vector.load %arg7[%c0_65, %c0_66, %c0_67, %c0_68] : memref<1x1x16x64xf32, #tpu.memory_space<vmem>>, vector<1x1x16x64xf32>
    %59 = vector.shape_cast %58 : vector<1x1x16x64xf32> to vector<16x64xf32>
    %60 = arith.addf %57, %59 : vector<16x64xf32>
    %c0_69 = arith.constant 0 : index
    %c0_70 = arith.constant 0 : index
    %c0_71 = arith.constant 0 : index
    %c0_72 = arith.constant 0 : index
    %61 = vector.load %arg8[%c0_69, %c0_70, %c0_71, %c0_72] : memref<1x1x16x64xf32, #tpu.memory_space<vmem>>, vector<1x1x16x64xf32>
    %62 = vector.shape_cast %61 : vector<1x1x16x64xf32> to vector<16x64xf32>
    %63 = vector.shape_cast %60 : vector<16x64xf32> to vector<1x1x16x64xf32>
    tpu.vector_store %arg8[%c0_69, %c0_70, %c0_71, %c0_72], %63 {strides = array<i32>} : memref<1x1x16x64xf32, #tpu.memory_space<vmem>>, vector<1x1x16x64xf32>,
    return
  }
  func.func @transform_0(%arg0: i32, %arg1: i32) -> (i32, i32, i32, i32) {
    %c0_i32 = arith.constant 0 : i32
    %0 = arith.addi %arg1, %c0_i32 : i32
    %c0_i32_0 = arith.constant 0 : i32
    %c0_i32_1 = arith.constant 0 : i32
    %c0_i32_2 = arith.constant 0 : i32
    return %arg0, %0, %c0_i32_0, %c0_i32_1 : i32, i32, i32, i32
  }
  func.func @transform_1(%arg0: i32, %arg1: i32) -> (i32, i32, i32, i32) {
    %c1_i32 = arith.constant 1 : i32
    %0 = arith.addi %arg1, %c1_i32 : i32
    %c0_i32 = arith.constant 0 : i32
    %c0_i32_0 = arith.constant 0 : i32
    %c0_i32_1 = arith.constant 0 : i32
    return %arg0, %0, %c0_i32, %c0_i32_0 : i32, i32, i32, i32
  }
  func.func @transform_2(%arg0: i32, %arg1: i32) -> (i32, i32, i32, i32) {
    %c2_i32 = arith.constant 2 : i32
    %0 = arith.addi %arg1, %c2_i32 : i32
    %c0_i32 = arith.constant 0 : i32
    %c0_i32_0 = arith.constant 0 : i32
    %c0_i32_1 = arith.constant 0 : i32
    return %arg0, %0, %c0_i32, %c0_i32_0 : i32, i32, i32, i32
  }
  func.func @transform_3(%arg0: i32, %arg1: i32) -> (i32, i32, i32) {
    %c0_i32 = arith.constant 0 : i32
    %c0_i32_0 = arith.constant 0 : i32
    %c0_i32_1 = arith.constant 0 : i32
    %c0_i32_2 = arith.constant 0 : i32
    return %c0_i32, %c0_i32_0, %c0_i32_1 : i32, i32, i32
  }
  func.func @transform_4(%arg0: i32, %arg1: i32) -> (i32, i32) {
    %c0_i32 = arith.constant 0 : i32
    %c0_i32_0 = arith.constant 0 : i32
    %c0_i32_1 = arith.constant 0 : i32
    return %c0_i32, %c0_i32_0 : i32, i32
  }
  func.func @transform_5(%arg0: i32, %arg1: i32) -> (i32, i32, i32, i32) {
    %c0_i32 = arith.constant 0 : i32
    %c0_i32_0 = arith.constant 0 : i32
    %c0_i32_1 = arith.constant 0 : i32
    return %arg0, %arg1, %c0_i32, %c0_i32_0 : i32, i32, i32, i32
  }
  func.func @transform_6(%arg0: i32, %arg1: i32) -> (i32, i32, i32, i32) {
    %c0_i32 = arith.constant 0 : i32
    %c0_i32_0 = arith.constant 0 : i32
    %c0_i32_1 = arith.constant 0 : i32
    return %arg0, %arg1, %c0_i32, %c0_i32_0 : i32, i32, i32, i32
  }
}

module attributes {stable_mosaic.version = 11 : i64} {
  func.func @_conv3x3_kernel(%arg0: i32, %arg1: i32, %arg2: memref<1x1x18x64xf32, #tpu.memory_space<vmem>>, %arg3: memref<1x1x18x64xf32, #tpu.memory_space<vmem>>, %arg4: memref<1x1x18x64xf32, #tpu.memory_space<vmem>>, %arg5: memref<9x64x64xf32, #tpu.memory_space<vmem>>, %arg6: memref<1x64xf32, #tpu.memory_space<vmem>>, %arg7: memref<1x1x16x64xf32, #tpu.memory_space<vmem>>) attributes {dimension_semantics = [#tpu.dimension_semantics<parallel>, #tpu.dimension_semantics<arbitrary>], iteration_bounds = array<i64: 2, 16>, scalar_prefetch = 0 : i64, scratch_operands = 0 : i64, tpu.core_type = #tpu.core_type<tc>, window_params = [{transform_indices = @transform_0, window_bounds = array<i64: 1, 1, 18, 64>}, {transform_indices = @transform_1, window_bounds = array<i64: 1, 1, 18, 64>}, {transform_indices = @transform_2, window_bounds = array<i64: 1, 1, 18, 64>}, {pipeline_mode = #tpu.pipeline_mode<synchronous>, transform_indices = @transform_3, window_bounds = array<i64: 9, 64, 64>}, {pipeline_mode = #tpu.pipeline_mode<synchronous>, transform_indices = @transform_4, window_bounds = array<i64: 1, 64>}, {transform_indices = @transform_5, window_bounds = array<i64: 1, 1, 16, 64>}]} {
    %cst = arith.constant 0.000000e+00 : f32
    %0 = vector.broadcast %cst : f32 to vector<16x64xf32>
    %c0 = arith.constant 0 : index
    %c0_0 = arith.constant 0 : index
    %c0_1 = arith.constant 0 : index
    %c0_2 = arith.constant 0 : index
    %1 = vector.load %arg2[%c0, %c0_0, %c0_1, %c0_2] : memref<1x1x18x64xf32, #tpu.memory_space<vmem>>, vector<1x1x16x64xf32>
    %2 = vector.shape_cast %1 : vector<1x1x16x64xf32> to vector<16x64xf32>
    %c0_3 = arith.constant 0 : index
    %c0_4 = arith.constant 0 : index
    %c0_5 = arith.constant 0 : index
    %3 = vector.load %arg5[%c0_3, %c0_4, %c0_5] : memref<9x64x64xf32, #tpu.memory_space<vmem>>, vector<1x64x64xf32>
    %4 = vector.shape_cast %3 : vector<1x64x64xf32> to vector<64x64xf32>
    %cst_6 = arith.constant dense<0.000000e+00> : vector<16x64xf32>
    %5 = tpu.matmul %2, %4, %cst_6 {dimension_numbers = #tpu.dot_dimension_numbers<[1], [0], [0], [1], [0, 0, 1, 1], [], []>} : vector<16x64xf32>, vector<64x64xf32>, vector<16x64xf32> -> vector<16x64xf32>
    %6 = arith.addf %0, %5 : vector<16x64xf32>
    %c0_7 = arith.constant 0 : index
    %c0_8 = arith.constant 0 : index
    %c1 = arith.constant 1 : index
    %c0_9 = arith.constant 0 : index
    %7 = vector.load %arg2[%c0_7, %c0_8, %c1, %c0_9] : memref<1x1x18x64xf32, #tpu.memory_space<vmem>>, vector<1x1x16x64xf32>
    %8 = vector.shape_cast %7 : vector<1x1x16x64xf32> to vector<16x64xf32>
    %c1_10 = arith.constant 1 : index
    %c0_11 = arith.constant 0 : index
    %c0_12 = arith.constant 0 : index
    %9 = vector.load %arg5[%c1_10, %c0_11, %c0_12] : memref<9x64x64xf32, #tpu.memory_space<vmem>>, vector<1x64x64xf32>
    %10 = vector.shape_cast %9 : vector<1x64x64xf32> to vector<64x64xf32>
    %cst_13 = arith.constant dense<0.000000e+00> : vector<16x64xf32>
    %11 = tpu.matmul %8, %10, %cst_13 {dimension_numbers = #tpu.dot_dimension_numbers<[1], [0], [0], [1], [0, 0, 1, 1], [], []>} : vector<16x64xf32>, vector<64x64xf32>, vector<16x64xf32> -> vector<16x64xf32>
    %12 = arith.addf %6, %11 : vector<16x64xf32>
    %c0_14 = arith.constant 0 : index
    %c0_15 = arith.constant 0 : index
    %c2 = arith.constant 2 : index
    %c0_16 = arith.constant 0 : index
    %13 = vector.load %arg2[%c0_14, %c0_15, %c2, %c0_16] : memref<1x1x18x64xf32, #tpu.memory_space<vmem>>, vector<1x1x16x64xf32>
    %14 = vector.shape_cast %13 : vector<1x1x16x64xf32> to vector<16x64xf32>
    %c2_17 = arith.constant 2 : index
    %c0_18 = arith.constant 0 : index
    %c0_19 = arith.constant 0 : index
    %15 = vector.load %arg5[%c2_17, %c0_18, %c0_19] : memref<9x64x64xf32, #tpu.memory_space<vmem>>, vector<1x64x64xf32>
    %16 = vector.shape_cast %15 : vector<1x64x64xf32> to vector<64x64xf32>
    %cst_20 = arith.constant dense<0.000000e+00> : vector<16x64xf32>
    %17 = tpu.matmul %14, %16, %cst_20 {dimension_numbers = #tpu.dot_dimension_numbers<[1], [0], [0], [1], [0, 0, 1, 1], [], []>} : vector<16x64xf32>, vector<64x64xf32>, vector<16x64xf32> -> vector<16x64xf32>
    %18 = arith.addf %12, %17 : vector<16x64xf32>
    %c0_21 = arith.constant 0 : index
    %c0_22 = arith.constant 0 : index
    %c0_23 = arith.constant 0 : index
    %c0_24 = arith.constant 0 : index
    %19 = vector.load %arg3[%c0_21, %c0_22, %c0_23, %c0_24] : memref<1x1x18x64xf32, #tpu.memory_space<vmem>>, vector<1x1x16x64xf32>
    %20 = vector.shape_cast %19 : vector<1x1x16x64xf32> to vector<16x64xf32>
    %c3 = arith.constant 3 : index
    %c0_25 = arith.constant 0 : index
    %c0_26 = arith.constant 0 : index
    %21 = vector.load %arg5[%c3, %c0_25, %c0_26] : memref<9x64x64xf32, #tpu.memory_space<vmem>>, vector<1x64x64xf32>
    %22 = vector.shape_cast %21 : vector<1x64x64xf32> to vector<64x64xf32>
    %cst_27 = arith.constant dense<0.000000e+00> : vector<16x64xf32>
    %23 = tpu.matmul %20, %22, %cst_27 {dimension_numbers = #tpu.dot_dimension_numbers<[1], [0], [0], [1], [0, 0, 1, 1], [], []>} : vector<16x64xf32>, vector<64x64xf32>, vector<16x64xf32> -> vector<16x64xf32>
    %24 = arith.addf %18, %23 : vector<16x64xf32>
    %c0_28 = arith.constant 0 : index
    %c0_29 = arith.constant 0 : index
    %c1_30 = arith.constant 1 : index
    %c0_31 = arith.constant 0 : index
    %25 = vector.load %arg3[%c0_28, %c0_29, %c1_30, %c0_31] : memref<1x1x18x64xf32, #tpu.memory_space<vmem>>, vector<1x1x16x64xf32>
    %26 = vector.shape_cast %25 : vector<1x1x16x64xf32> to vector<16x64xf32>
    %c4 = arith.constant 4 : index
    %c0_32 = arith.constant 0 : index
    %c0_33 = arith.constant 0 : index
    %27 = vector.load %arg5[%c4, %c0_32, %c0_33] : memref<9x64x64xf32, #tpu.memory_space<vmem>>, vector<1x64x64xf32>
    %28 = vector.shape_cast %27 : vector<1x64x64xf32> to vector<64x64xf32>
    %cst_34 = arith.constant dense<0.000000e+00> : vector<16x64xf32>
    %29 = tpu.matmul %26, %28, %cst_34 {dimension_numbers = #tpu.dot_dimension_numbers<[1], [0], [0], [1], [0, 0, 1, 1], [], []>} : vector<16x64xf32>, vector<64x64xf32>, vector<16x64xf32> -> vector<16x64xf32>
    %30 = arith.addf %24, %29 : vector<16x64xf32>
    %c0_35 = arith.constant 0 : index
    %c0_36 = arith.constant 0 : index
    %c2_37 = arith.constant 2 : index
    %c0_38 = arith.constant 0 : index
    %31 = vector.load %arg3[%c0_35, %c0_36, %c2_37, %c0_38] : memref<1x1x18x64xf32, #tpu.memory_space<vmem>>, vector<1x1x16x64xf32>
    %32 = vector.shape_cast %31 : vector<1x1x16x64xf32> to vector<16x64xf32>
    %c5 = arith.constant 5 : index
    %c0_39 = arith.constant 0 : index
    %c0_40 = arith.constant 0 : index
    %33 = vector.load %arg5[%c5, %c0_39, %c0_40] : memref<9x64x64xf32, #tpu.memory_space<vmem>>, vector<1x64x64xf32>
    %34 = vector.shape_cast %33 : vector<1x64x64xf32> to vector<64x64xf32>
    %cst_41 = arith.constant dense<0.000000e+00> : vector<16x64xf32>
    %35 = tpu.matmul %32, %34, %cst_41 {dimension_numbers = #tpu.dot_dimension_numbers<[1], [0], [0], [1], [0, 0, 1, 1], [], []>} : vector<16x64xf32>, vector<64x64xf32>, vector<16x64xf32> -> vector<16x64xf32>
    %36 = arith.addf %30, %35 : vector<16x64xf32>
    %c0_42 = arith.constant 0 : index
    %c0_43 = arith.constant 0 : index
    %c0_44 = arith.constant 0 : index
    %c0_45 = arith.constant 0 : index
    %37 = vector.load %arg4[%c0_42, %c0_43, %c0_44, %c0_45] : memref<1x1x18x64xf32, #tpu.memory_space<vmem>>, vector<1x1x16x64xf32>
    %38 = vector.shape_cast %37 : vector<1x1x16x64xf32> to vector<16x64xf32>
    %c6 = arith.constant 6 : index
    %c0_46 = arith.constant 0 : index
    %c0_47 = arith.constant 0 : index
    %39 = vector.load %arg5[%c6, %c0_46, %c0_47] : memref<9x64x64xf32, #tpu.memory_space<vmem>>, vector<1x64x64xf32>
    %40 = vector.shape_cast %39 : vector<1x64x64xf32> to vector<64x64xf32>
    %cst_48 = arith.constant dense<0.000000e+00> : vector<16x64xf32>
    %41 = tpu.matmul %38, %40, %cst_48 {dimension_numbers = #tpu.dot_dimension_numbers<[1], [0], [0], [1], [0, 0, 1, 1], [], []>} : vector<16x64xf32>, vector<64x64xf32>, vector<16x64xf32> -> vector<16x64xf32>
    %42 = arith.addf %36, %41 : vector<16x64xf32>
    %c0_49 = arith.constant 0 : index
    %c0_50 = arith.constant 0 : index
    %c1_51 = arith.constant 1 : index
    %c0_52 = arith.constant 0 : index
    %43 = vector.load %arg4[%c0_49, %c0_50, %c1_51, %c0_52] : memref<1x1x18x64xf32, #tpu.memory_space<vmem>>, vector<1x1x16x64xf32>
    %44 = vector.shape_cast %43 : vector<1x1x16x64xf32> to vector<16x64xf32>
    %c7 = arith.constant 7 : index
    %c0_53 = arith.constant 0 : index
    %c0_54 = arith.constant 0 : index
    %45 = vector.load %arg5[%c7, %c0_53, %c0_54] : memref<9x64x64xf32, #tpu.memory_space<vmem>>, vector<1x64x64xf32>
    %46 = vector.shape_cast %45 : vector<1x64x64xf32> to vector<64x64xf32>
    %cst_55 = arith.constant dense<0.000000e+00> : vector<16x64xf32>
    %47 = tpu.matmul %44, %46, %cst_55 {dimension_numbers = #tpu.dot_dimension_numbers<[1], [0], [0], [1], [0, 0, 1, 1], [], []>} : vector<16x64xf32>, vector<64x64xf32>, vector<16x64xf32> -> vector<16x64xf32>
    %48 = arith.addf %42, %47 : vector<16x64xf32>
    %c0_56 = arith.constant 0 : index
    %c0_57 = arith.constant 0 : index
    %c2_58 = arith.constant 2 : index
    %c0_59 = arith.constant 0 : index
    %49 = vector.load %arg4[%c0_56, %c0_57, %c2_58, %c0_59] : memref<1x1x18x64xf32, #tpu.memory_space<vmem>>, vector<1x1x16x64xf32>
    %50 = vector.shape_cast %49 : vector<1x1x16x64xf32> to vector<16x64xf32>
    %c8 = arith.constant 8 : index
    %c0_60 = arith.constant 0 : index
    %c0_61 = arith.constant 0 : index
    %51 = vector.load %arg5[%c8, %c0_60, %c0_61] : memref<9x64x64xf32, #tpu.memory_space<vmem>>, vector<1x64x64xf32>
    %52 = vector.shape_cast %51 : vector<1x64x64xf32> to vector<64x64xf32>
    %cst_62 = arith.constant dense<0.000000e+00> : vector<16x64xf32>
    %53 = tpu.matmul %50, %52, %cst_62 {dimension_numbers = #tpu.dot_dimension_numbers<[1], [0], [0], [1], [0, 0, 1, 1], [], []>} : vector<16x64xf32>, vector<64x64xf32>, vector<16x64xf32> -> vector<16x64xf32>
    %54 = arith.addf %48, %53 : vector<16x64xf32>
    %c0_63 = arith.constant 0 : index
    %c0_64 = arith.constant 0 : index
    %55 = vector.load %arg6[%c0_63, %c0_64] : memref<1x64xf32, #tpu.memory_space<vmem>>, vector<1x64xf32>
    %56 = vector.broadcast %55 : vector<1x64xf32> to vector<16x64xf32>
    %57 = arith.addf %54, %56 : vector<16x64xf32>
    %cst_65 = arith.constant 0.000000e+00 : f32
    %58 = vector.broadcast %cst_65 : f32 to vector<16x64xf32>
    %59 = arith.maximumf %57, %58 : vector<16x64xf32>
    %c0_66 = arith.constant 0 : index
    %c0_67 = arith.constant 0 : index
    %c0_68 = arith.constant 0 : index
    %c0_69 = arith.constant 0 : index
    %60 = vector.load %arg7[%c0_66, %c0_67, %c0_68, %c0_69] : memref<1x1x16x64xf32, #tpu.memory_space<vmem>>, vector<1x1x16x64xf32>
    %61 = vector.shape_cast %60 : vector<1x1x16x64xf32> to vector<16x64xf32>
    %62 = vector.shape_cast %59 : vector<16x64xf32> to vector<1x1x16x64xf32>
    tpu.vector_store %arg7[%c0_66, %c0_67, %c0_68, %c0_69], %62 {strides = array<i32>} : memref<1x1x16x64xf32, #tpu.memory_space<vmem>>, vector<1x1x16x64xf32>,
    return
  }
  func.func @transform_0(%arg0: i32, %arg1: i32) -> (i32, i32, i32, i32) {
    %c0_i32 = arith.constant 0 : i32
    %0 = arith.addi %arg1, %c0_i32 : i32
    %c0_i32_0 = arith.constant 0 : i32
    %c0_i32_1 = arith.constant 0 : i32
    %c0_i32_2 = arith.constant 0 : i32
    return %arg0, %0, %c0_i32_0, %c0_i32_1 : i32, i32, i32, i32
  }
  func.func @transform_1(%arg0: i32, %arg1: i32) -> (i32, i32, i32, i32) {
    %c1_i32 = arith.constant 1 : i32
    %0 = arith.addi %arg1, %c1_i32 : i32
    %c0_i32 = arith.constant 0 : i32
    %c0_i32_0 = arith.constant 0 : i32
    %c0_i32_1 = arith.constant 0 : i32
    return %arg0, %0, %c0_i32, %c0_i32_0 : i32, i32, i32, i32
  }
  func.func @transform_2(%arg0: i32, %arg1: i32) -> (i32, i32, i32, i32) {
    %c2_i32 = arith.constant 2 : i32
    %0 = arith.addi %arg1, %c2_i32 : i32
    %c0_i32 = arith.constant 0 : i32
    %c0_i32_0 = arith.constant 0 : i32
    %c0_i32_1 = arith.constant 0 : i32
    return %arg0, %0, %c0_i32, %c0_i32_0 : i32, i32, i32, i32
  }
  func.func @transform_3(%arg0: i32, %arg1: i32) -> (i32, i32, i32) {
    %c0_i32 = arith.constant 0 : i32
    %c0_i32_0 = arith.constant 0 : i32
    %c0_i32_1 = arith.constant 0 : i32
    %c0_i32_2 = arith.constant 0 : i32
    return %c0_i32, %c0_i32_0, %c0_i32_1 : i32, i32, i32
  }
  func.func @transform_4(%arg0: i32, %arg1: i32) -> (i32, i32) {
    %c0_i32 = arith.constant 0 : i32
    %c0_i32_0 = arith.constant 0 : i32
    %c0_i32_1 = arith.constant 0 : i32
    return %c0_i32, %c0_i32_0 : i32, i32
  }
  func.func @transform_5(%arg0: i32, %arg1: i32) -> (i32, i32, i32, i32) {
    %c0_i32 = arith.constant 0 : i32
    %c0_i32_0 = arith.constant 0 : i32
    %c0_i32_1 = arith.constant 0 : i32
    return %arg0, %arg1, %c0_i32, %c0_i32_0 : i32, i32, i32, i32
  }
}

module attributes {stable_mosaic.version = 11 : i64} {
  func.func @_conv3x3_kernel(%arg0: i32, %arg1: i32, %arg2: memref<1x1x18x64xf32, #tpu.memory_space<vmem>>, %arg3: memref<1x1x18x64xf32, #tpu.memory_space<vmem>>, %arg4: memref<1x1x18x64xf32, #tpu.memory_space<vmem>>, %arg5: memref<9x64x3xf32, #tpu.memory_space<vmem>>, %arg6: memref<1x3xf32, #tpu.memory_space<vmem>>, %arg7: memref<1x1x16x3xf32, #tpu.memory_space<vmem>>) attributes {dimension_semantics = [#tpu.dimension_semantics<parallel>, #tpu.dimension_semantics<arbitrary>], iteration_bounds = array<i64: 2, 16>, scalar_prefetch = 0 : i64, scratch_operands = 0 : i64, tpu.core_type = #tpu.core_type<tc>, window_params = [{transform_indices = @transform_0, window_bounds = array<i64: 1, 1, 18, 64>}, {transform_indices = @transform_1, window_bounds = array<i64: 1, 1, 18, 64>}, {transform_indices = @transform_2, window_bounds = array<i64: 1, 1, 18, 64>}, {pipeline_mode = #tpu.pipeline_mode<synchronous>, transform_indices = @transform_3, window_bounds = array<i64: 9, 64, 3>}, {pipeline_mode = #tpu.pipeline_mode<synchronous>, transform_indices = @transform_4, window_bounds = array<i64: 1, 3>}, {transform_indices = @transform_5, window_bounds = array<i64: 1, 1, 16, 3>}]} {
    %cst = arith.constant 0.000000e+00 : f32
    %0 = vector.broadcast %cst : f32 to vector<16x3xf32>
    %c0 = arith.constant 0 : index
    %c0_0 = arith.constant 0 : index
    %c0_1 = arith.constant 0 : index
    %c0_2 = arith.constant 0 : index
    %1 = vector.load %arg2[%c0, %c0_0, %c0_1, %c0_2] : memref<1x1x18x64xf32, #tpu.memory_space<vmem>>, vector<1x1x16x64xf32>
    %2 = vector.shape_cast %1 : vector<1x1x16x64xf32> to vector<16x64xf32>
    %c0_3 = arith.constant 0 : index
    %c0_4 = arith.constant 0 : index
    %c0_5 = arith.constant 0 : index
    %3 = vector.load %arg5[%c0_3, %c0_4, %c0_5] : memref<9x64x3xf32, #tpu.memory_space<vmem>>, vector<1x64x3xf32>
    %4 = vector.shape_cast %3 : vector<1x64x3xf32> to vector<64x3xf32>
    %cst_6 = arith.constant dense<0.000000e+00> : vector<16x3xf32>
    %5 = tpu.matmul %2, %4, %cst_6 {dimension_numbers = #tpu.dot_dimension_numbers<[1], [0], [0], [1], [0, 0, 1, 1], [], []>} : vector<16x64xf32>, vector<64x3xf32>, vector<16x3xf32> -> vector<16x3xf32>
    %6 = arith.addf %0, %5 : vector<16x3xf32>
    %c0_7 = arith.constant 0 : index
    %c0_8 = arith.constant 0 : index
    %c1 = arith.constant 1 : index
    %c0_9 = arith.constant 0 : index
    %7 = vector.load %arg2[%c0_7, %c0_8, %c1, %c0_9] : memref<1x1x18x64xf32, #tpu.memory_space<vmem>>, vector<1x1x16x64xf32>
    %8 = vector.shape_cast %7 : vector<1x1x16x64xf32> to vector<16x64xf32>
    %c1_10 = arith.constant 1 : index
    %c0_11 = arith.constant 0 : index
    %c0_12 = arith.constant 0 : index
    %9 = vector.load %arg5[%c1_10, %c0_11, %c0_12] : memref<9x64x3xf32, #tpu.memory_space<vmem>>, vector<1x64x3xf32>
    %10 = vector.shape_cast %9 : vector<1x64x3xf32> to vector<64x3xf32>
    %cst_13 = arith.constant dense<0.000000e+00> : vector<16x3xf32>
    %11 = tpu.matmul %8, %10, %cst_13 {dimension_numbers = #tpu.dot_dimension_numbers<[1], [0], [0], [1], [0, 0, 1, 1], [], []>} : vector<16x64xf32>, vector<64x3xf32>, vector<16x3xf32> -> vector<16x3xf32>
    %12 = arith.addf %6, %11 : vector<16x3xf32>
    %c0_14 = arith.constant 0 : index
    %c0_15 = arith.constant 0 : index
    %c2 = arith.constant 2 : index
    %c0_16 = arith.constant 0 : index
    %13 = vector.load %arg2[%c0_14, %c0_15, %c2, %c0_16] : memref<1x1x18x64xf32, #tpu.memory_space<vmem>>, vector<1x1x16x64xf32>
    %14 = vector.shape_cast %13 : vector<1x1x16x64xf32> to vector<16x64xf32>
    %c2_17 = arith.constant 2 : index
    %c0_18 = arith.constant 0 : index
    %c0_19 = arith.constant 0 : index
    %15 = vector.load %arg5[%c2_17, %c0_18, %c0_19] : memref<9x64x3xf32, #tpu.memory_space<vmem>>, vector<1x64x3xf32>
    %16 = vector.shape_cast %15 : vector<1x64x3xf32> to vector<64x3xf32>
    %cst_20 = arith.constant dense<0.000000e+00> : vector<16x3xf32>
    %17 = tpu.matmul %14, %16, %cst_20 {dimension_numbers = #tpu.dot_dimension_numbers<[1], [0], [0], [1], [0, 0, 1, 1], [], []>} : vector<16x64xf32>, vector<64x3xf32>, vector<16x3xf32> -> vector<16x3xf32>
    %18 = arith.addf %12, %17 : vector<16x3xf32>
    %c0_21 = arith.constant 0 : index
    %c0_22 = arith.constant 0 : index
    %c0_23 = arith.constant 0 : index
    %c0_24 = arith.constant 0 : index
    %19 = vector.load %arg3[%c0_21, %c0_22, %c0_23, %c0_24] : memref<1x1x18x64xf32, #tpu.memory_space<vmem>>, vector<1x1x16x64xf32>
    %20 = vector.shape_cast %19 : vector<1x1x16x64xf32> to vector<16x64xf32>
    %c3 = arith.constant 3 : index
    %c0_25 = arith.constant 0 : index
    %c0_26 = arith.constant 0 : index
    %21 = vector.load %arg5[%c3, %c0_25, %c0_26] : memref<9x64x3xf32, #tpu.memory_space<vmem>>, vector<1x64x3xf32>
    %22 = vector.shape_cast %21 : vector<1x64x3xf32> to vector<64x3xf32>
    %cst_27 = arith.constant dense<0.000000e+00> : vector<16x3xf32>
    %23 = tpu.matmul %20, %22, %cst_27 {dimension_numbers = #tpu.dot_dimension_numbers<[1], [0], [0], [1], [0, 0, 1, 1], [], []>} : vector<16x64xf32>, vector<64x3xf32>, vector<16x3xf32> -> vector<16x3xf32>
    %24 = arith.addf %18, %23 : vector<16x3xf32>
    %c0_28 = arith.constant 0 : index
    %c0_29 = arith.constant 0 : index
    %c1_30 = arith.constant 1 : index
    %c0_31 = arith.constant 0 : index
    %25 = vector.load %arg3[%c0_28, %c0_29, %c1_30, %c0_31] : memref<1x1x18x64xf32, #tpu.memory_space<vmem>>, vector<1x1x16x64xf32>
    %26 = vector.shape_cast %25 : vector<1x1x16x64xf32> to vector<16x64xf32>
    %c4 = arith.constant 4 : index
    %c0_32 = arith.constant 0 : index
    %c0_33 = arith.constant 0 : index
    %27 = vector.load %arg5[%c4, %c0_32, %c0_33] : memref<9x64x3xf32, #tpu.memory_space<vmem>>, vector<1x64x3xf32>
    %28 = vector.shape_cast %27 : vector<1x64x3xf32> to vector<64x3xf32>
    %cst_34 = arith.constant dense<0.000000e+00> : vector<16x3xf32>
    %29 = tpu.matmul %26, %28, %cst_34 {dimension_numbers = #tpu.dot_dimension_numbers<[1], [0], [0], [1], [0, 0, 1, 1], [], []>} : vector<16x64xf32>, vector<64x3xf32>, vector<16x3xf32> -> vector<16x3xf32>
    %30 = arith.addf %24, %29 : vector<16x3xf32>
    %c0_35 = arith.constant 0 : index
    %c0_36 = arith.constant 0 : index
    %c2_37 = arith.constant 2 : index
    %c0_38 = arith.constant 0 : index
    %31 = vector.load %arg3[%c0_35, %c0_36, %c2_37, %c0_38] : memref<1x1x18x64xf32, #tpu.memory_space<vmem>>, vector<1x1x16x64xf32>
    %32 = vector.shape_cast %31 : vector<1x1x16x64xf32> to vector<16x64xf32>
    %c5 = arith.constant 5 : index
    %c0_39 = arith.constant 0 : index
    %c0_40 = arith.constant 0 : index
    %33 = vector.load %arg5[%c5, %c0_39, %c0_40] : memref<9x64x3xf32, #tpu.memory_space<vmem>>, vector<1x64x3xf32>
    %34 = vector.shape_cast %33 : vector<1x64x3xf32> to vector<64x3xf32>
    %cst_41 = arith.constant dense<0.000000e+00> : vector<16x3xf32>
    %35 = tpu.matmul %32, %34, %cst_41 {dimension_numbers = #tpu.dot_dimension_numbers<[1], [0], [0], [1], [0, 0, 1, 1], [], []>} : vector<16x64xf32>, vector<64x3xf32>, vector<16x3xf32> -> vector<16x3xf32>
    %36 = arith.addf %30, %35 : vector<16x3xf32>
    %c0_42 = arith.constant 0 : index
    %c0_43 = arith.constant 0 : index
    %c0_44 = arith.constant 0 : index
    %c0_45 = arith.constant 0 : index
    %37 = vector.load %arg4[%c0_42, %c0_43, %c0_44, %c0_45] : memref<1x1x18x64xf32, #tpu.memory_space<vmem>>, vector<1x1x16x64xf32>
    %38 = vector.shape_cast %37 : vector<1x1x16x64xf32> to vector<16x64xf32>
    %c6 = arith.constant 6 : index
    %c0_46 = arith.constant 0 : index
    %c0_47 = arith.constant 0 : index
    %39 = vector.load %arg5[%c6, %c0_46, %c0_47] : memref<9x64x3xf32, #tpu.memory_space<vmem>>, vector<1x64x3xf32>
    %40 = vector.shape_cast %39 : vector<1x64x3xf32> to vector<64x3xf32>
    %cst_48 = arith.constant dense<0.000000e+00> : vector<16x3xf32>
    %41 = tpu.matmul %38, %40, %cst_48 {dimension_numbers = #tpu.dot_dimension_numbers<[1], [0], [0], [1], [0, 0, 1, 1], [], []>} : vector<16x64xf32>, vector<64x3xf32>, vector<16x3xf32> -> vector<16x3xf32>
    %42 = arith.addf %36, %41 : vector<16x3xf32>
    %c0_49 = arith.constant 0 : index
    %c0_50 = arith.constant 0 : index
    %c1_51 = arith.constant 1 : index
    %c0_52 = arith.constant 0 : index
    %43 = vector.load %arg4[%c0_49, %c0_50, %c1_51, %c0_52] : memref<1x1x18x64xf32, #tpu.memory_space<vmem>>, vector<1x1x16x64xf32>
    %44 = vector.shape_cast %43 : vector<1x1x16x64xf32> to vector<16x64xf32>
    %c7 = arith.constant 7 : index
    %c0_53 = arith.constant 0 : index
    %c0_54 = arith.constant 0 : index
    %45 = vector.load %arg5[%c7, %c0_53, %c0_54] : memref<9x64x3xf32, #tpu.memory_space<vmem>>, vector<1x64x3xf32>
    %46 = vector.shape_cast %45 : vector<1x64x3xf32> to vector<64x3xf32>
    %cst_55 = arith.constant dense<0.000000e+00> : vector<16x3xf32>
    %47 = tpu.matmul %44, %46, %cst_55 {dimension_numbers = #tpu.dot_dimension_numbers<[1], [0], [0], [1], [0, 0, 1, 1], [], []>} : vector<16x64xf32>, vector<64x3xf32>, vector<16x3xf32> -> vector<16x3xf32>
    %48 = arith.addf %42, %47 : vector<16x3xf32>
    %c0_56 = arith.constant 0 : index
    %c0_57 = arith.constant 0 : index
    %c2_58 = arith.constant 2 : index
    %c0_59 = arith.constant 0 : index
    %49 = vector.load %arg4[%c0_56, %c0_57, %c2_58, %c0_59] : memref<1x1x18x64xf32, #tpu.memory_space<vmem>>, vector<1x1x16x64xf32>
    %50 = vector.shape_cast %49 : vector<1x1x16x64xf32> to vector<16x64xf32>
    %c8 = arith.constant 8 : index
    %c0_60 = arith.constant 0 : index
    %c0_61 = arith.constant 0 : index
    %51 = vector.load %arg5[%c8, %c0_60, %c0_61] : memref<9x64x3xf32, #tpu.memory_space<vmem>>, vector<1x64x3xf32>
    %52 = vector.shape_cast %51 : vector<1x64x3xf32> to vector<64x3xf32>
    %cst_62 = arith.constant dense<0.000000e+00> : vector<16x3xf32>
    %53 = tpu.matmul %50, %52, %cst_62 {dimension_numbers = #tpu.dot_dimension_numbers<[1], [0], [0], [1], [0, 0, 1, 1], [], []>} : vector<16x64xf32>, vector<64x3xf32>, vector<16x3xf32> -> vector<16x3xf32>
    %54 = arith.addf %48, %53 : vector<16x3xf32>
    %c0_63 = arith.constant 0 : index
    %c0_64 = arith.constant 0 : index
    %55 = vector.load %arg6[%c0_63, %c0_64] : memref<1x3xf32, #tpu.memory_space<vmem>>, vector<1x3xf32>
    %56 = vector.broadcast %55 : vector<1x3xf32> to vector<16x3xf32>
    %57 = arith.addf %54, %56 : vector<16x3xf32>
    %58 = math.tanh %57 : vector<16x3xf32>
    %c0_65 = arith.constant 0 : index
    %c0_66 = arith.constant 0 : index
    %c0_67 = arith.constant 0 : index
    %c0_68 = arith.constant 0 : index
    %59 = vector.load %arg7[%c0_65, %c0_66, %c0_67, %c0_68] : memref<1x1x16x3xf32, #tpu.memory_space<vmem>>, vector<1x1x16x3xf32>
    %60 = vector.shape_cast %59 : vector<1x1x16x3xf32> to vector<16x3xf32>
    %61 = vector.shape_cast %58 : vector<16x3xf32> to vector<1x1x16x3xf32>
    tpu.vector_store %arg7[%c0_65, %c0_66, %c0_67, %c0_68], %61 {strides = array<i32>} : memref<1x1x16x3xf32, #tpu.memory_space<vmem>>, vector<1x1x16x3xf32>,
    return
  }
  func.func @transform_0(%arg0: i32, %arg1: i32) -> (i32, i32, i32, i32) {
    %c0_i32 = arith.constant 0 : i32
    %0 = arith.addi %arg1, %c0_i32 : i32
    %c0_i32_0 = arith.constant 0 : i32
    %c0_i32_1 = arith.constant 0 : i32
    %c0_i32_2 = arith.constant 0 : i32
    return %arg0, %0, %c0_i32_0, %c0_i32_1 : i32, i32, i32, i32
  }
  func.func @transform_1(%arg0: i32, %arg1: i32) -> (i32, i32, i32, i32) {
    %c1_i32 = arith.constant 1 : i32
    %0 = arith.addi %arg1, %c1_i32 : i32
    %c0_i32 = arith.constant 0 : i32
    %c0_i32_0 = arith.constant 0 : i32
    %c0_i32_1 = arith.constant 0 : i32
    return %arg0, %0, %c0_i32, %c0_i32_0 : i32, i32, i32, i32
  }
  func.func @transform_2(%arg0: i32, %arg1: i32) -> (i32, i32, i32, i32) {
    %c2_i32 = arith.constant 2 : i32
    %0 = arith.addi %arg1, %c2_i32 : i32
    %c0_i32 = arith.constant 0 : i32
    %c0_i32_0 = arith.constant 0 : i32
    %c0_i32_1 = arith.constant 0 : i32
    return %arg0, %0, %c0_i32, %c0_i32_0 : i32, i32, i32, i32
  }
  func.func @transform_3(%arg0: i32, %arg1: i32) -> (i32, i32, i32) {
    %c0_i32 = arith.constant 0 : i32
    %c0_i32_0 = arith.constant 0 : i32
    %c0_i32_1 = arith.constant 0 : i32
    %c0_i32_2 = arith.constant 0 : i32
    return %c0_i32, %c0_i32_0, %c0_i32_1 : i32, i32, i32
  }
  func.func @transform_4(%arg0: i32, %arg1: i32) -> (i32, i32) {
    %c0_i32 = arith.constant 0 : i32
    %c0_i32_0 = arith.constant 0 : i32
    %c0_i32_1 = arith.constant 0 : i32
    return %c0_i32, %c0_i32_0 : i32, i32
  }
  func.func @transform_5(%arg0: i32, %arg1: i32) -> (i32, i32, i32, i32) {
    %c0_i32 = arith.constant 0 : i32
    %c0_i32_0 = arith.constant 0 : i32
    %c0_i32_1 = arith.constant 0 : i32
    return %arg0, %arg1, %c0_i32, %c0_i32_0 : i32, i32, i32, i32
  }
}

</mosaic_0001>

<bundles_post_ra>
// kernel: tile.8
= control target key start
LH: loop header
LB: loop body
LE: loop exit
PB: predicated region body
PF: predicated region fallthrough
CT: control target
= control target key end

     0   :  { %s22_s0 = inlined_call_operand.vmem [shape: f32[64], index: 0, kind: input, shape index: {}]   ;;  %s23_s1 = inlined_call_operand.vmem [shape: f32[2,64], index: 1, kind: output, shape index: {}]  }
   0x1   :  { %v4_v0 = vld [vmem:[%s22_s0] ss:$0 sm:$0xff] }
   0x2   :  { %5 = vst [vmem:[%s23_s1] sm:$0x3] %v4_v0 }

// kernel: tile.9
= control target key start
LH: loop header
LB: loop body
LE: loop exit
PB: predicated region body
PF: predicated region fallthrough
CT: control target
= control target key end

     0   :  { %vm7_vm0 = vcmask 523264   ;;  %vm13_vm1 = vcmask 1048064   ;;  %s39_s0 = inlined_call_operand.vmem [shape: f32[2,64], index: 0, kind: input, shape index: {}]   ;;  %s40_s1 = inlined_call_operand.vmem [shape: f32[1,128], index: 1, kind: output, shape index: {}]  }
   0x1   :  { %v4_v0 = vld [vmem:[%s39_s0] sm:$0x3]  ;;  %s22_s0 = smov 64  }
   0x2   :  { %5 = vst [vmem:[#allocation1] sm:$0x3] %v4_v0 }
   0x9   :  { %v10_v1 = vld [vmem:[#allocation1 + $0x1] sm:$0x1]   ;;  %v6_v2 = vld [vmem:[#allocation1] sm:$0x1]  }
   0xa   :  { %11 = vrot.lane.b32.xlu0 %v10_v1, %s22_s0  ;;  %8 = vst.msk [vmem:[#allocation0] sm:$0x1] %vm7_vm0, %v6_v2  }
  0x7c   :  { %v12_v3 = vpop.permute.xlu0 %11  }
  0x7d   :  { %14 = vst.msk [vmem:[#allocation0] sm:$0x1] %vm13_vm1, %v12_v3  }
  0x84   :  { %v18_v4 = vld [vmem:[#allocation0] sm:$0x1] }
  0x85   :  { %20 = vst [vmem:[%s40_s1] sm:$0x1] %v18_v4 }

// kernel: fixed_deblur_generator.12
= control target key start
LH: loop header
LB: loop body
LE: loop exit
PB: predicated region body
PF: predicated region fallthrough
CT: control target
= control target key end

     0   :  { %s1515_s18 = smov 0   ;;  %s1517_s19 = smov 0   ;;  %s1667_s0 = inlined_call_operand.vmem [shape: f32[2,18,18,8], index: 0, kind: input, shape index: {}, may-alias: {0,1,2}]   ;;  %s1668_s1 = inlined_call_operand.vmem [shape: f32[2,18,18,8], index: 1, kind: input, shape index: {}, may-alias: {0,1,2}]   ;;  %s1669_s2 = inlined_call_operand.vmem [shape: f32[2,18,18,8], index: 2, kind: input, shape index: {}, may-alias: {0,1,2}]   ;;  %s1670_s3 = inlined_call_operand.vmem [shape: f32[9,8,64], index: 3, kind: input, shape index: {}]   ;;  %s1671_s4 = inlined_call_operand.vmem [shape: f32[1,64], index: 4, kind: input, shape index: {}]   ;;  %s1672_s5 = inlined_call_operand.vmem [shape: f32[2,16,16,64], index: 5, kind: output, shape index: {}]  }
   0x1   :  { %s1519_s20 = smov 0   ;;  %s1521_s21 = smov 0  }
   0x2   :  { %s1523_s22 = smov 0  }
   0x3 LB: > { %s24_s23 = sadd.s32 1, %s1475_s20  ;;  %s27_s24 = sadd.s32 1, %s1479_s21  ;;  %s1483_s22 = sphi %s1523_s22, %s15_s22   ;;  %s1479_s21 = sphi %s1521_s21, %s1677_s21   ;;  %s1475_s20 = sphi %s1519_s20, %s1676_s20   ;;  %s1471_s19 = sphi %s1517_s19, %s1675_s19   ;;  %s1467_s18 = sphi %s1515_s18, %s1674_s18  }
   0x4   : > { %p25_p0 = scmp.ge.s32.totalorder %s24_s23, 16  ;;  %p1277_p1 = scmp.ge.s32.totalorder %s1483_s22, 1 }
   0x5   : > { %p247_p2 = scmp.lt.s32.totalorder %s1483_s22, 33 }
   0x6   : > { %s1679_s23 = smov (%p25_p0, %s24_s23), 0  ;;  %s1681_s24 = smov (!%p25_p0, %s27_s24), %s1479_s21 }
   0x7   : > { %p248_p3 = pnand %p1277_p1, %p247_p2  ;;  %p29_p4 = scmp.ge.s32.totalorder %s1681_s24, 2 }
   0x8   : > { %v1284_v0 = vld [vmem:[%s1670_s3 + $0x8] sm:$0xff] (!%p248_p3)  ;;  %v1295_v1 = vld [vmem:[%s1670_s3 + $0x20] sm:$0xff] (!%p248_p3)  ;;  %p303_p5 = scmp.lt.s32.totalorder (!%p248_p3), %s1471_s19, 1  ;;  %p305_p6 = scmp.lt.s32.totalorder (!%p248_p3), %s1467_s18, 17  ;;  %vm350_vm0 = vcmask (!%p248_p3), 64512   ;;  %v1289_v7 = vld [vmem:[%s1670_s3 + $0x10] sm:$0xff] (!%p248_p3) }
   0x9   : > { %s1683_s24 = smov (%p29_p4, %s1681_s24), 0  ;;  %251 = sbr.rel (%p248_p3) target bundleno = 281 (0x119), region = 40 }
   0xa   : > { %v1298_v2 = vld [vmem:[%s1670_s3 + $0x28] sm:$0xff] (!%p248_p3)  ;;  %1340 = vmatprep.subr.mxu1 (!%p248_p3), %v1284_v0  ;;  %1360 = vmatprep.subr.mxu0 (!%p248_p3), %v1295_v1  ;;  %s312_s6 = sadd.s32 (!%p248_p3), 1, %s1467_s18  ;;  %v345_v3 = vld [vmem:[%s1670_s3] sm:$0xff] (!%p248_p3)  ;;  %s323_s12 = sadd.s32 (!%p248_p3), 2, %s1467_s18  ;;  %v1301_v11 = vld [vmem:[%s1670_s3 + $0x30] sm:$0xff] (!%p248_p3)  ;;  %vm1133_vm1 = vcmask (!%p248_p3), 523264  }
   0xb   : > { %1341 = vmatpush3.msra.mxu1 (!%p248_p3), %v1284_v0  ;;  %1361 = vmatpush3.msra.mxu0 (!%p248_p3), %v1295_v1  ;;  %p315_p7 = scmp.lt.s32.totalorder (!%p248_p3), %s312_s6, 17  ;;  %p1574_p8 = scmp.lt.s32.totalorder (!%p248_p3), %s323_s12, 17  ;;  %v1292_v14 = vld [vmem:[%s1670_s3 + $0x18] sm:$0xff] (!%p248_p3)  ;;  %v1307_v22 = vld [vmem:[%s1670_s3 + $0x40] sm:$0xff] (!%p248_p3) }
   0xc   : > { %1365 = vmatprep.subr.mxu0 (!%p248_p3), %v1298_v2  ;;  %1345 = vmatprep.subr.mxu1 (!%p248_p3), %v345_v3  ;;  %v1304_v17 = vld [vmem:[%s1670_s3 + $0x38] sm:$0xff] (!%p248_p3)  ;;  %p336_p9 = scmp.lt.s32.totalorder (!%p248_p3), %s1467_s18, 15  ;;  %v1310_v30 = vld [vmem:[%s1671_s4] ss:$0 sm:$0xff] (!%p248_p3) }
  0x10   : > { %s1685_s19 = smov (!%p303_p5, %s1471_s19), 1  ;;  %s1687_s6 = smov (!%p315_p7, %s312_s6), 17 }
  0x11   : > { %s306_s9 = scalar_select %p305_p6, %s1467_s18, 17 }
  0x12   : > { %s1565_s10 = smul.u32 54, %s1685_s19  ;;  %s1689_s12 = smov (!%p1574_p8, %s323_s12), 17 }
  0x13   : > { %s1401_s11 = smul.u32 3, %s306_s9  ;;  %s1691_s18 = smov (!%p336_p9, %s1467_s18), 15 }
  0x14   : > { %s1403_s15 = smul.u32 3, %s1687_s6  ;;  %s1282_s6 = sshll.u32 %s1685_s19, 5 }
  0x15   : > { %s309_s13 = sadd.s32 %s1565_s10, %s1401_s11 }
  0x16   : > { %s1278_s14 = sshll.u32 %s309_s13, 3  ;;  %s319_s27 = sadd.s32 %s1403_s15, %s1565_s10 }
  0x17   : > { %s1572_s25 = scalar_lea.vmem %s1667_s0, %s1278_s14  ;;  %s1279_s28 = sshll.u32 %s319_s27, 3 }
  0x18   : > { %v346_v4 = vld [vmem:[%s1572_s25 + $0x1] sm:$0xff]  ;;  %v347_v5 = vld [vmem:[%s1572_s25 + $0x9] sm:$0xff]  ;;  %s1590_s8 = scalar_lea.vmem %s1668_s1, %s1279_s28  ;;  %s1404_s13 = smul.u32 3, %s1689_s12 }
  0x19   : > { %v343_v6 = vld [vmem:[%s1572_s25] sm:$0xff]  ;;  %1342 = vmatprep.mubr.msk.f32.mxu1 %vm350_vm0, %v346_v4  ;;  %v688_v9 = vld [vmem:[%s1590_s8 + $0x9] sm:$0xff] }
  0x1a   : > { %1343 = vmatmul.mubr.msk.f32.vlgmr.msra.gmra.mrb[0].mxu1 %vm350_vm0, %v347_v5  ;;  %v687_v8 = vld [vmem:[%s1590_s8 + $0x1] sm:$0xff]  ;;  %s330_s14 = sadd.s32 %s1404_s13, %s1565_s10  ;;  %v775_v15 = vld [vmem:[%s1590_s8 + $0xa] sm:$0xff] }
  0x1b   : > { %1346 = vmatpush3.msra.mxu1 %v345_v3  ;;  %1347 = vmatprep.mubr.msk.f32.mxu1 %vm350_vm0, %v343_v6  ;;  %v774_v10 = vld [vmem:[%s1590_s8 + $0x2] sm:$0xff]  ;;  %s1280_s15 = sshll.u32 %s330_s14, 3  ;;  %v514_v18 = vld [vmem:[%s1572_s25 + $0xa] sm:$0xff] }
  0x1c   : > { %1362 = vmatprep.mubr.msk.f32.mxu0 %vm350_vm0, %v687_v8  ;;  %1350 = vmatprep.subr.mxu1 %v1289_v7  ;;  %v344_v12 = vld [vmem:[%s1572_s25 + $0x8] sm:$0xff]  ;;  %s1610_s26 = scalar_lea.vmem %s1669_s2, %s1280_s15  ;;  %v600_v19 = vld [vmem:[%s1590_s8] sm:$0xff] }
  0x1d   : > { %1363 = vmatmul.mubr.msk.f32.vlgmr.msra.gmra.mrb[0].mxu0 %vm350_vm0, %v688_v9  ;;  %v513_v13 = vld [vmem:[%s1572_s25 + $0x2] sm:$0xff]  ;;  %v1036_v26 = vld [vmem:[%s1610_s26 + $0xa] sm:$0xff]  ;;  %s1281_s25 = sshll.u32 %s1691_s18, 1 }
  0x1e   : > { %1366 = vmatpush3.msra.mxu0 %v1298_v2  ;;  %1367 = vmatprep.mubr.msk.f32.mxu0 %vm350_vm0, %v774_v10  ;;  %v861_v16 = vld [vmem:[%s1610_s26] sm:$0xff]  ;;  %v862_v20 = vld [vmem:[%s1610_s26 + $0x8] sm:$0xff]  ;;  %s340_s7 = sadd.s32 %s1282_s6, %s1281_s25 }
  0x1f   : > { %1370 = vmatprep.subr.mxu0 %v1301_v11  ;;  %v948_v21 = vld [vmem:[%s1610_s26 + $0x1] sm:$0xff]  ;;  %v949_v24 = vld [vmem:[%s1610_s26 + $0x9] sm:$0xff]  ;;  %s1283_s11 = sshll.u32 %s340_s7, 3 }
  0x20   : > { %v601_v23 = vld [vmem:[%s1590_s8 + $0x8] sm:$0xff]  ;;  %s342_s15 = scalar_lea.vmem %s1672_s5, %s1283_s11 }
  0x21   : > { %v1035_v25 = vld [vmem:[%s1610_s26 + $0x2] sm:$0xff] }
  0x22   : > { %1348 = vmatmul.mubr.msk.f32.vlgmr.msra.gmra.mrb[0].mxu1 %vm350_vm0, %v344_v12 }
  0x23   : > { %1351 = vmatpush3.msra.mxu1 %v1289_v7  ;;  %1352 = vmatprep.mubr.msk.f32.mxu1 %vm350_vm0, %v513_v13 }
  0x24   : > { %1355 = vmatprep.subr.mxu1 %v1292_v14 }
  0x25   : > { %1368 = vmatmul.mubr.msk.f32.vlgmr.msra.gmra.mrb[0].mxu0 %vm350_vm0, %v775_v15 }
  0x26   : > { %1371 = vmatpush3.msra.mxu0 %v1301_v11  ;;  %1372 = vmatprep.mubr.msk.f32.mxu0 %vm350_vm0, %v861_v16 }
  0x27   : > { %1375 = vmatprep.subr.mxu0 %v1304_v17 }
  0x2a   : > { %1353 = vmatmul.mubr.msk.f32.vlgmr.msra.gmra.mrb[0].mxu1 %vm350_vm0, %v514_v18 }
  0x2b   : > { %1356 = vmatpush3.msra.mxu1 %v1292_v14  ;;  %1357 = vmatprep.mubr.msk.f32.mxu1 %vm350_vm0, %v600_v19 }
  0x2d   : > { %1373 = vmatmul.mubr.msk.f32.vlgmr.msra.gmra.mrb[0].mxu0 %vm350_vm0, %v862_v20 }
  0x2e   : > { %1376 = vmatpush3.msra.mxu0 %v1304_v17  ;;  %1377 = vmatprep.mubr.msk.f32.mxu0 %vm350_vm0, %v948_v21 }
  0x2f   : > { %1380 = vmatprep.subr.mxu0 %v1307_v22 }
  0x32   : > { %1358 = vmatmul.mubr.msk.f32.vlgmr.msra.gmra.mrb[0].mxu1 %vm350_vm0, %v601_v23 }
  0x35   : > { %1378 = vmatmul.mubr.msk.f32.vlgmr.msra.gmra.mrb[0].mxu0 %vm350_vm0, %v949_v24 }
  0x36   : > { %1381 = vmatpush3.msra.mxu0 %v1307_v22  ;;  %1382 = vmatprep.mubr.msk.f32.mxu0 %vm350_vm0, %v1035_v25 }
  0x3d   : > { %1383 = vmatmul.mubr.msk.f32.vlgmr.msra.gmra.mrb[0].mxu0 %vm350_vm0, %v1036_v26 }
 0x105   : > { %v1359_v27 = vpop.f32.mrb[0].mxu1 }
 0x106   : > { %v676_v28 = vpop.f32.mrb[1].mxu1 }
 0x110   : > { %v1384_v29 = vpop.f32.mrb[0].mxu0 }
 0x111   : > { %v1385_v31 = vadd.f32 %v1384_v29, %v1359_v27  ;;  %v1111_v32 = vpop.f32.mrb[1].mxu0 }
 0x112   : > { %v1386_v33 = vadd.f32 %v1111_v32, %v676_v28 }
 0x113   : > { %v1130_v34 = vadd.f32 %v1385_v31, %v1310_v30 }
 0x114   : > { %v1129_v35 = vadd.f32 %v1386_v33, %v1310_v30 }
 0x115   : > { %v1132_v36 = vmax.f32 %v1130_v34, 0.0 }
 0x116   : > { %v1131_v37 = vmax.f32 %v1129_v35, 0.0 }
 0x117   : > { %1135 = vst.msk [vmem:[%s342_s15 + $0x8] sm:$0xff] %vm1133_vm1, %v1132_v36 }
 0x118   : > { %1134 = vst.msk [vmem:[%s342_s15] sm:$0xff] %vm1133_vm1, %v1131_v37 }
 0x119 PF: > { %s15_s22 = sadd.s32 1, %s1483_s22   ;;  %s1674_s18 = smov %s1475_s20 }
 0x11a   : > { %p12_p10 = scmp.ge.s32.totalorder %s15_s22, 34   ;;  %s1675_s19 = smov %s1479_s21 }
 0x11b   : > { %s1676_s20 = smov %s1679_s23  ;;  %s1677_s21 = smov %s1683_s24 }
 0x11c   :  { %14 = sbr.rel (!%p12_p10) target bundleno = 3 (0x3), region = 84 }

// kernel: fixed_deblur_generator.13
= control target key start
LH: loop header
LB: loop body
LE: loop exit
PB: predicated region body
PF: predicated region fallthrough
CT: control target
= control target key end

     0   :  { %s806_s12 = smov 0   ;;  %s999_s0 = inlined_call_operand.vmem [shape: f32[256,128], index: 0, kind: input, shape index: {}]   ;;  %s1000_s1 = inlined_call_operand.vmem [shape: f32[128,128], index: 1, kind: input, shape index: {}]   ;;  %s1001_s2 = inlined_call_operand.vmem [shape: f32[1,128], index: 2, kind: input, shape index: {}]   ;;  %s1002_s3 = inlined_call_operand.vmem [shape: f32[256,128], index: 3, kind: output, shape index: {}]  }
   0x1 LB: > { %s542_s13 = sadd.s32 4294967295, %s784_s12   ;;  %p546_p0 = scmp.ge.s32.totalorder %s784_s12, 1  ;;  %s784_s12 = sphi %s806_s12, %s13_s12  }
   0x2   : > { %p138_p1 = scmp.lt.s32.totalorder %s784_s12, 3 }
   0x4   : > { %p139_p2 = pnand %p546_p0, %p138_p1 }
   0x5   : > { %v190_v0 = vld [vmem:[%s1000_s1] sm:$0xff] (!%p139_p2)  ;;  %v191_v1 = vld [vmem:[%s1000_s1 + $0x8] sm:$0xff] (!%p139_p2)  ;;  %v192_v2 = vld [vmem:[%s1000_s1 + $0x10] sm:$0xff] (!%p139_p2)  ;;  %s547_s20 = sshll.u32 (!%p139_p2), %s542_s13, 4 }
   0x6   : > { %142 = sbr.rel (%p139_p2) target bundleno = 311 (0x137), region = 32  ;;  %v658_v3 = vpack.c.bf16 (!%p139_p2), %v191_v1, %v190_v0  ;;  %v193_v4 = vld [vmem:[%s1000_s1 + $0x18] sm:$0xff] (!%p139_p2)  ;;  %p163_p3 = scmp.lt.s32.totalorder (!%p139_p2), %s547_s20, 31  ;;  %v194_v6 = vld [vmem:[%s1000_s1 + $0x20] sm:$0xff] (!%p139_p2)  ;;  %v195_v7 = vld [vmem:[%s1000_s1 + $0x28] sm:$0xff] (!%p139_p2) }
   0x7   : > { %v662_v5 = vpack.c.bf16 (!%p139_p2), %v193_v4, %v192_v2  ;;  %v666_v8 = vpack.c.bf16 (!%p139_p2), %v195_v7, %v194_v6  ;;  %v196_v9 = vld [vmem:[%s1000_s1 + $0x30] sm:$0xff] (!%p139_p2)  ;;  %v197_v10 = vld [vmem:[%s1000_s1 + $0x38] sm:$0xff] (!%p139_p2)  ;;  %v198_v14 = vld [vmem:[%s1000_s1 + $0x40] sm:$0xff] (!%p139_p2) }
   0x8   : > { %659 = vmatprep.subr.bf16.mxu0 (!%p139_p2), %v658_v3  ;;  %690 = vmatprep.subr.bf16.mxu1 (!%p139_p2), %v658_v3  ;;  %v670_v13 = vpack.c.bf16 (!%p139_p2), %v197_v10, %v196_v9  ;;  %v199_v15 = vld [vmem:[%s1000_s1 + $0x48] sm:$0xff] (!%p139_p2)  ;;  %v200_v17 = vld [vmem:[%s1000_s1 + $0x50] sm:$0xff] (!%p139_p2)  ;;  %v201_v18 = vld [vmem:[%s1000_s1 + $0x58] sm:$0xff] (!%p139_p2) }
   0x9   : > { %661 = vmatpush3.bf16.msra.mxu0 (!%p139_p2), %v658_v3  ;;  %698 = vmatpush3.bf16.msra.mxu1 (!%p139_p2), %v658_v3  ;;  %v674_v16 = vpack.c.bf16 (!%p139_p2), %v199_v15, %v198_v14  ;;  %v678_v19 = vpack.c.bf16 (!%p139_p2), %v201_v18, %v200_v17  ;;  %v202_v20 = vld [vmem:[%s1000_s1 + $0x60] sm:$0xff] (!%p139_p2)  ;;  %v203_v21 = vld [vmem:[%s1000_s1 + $0x68] sm:$0xff] (!%p139_p2)  ;;  %v204_v23 = vld [vmem:[%s1000_s1 + $0x70] sm:$0xff] (!%p139_p2) }
   0xa   : > { %663 = vmatprep.subr.bf16.mxu0 (!%p139_p2), %v662_v5  ;;  %691 = vmatprep.subr.bf16.mxu1 (!%p139_p2), %v662_v5  ;;  %v682_v22 = vpack.c.bf16 (!%p139_p2), %v203_v21, %v202_v20  ;;  %v205_v24 = vld [vmem:[%s1000_s1 + $0x78] sm:$0xff] (!%p139_p2)  ;;  %v939_v40 = vld [vmem:[%s1001_s2] ss:$0 sm:$0xff] (!%p139_p2) }
   0xb   : > { %v686_v25 = vpack.c.bf16 (!%p139_p2), %v205_v24, %v204_v23 }
   0xd   : > { %s1004_s20 = smov (!%p163_p3, %s547_s20), 31  ;;  %665 = vmatpush3.bf16.msra.mxu0 %v662_v5  ;;  %699 = vmatpush3.bf16.msra.mxu1 %v662_v5 }
   0xe   : > { %s548_s27 = sshll.u32 %s1004_s20, 3  ;;  %667 = vmatprep.subr.bf16.mxu0 %v666_v8  ;;  %692 = vmatprep.subr.bf16.mxu1 %v666_v8 }
   0xf   : > { %s846_s7 = scalar_lea.vmem %s999_s0, %s548_s27  ;;  %s962_s4 = scalar_lea.vmem %s1002_s3, %s548_s27 }
  0x10   : > { %v849_v11 = vld [vmem:[%s846_s7] sm:$0xff]  ;;  %v881_v26 = vld [vmem:[%s846_s7 + $0x8] sm:$0xff]  ;;  %v887_v28 = vld [vmem:[%s846_s7 + $0x10] sm:$0xff] }
  0x11   : > { %v852_v12 = vld [vmem:[%s846_s7 + $0x40] sm:$0xff]  ;;  %634 = vmatprep.mubr.f32.mxu0 %v849_v11  ;;  %669 = vmatpush3.bf16.msra.mxu0 %v666_v8  ;;  %v884_v27 = vld [vmem:[%s846_s7 + $0x48] sm:$0xff]  ;;  %v890_v29 = vld [vmem:[%s846_s7 + $0x50] sm:$0xff] }
  0x12   : > { %646 = vmatprep.mubr.f32.mxu1 %v852_v12  ;;  %700 = vmatpush3.bf16.msra.mxu1 %v666_v8  ;;  %v897_v30 = vld [vmem:[%s846_s7 + $0x18] sm:$0xff]  ;;  %v903_v32 = vld [vmem:[%s846_s7 + $0x20] sm:$0xff]  ;;  %v913_v34 = vld [vmem:[%s846_s7 + $0x28] sm:$0xff] }
  0x13   : > { %671 = vmatprep.subr.bf16.mxu0 %v670_v13  ;;  %693 = vmatprep.subr.bf16.mxu1 %v670_v13  ;;  %v900_v31 = vld [vmem:[%s846_s7 + $0x58] sm:$0xff]  ;;  %v906_v33 = vld [vmem:[%s846_s7 + $0x60] sm:$0xff]  ;;  %v916_v35 = vld [vmem:[%s846_s7 + $0x68] sm:$0xff] }
  0x14   : > { %v919_v36 = vld [vmem:[%s846_s7 + $0x30] sm:$0xff]  ;;  %v929_v38 = vld [vmem:[%s846_s7 + $0x38] sm:$0xff] }
  0x15   : > { %673 = vmatpush3.bf16.msra.mxu0 %v670_v13  ;;  %v922_v37 = vld [vmem:[%s846_s7 + $0x70] sm:$0xff]  ;;  %v932_v39 = vld [vmem:[%s846_s7 + $0x78] sm:$0xff] }
  0x16   : > { %701 = vmatpush3.bf16.msra.mxu1 %v670_v13  ;;  %675 = vmatprep.subr.bf16.mxu0 %v674_v16 }
  0x17   : > { %694 = vmatprep.subr.bf16.mxu1 %v674_v16 }
  0x19   : > { %677 = vmatpush3.bf16.msra.mxu0 %v674_v16 }
  0x1a   : > { %702 = vmatpush3.bf16.msra.mxu1 %v674_v16  ;;  %679 = vmatprep.subr.bf16.mxu0 %v678_v19 }
  0x1b   : > { %695 = vmatprep.subr.bf16.mxu1 %v678_v19 }
  0x1d   : > { %681 = vmatpush3.bf16.msra.mxu0 %v678_v19 }
  0x1e   : > { %703 = vmatpush3.bf16.msra.mxu1 %v678_v19  ;;  %683 = vmatprep.subr.bf16.mxu0 %v682_v22 }
  0x1f   : > { %696 = vmatprep.subr.bf16.mxu1 %v682_v22 }
  0x21   : > { %685 = vmatpush3.bf16.msra.mxu0 %v682_v22 }
  0x22   : > { %704 = vmatpush3.bf16.msra.mxu1 %v682_v22  ;;  %687 = vmatprep.subr.bf16.mxu0 %v686_v25 }
  0x23   : > { %697 = vmatprep.subr.bf16.mxu1 %v686_v25 }
  0x25   : > { %689 = vmatpush3.bf16.msra.mxu0 %v686_v25 }
  0x26   : > { %705 = vmatpush3.bf16.msra.mxu1 %v686_v25 }
  0x28   : > { %635 = vmatmul.mubr.f32.vlgmr.msra.gmra.mrb[0].mxu0 %v881_v26 }
  0x29   : > { %647 = vmatmul.mubr.f32.vlgmr.msra.gmra.mrb[0].mxu1 %v884_v27  ;;  %637 = vmatprep.mubr.f32.mxu0 %v887_v28 }
  0x2a   : > { %649 = vmatprep.mubr.f32.mxu1 %v890_v29 }
  0x2c   : > { %638 = vmatmul.mubr.f32.gmra.mrb[2].mxu0 %v897_v30 }
  0x2d   : > { %650 = vmatmul.mubr.f32.gmra.mrb[2].mxu1 %v900_v31  ;;  %640 = vmatprep.mubr.f32.mxu0 %v903_v32 }
  0x2e   : > { %652 = vmatprep.mubr.f32.mxu1 %v906_v33 }
  0x30   : > { %641 = vmatmul.mubr.f32.gmra.mrb[4].mxu0 %v913_v34 }
  0x31   : > { %653 = vmatmul.mubr.f32.gmra.mrb[4].mxu1 %v916_v35  ;;  %643 = vmatprep.mubr.f32.mxu0 %v919_v36 }
  0x32   : > { %655 = vmatprep.mubr.f32.mxu1 %v922_v37 }
  0x34   : > { %644 = vmatmul.mubr.f32.gmra.mrb[6].mxu0 %v929_v38 }
  0x35   : > { %656 = vmatmul.mubr.f32.gmra.mrb[6].mxu1 %v932_v39 }
  0xfb   : > { %v636_v41 = vpop.f32.mrb[0].mxu0 }
  0xfc   : > { %v648_v42 = vpop.f32.mrb[0].mxu1  ;;  %v285_v43 = vadd.f32 %v636_v41, %v939_v40  ;;  %v279_v45 = vpop.f32.mrb[1].mxu0 }
  0xfd   : > { %v325_v44 = vadd.f32 %v648_v42, %v939_v40  ;;  %v319_v46 = vpop.f32.mrb[1].mxu1  ;;  %v280_v47 = vadd.f32 %v939_v40, %v279_v45 }
  0xfe   : > { %v320_v48 = vadd.f32 %v939_v40, %v319_v46  ;;  %v553_v49 = vmul.f32 -1.442695, %v285_v43 }
  0xff   : > { %v561_v50 = vmul.f32 -1.442695, %v325_v44  ;;  %v552_v51 = vmul.f32 -1.442695, %v280_v47  ;;  %v639_v53 = vpop.f32.mrb[2].mxu0 }
 0x100   : > { %v560_v52 = vmul.f32 -1.442695, %v320_v48  ;;  %v651_v54 = vpop.f32.mrb[2].mxu1  ;;  %714 = vpow2.f32 %v553_v49  ;;  %v295_v55 = vadd.f32 %v639_v53, %v939_v40  ;;  %v289_v57 = vpop.f32.mrb[3].mxu0 }
 0x101   : > { %v335_v56 = vadd.f32 %v651_v54, %v939_v40  ;;  %v329_v58 = vpop.f32.mrb[3].mxu1  ;;  %716 = vpow2.f32 %v561_v50  ;;  %v290_v59 = vadd.f32 %v939_v40, %v289_v57 }
 0x102   : > { %v330_v60 = vadd.f32 %v939_v40, %v329_v58  ;;  %718 = vpow2.f32 %v552_v51  ;;  %v555_v61 = vmul.f32 -1.442695, %v295_v55 }
 0x103   : > { %v563_v62 = vmul.f32 -1.442695, %v335_v56  ;;  %720 = vpow2.f32 %v560_v52  ;;  %v554_v63 = vmul.f32 -1.442695, %v290_v59  ;;  %v642_v1 = vpop.f32.mrb[4].mxu0 }
 0x104   : > { %v562_v0 = vmul.f32 -1.442695, %v330_v60  ;;  %v654_v2 = vpop.f32.mrb[4].mxu1  ;;  %722 = vpow2.f32 %v555_v61  ;;  %v305_v3 = vadd.f32 %v642_v1, %v939_v40  ;;  %v299_v5 = vpop.f32.mrb[5].mxu0 }
 0x105   : > { %v345_v4 = vadd.f32 %v654_v2, %v939_v40  ;;  %v339_v6 = vpop.f32.mrb[5].mxu1  ;;  %724 = vpow2.f32 %v563_v62  ;;  %v300_v7 = vadd.f32 %v939_v40, %v299_v5 }
 0x106   : > { %v340_v8 = vadd.f32 %v939_v40, %v339_v6  ;;  %726 = vpow2.f32 %v554_v63  ;;  %v557_v9 = vmul.f32 -1.442695, %v305_v3 }
 0x107   : > { %v565_v10 = vmul.f32 -1.442695, %v345_v4  ;;  %728 = vpow2.f32 %v562_v0  ;;  %v556_v13 = vmul.f32 -1.442695, %v300_v7  ;;  %v645_v15 = vpop.f32.mrb[6].mxu0 }
 0x108   : > { %v564_v14 = vmul.f32 -1.442695, %v340_v8  ;;  %v657_v16 = vpop.f32.mrb[6].mxu1  ;;  %730 = vpow2.f32 %v557_v9  ;;  %v315_v17 = vadd.f32 %v645_v15, %v939_v40  ;;  %v309_v18 = vpop.f32.mrb[7].mxu0 }
 0x109   : > { %v349_v19 = vpop.f32.mrb[7].mxu1  ;;  %732 = vpow2.f32 %v565_v10  ;;  %v355_v53 = vadd.f32 %v657_v16, %v939_v40  ;;  %v310_v56 = vadd.f32 %v939_v40, %v309_v18 }
 0x10a   : > { %v715_v20 = vpop.eup %714  ;;  %734 = vpow2.f32 %v556_v13  ;;  %v559_v21 = vmul.f32 -1.442695, %v315_v17  ;;  %v350_v59 = vadd.f32 %v939_v40, %v349_v19 }
 0x10b   : > { %v717_v22 = vpop.eup %716  ;;  %v407_v23 = vadd.f32 1.0, %v715_v20  ;;  %736 = vpow2.f32 %v564_v14  ;;  %v567_v0 = vmul.f32 -1.442695, %v355_v53  ;;  %v558_v3 = vmul.f32 -1.442695, %v310_v56 }
 0x10c   : > { %v719_v24 = vpop.eup %718  ;;  %v415_v25 = vadd.f32 1.0, %v717_v22  ;;  %738 = vpow2.f32 %v559_v21  ;;  %v566_v5 = vmul.f32 -1.442695, %v350_v59 }
 0x10d   : > { %v721_v41 = vpop.eup %720  ;;  %740 = vrcp.f32 %v407_v23  ;;  %v406_v42 = vadd.f32 1.0, %v719_v24 }
 0x10e   : > { %v723_v43 = vpop.eup %722  ;;  %742 = vrcp.f32 %v415_v25  ;;  %v414_v44 = vadd.f32 1.0, %v721_v41 }
 0x10f   : > { %v725_v45 = vpop.eup %724  ;;  %744 = vrcp.f32 %v406_v42  ;;  %v409_v46 = vadd.f32 1.0, %v723_v43 }
 0x110   : > { %v727_v47 = vpop.eup %726  ;;  %746 = vrcp.f32 %v414_v44  ;;  %v417_v48 = vadd.f32 1.0, %v725_v45 }
 0x111   : > { %v729_v49 = vpop.eup %728  ;;  %748 = vrcp.f32 %v409_v46  ;;  %v408_v50 = vadd.f32 1.0, %v727_v47 }
 0x112   : > { %v731_v51 = vpop.eup %730  ;;  %750 = vrcp.f32 %v417_v48  ;;  %v416_v52 = vadd.f32 1.0, %v729_v49 }
 0x113   : > { %v733_v54 = vpop.eup %732  ;;  %752 = vrcp.f32 %v408_v50  ;;  %v411_v55 = vadd.f32 1.0, %v731_v51 }
 0x114   : > { %v735_v57 = vpop.eup %734  ;;  %754 = vrcp.f32 %v416_v52  ;;  %v419_v58 = vadd.f32 1.0, %v733_v54 }
 0x115   : > { %v737_v60 = vpop.eup %736  ;;  %756 = vrcp.f32 %v411_v55  ;;  %v410_v61 = vadd.f32 1.0, %v735_v57 }
 0x116   : > { %v739_v62 = vpop.eup %738  ;;  %758 = vrcp.f32 %v419_v58  ;;  %v418_v63 = vadd.f32 1.0, %v737_v60 }
 0x117   : > { %v741_v1 = vpop.eup %740  ;;  %760 = vrcp.f32 %v410_v61  ;;  %v413_v2 = vadd.f32 1.0, %v739_v62 }
 0x118   : > { %v743_v40 = vpop.eup %742  ;;  %v455_v4 = vmul.f32 %v741_v1, %v881_v26  ;;  %762 = vrcp.f32 %v418_v63 }
 0x119   : > { %v745_v6 = vpop.eup %744  ;;  %v463_v7 = vmul.f32 %v743_v40, %v884_v27  ;;  %764 = vrcp.f32 %v413_v2 }
 0x11a   : > { %v747_v8 = vpop.eup %746  ;;  %471 = vst [vmem:[%s962_s4 + $0x8] sm:$0xff] %v455_v4  ;;  %v454_v9 = vmul.f32 %v745_v6, %v849_v11  ;;  %766 = vpow2.f32 %v567_v0 }
 0x11b   : > { %v749_v10 = vpop.eup %748  ;;  %479 = vst [vmem:[%s962_s4 + $0x48] sm:$0xff] %v463_v7  ;;  %v462_v13 = vmul.f32 %v747_v8, %v852_v12  ;;  %768 = vpow2.f32 %v558_v3 }
 0x11c   : > { %v751_v26 = vpop.eup %750  ;;  %470 = vst [vmem:[%s962_s4] sm:$0xff] %v454_v9  ;;  %v457_v14 = vmul.f32 %v749_v10, %v897_v30  ;;  %770 = vpow2.f32 %v566_v5 }
 0x11d   : > { %v753_v27 = vpop.eup %752  ;;  %478 = vst [vmem:[%s962_s4 + $0x40] sm:$0xff] %v462_v13  ;;  %v465_v15 = vmul.f32 %v751_v26, %v900_v31 }
 0x11e   : > { %v755_v11 = vpop.eup %754  ;;  %473 = vst [vmem:[%s962_s4 + $0x18] sm:$0xff] %v457_v14  ;;  %v456_v16 = vmul.f32 %v753_v27, %v887_v28 }
 0x11f   : > { %v757_v17 = vpop.eup %756  ;;  %481 = vst [vmem:[%s962_s4 + $0x58] sm:$0xff] %v465_v15  ;;  %v464_v12 = vmul.f32 %v755_v11, %v890_v29 }
 0x120   : > { %v759_v18 = vpop.eup %758  ;;  %472 = vst [vmem:[%s962_s4 + $0x10] sm:$0xff] %v456_v16  ;;  %v459_v30 = vmul.f32 %v757_v17, %v913_v34 }
 0x121   : > { %v761_v19 = vpop.eup %760  ;;  %480 = vst [vmem:[%s962_s4 + $0x50] sm:$0xff] %v464_v12  ;;  %v467_v31 = vmul.f32 %v759_v18, %v916_v35 }
 0x122   : > { %v763_v20 = vpop.eup %762  ;;  %475 = vst [vmem:[%s962_s4 + $0x28] sm:$0xff] %v459_v30  ;;  %v458_v21 = vmul.f32 %v761_v19, %v903_v32 }
 0x123   : > { %v765_v28 = vpop.eup %764  ;;  %483 = vst [vmem:[%s962_s4 + $0x68] sm:$0xff] %v467_v31  ;;  %v466_v22 = vmul.f32 %v763_v20, %v906_v33 }
 0x124   : > { %v767_v23 = vpop.eup %766  ;;  %474 = vst [vmem:[%s962_s4 + $0x20] sm:$0xff] %v458_v21  ;;  %v461_v29 = vmul.f32 %v765_v28, %v929_v38 }
 0x125   : > { %v769_v24 = vpop.eup %768  ;;  %482 = vst [vmem:[%s962_s4 + $0x60] sm:$0xff] %v466_v22  ;;  %v421_v34 = vadd.f32 1.0, %v767_v23 }
 0x126   : > { %v771_v25 = vpop.eup %770  ;;  %477 = vst [vmem:[%s962_s4 + $0x38] sm:$0xff] %v461_v29  ;;  %v412_v35 = vadd.f32 1.0, %v769_v24 }
 0x127   : > { %772 = vrcp.f32 %v421_v34  ;;  %v420_v41 = vadd.f32 1.0, %v771_v25 }
 0x128   : > { %774 = vrcp.f32 %v412_v35 }
 0x129   : > { %776 = vrcp.f32 %v420_v41 }
 0x131   : > { %v773_v32 = vpop.eup %772 }
 0x132   : > { %v775_v42 = vpop.eup %774  ;;  %v469_v33 = vmul.f32 %v773_v32, %v932_v39 }
 0x133   : > { %v777_v43 = vpop.eup %776  ;;  %v460_v38 = vmul.f32 %v775_v42, %v919_v36 }
 0x134   : > { %485 = vst [vmem:[%s962_s4 + $0x78] sm:$0xff] %v469_v33  ;;  %v468_v44 = vmul.f32 %v777_v43, %v922_v37 }
 0x135   : > { %476 = vst [vmem:[%s962_s4 + $0x30] sm:$0xff] %v460_v38 }
 0x136   : > { %484 = vst [vmem:[%s962_s4 + $0x70] sm:$0xff] %v468_v44 }
 0x137 PF: > { %s13_s12 = sadd.s32 1, %s784_s12  }
 0x138   : > { %p10_p4 = scmp.ge.s32.totalorder %s13_s12, 4  }
 0x13a   :  { %12 = sbr.rel (!%p10_p4) target bundleno = 1 (0x1), region = 62 }

// kernel: fixed_deblur_generator.15
= control target key start
LH: loop header
LB: loop body
LE: loop exit
PB: predicated region body
PF: predicated region fallthrough
CT: control target
= control target key end

     0   :  { %s2058_s21 = smov 0   ;;  %s2060_s22 = smov 0   ;;  %s2410_s0 = inlined_call_operand.vmem [shape: f32[2,18,18,64], index: 0, kind: input, shape index: {}, may-alias: {0,1,2}]   ;;  %s2411_s1 = inlined_call_operand.vmem [shape: f32[2,18,18,64], index: 1, kind: input, shape index: {}, may-alias: {0,1,2}]   ;;  %s2412_s2 = inlined_call_operand.vmem [shape: f32[2,18,18,64], index: 2, kind: input, shape index: {}, may-alias: {0,1,2}]   ;;  %s2413_s3 = inlined_call_operand.vmem [shape: f32[9,64,64], index: 3, kind: input, shape index: {}]   ;;  %s2414_s4 = inlined_call_operand.vmem [shape: f32[1,64], index: 4, kind: input, shape index: {}]   ;;  %s2415_s5 = inlined_call_operand.vmem [shape: f32[2,16,16,64], index: 5, kind: input, shape index: {}]   ;;  %s2416_s6 = inlined_call_operand.vmem [shape: f32[2,16,16,64], index: 6, kind: output, shape index: {}]  }
   0x1   :  { %s2062_s23 = smov 0   ;;  %s2064_s24 = smov 0  }
   0x2   :  { %s2066_s25 = smov 0  }
   0x3 LB: > { %s25_s26 = sadd.s32 1, %s2013_s23  ;;  %s28_s27 = sadd.s32 1, %s2017_s24  ;;  %s2021_s25 = sphi %s2066_s25, %s16_s25   ;;  %s2017_s24 = sphi %s2064_s24, %s2421_s24   ;;  %s2013_s23 = sphi %s2062_s23, %s2420_s23   ;;  %s2009_s22 = sphi %s2060_s22, %s2419_s22   ;;  %s2005_s21 = sphi %s2058_s21, %s2418_s21  }
   0x4   : > { %p26_p0 = scmp.ge.s32.totalorder %s25_s26, 16  ;;  %p1423_p1 = scmp.ge.s32.totalorder %s2021_s25, 1 }
   0x5   : > { %p288_p2 = scmp.lt.s32.totalorder %s2021_s25, 33 }
   0x6   : > { %s2423_s26 = smov (%p26_p0, %s25_s26), 0  ;;  %s2425_s27 = smov (!%p26_p0, %s28_s27), %s2017_s24 }
   0x7   : > { %p289_p3 = pnand %p1423_p1, %p288_p2  ;;  %p30_p4 = scmp.ge.s32.totalorder %s2425_s27, 2 }
   0x8   : > { %v1433_v0 = vld [vmem:[%s2413_s3 + $0x40] sm:$0xff] (!%p289_p3)  ;;  %v1434_v1 = vld [vmem:[%s2413_s3 + $0x48] sm:$0xff] (!%p289_p3)  ;;  %p355_p5 = scmp.lt.s32.totalorder (!%p289_p3), %s2009_s22, 1  ;;  %p357_p6 = scmp.lt.s32.totalorder (!%p289_p3), %s2005_s21, 17  ;;  %v1435_v5 = vld [vmem:[%s2413_s3 + $0x50] sm:$0xff] (!%p289_p3)  ;;  %vm425_vm0 = vcmask (!%p289_p3), 523264  }
   0x9   : > { %s2427_s27 = smov (%p30_p4, %s2425_s27), 0  ;;  %292 = sbr.rel (%p289_p3) target bundleno = 313 (0x139), region = 44 }
   0xa   : > { %v1465_v2 = vld [vmem:[%s2413_s3 + $0x100] sm:$0xff] (!%p289_p3)  ;;  %v1779_v3 = vpack.c.bf16 (!%p289_p3), %v1434_v1, %v1433_v0  ;;  %v1466_v4 = vld [vmem:[%s2413_s3 + $0x108] sm:$0xff] (!%p289_p3)  ;;  %v1436_v6 = vld [vmem:[%s2413_s3 + $0x58] sm:$0xff] (!%p289_p3)  ;;  %s364_s16 = sadd.s32 (!%p289_p3), 1, %s2005_s21  ;;  %p388_p9 = scmp.lt.s32.totalorder (!%p289_p3), %s2005_s21, 15 }
   0xb   : > { %v1843_v7 = vpack.c.bf16 (!%p289_p3), %v1466_v4, %v1465_v2  ;;  %v1783_v8 = vpack.c.bf16 (!%p289_p3), %v1436_v6, %v1435_v5  ;;  %v1467_v9 = vld [vmem:[%s2413_s3 + $0x110] sm:$0xff] (!%p289_p3)  ;;  %v1468_v10 = vld [vmem:[%s2413_s3 + $0x118] sm:$0xff] (!%p289_p3)  ;;  %v1437_v11 = vld [vmem:[%s2413_s3 + $0x60] sm:$0xff] (!%p289_p3)  ;;  %p367_p7 = scmp.lt.s32.totalorder (!%p289_p3), %s364_s16, 17 }
   0xc   : > { %1780 = vmatprep.subr.bf16.mxu1 (!%p289_p3), %v1779_v3  ;;  %v1847_v12 = vpack.c.bf16 (!%p289_p3), %v1468_v10, %v1467_v9  ;;  %v1438_v13 = vld [vmem:[%s2413_s3 + $0x68] sm:$0xff] (!%p289_p3)  ;;  %v1469_v14 = vld [vmem:[%s2413_s3 + $0x120] sm:$0xff] (!%p289_p3)  ;;  %v1439_v18 = vld [vmem:[%s2413_s3 + $0x70] sm:$0xff] (!%p289_p3) }
   0xd   : > { %v1470_v15 = vld [vmem:[%s2413_s3 + $0x128] sm:$0xff] (!%p289_p3)  ;;  %1844 = vmatprep.subr.bf16.mxu0 (!%p289_p3), %v1843_v7  ;;  %1782 = vmatpush3.bf16.msra.mxu1 (!%p289_p3), %v1779_v3  ;;  %v1787_v16 = vpack.c.bf16 (!%p289_p3), %v1438_v13, %v1437_v11  ;;  %v1440_v19 = vld [vmem:[%s2413_s3 + $0x78] sm:$0xff] (!%p289_p3)  ;;  %v1471_v20 = vld [vmem:[%s2413_s3 + $0x130] sm:$0xff] (!%p289_p3) }
   0xe   : > { %1846 = vmatpush3.bf16.msra.mxu0 (!%p289_p3), %v1843_v7  ;;  %1784 = vmatprep.subr.bf16.mxu1 (!%p289_p3), %v1783_v8  ;;  %v1851_v17 = vpack.c.bf16 (!%p289_p3), %v1470_v15, %v1469_v14  ;;  %v1472_v21 = vld [vmem:[%s2413_s3 + $0x138] sm:$0xff] (!%p289_p3)  ;;  %v1791_v22 = vpack.c.bf16 (!%p289_p3), %v1440_v19, %v1439_v18  ;;  %v406_v25 = vld [vmem:[%s2413_s3] sm:$0xff] (!%p289_p3)  ;;  %v407_v26 = vld [vmem:[%s2413_s3 + $0x8] sm:$0xff] (!%p289_p3) }
   0xf   : > { %1848 = vmatprep.subr.bf16.mxu0 (!%p289_p3), %v1847_v12  ;;  %v1855_v23 = vpack.c.bf16 (!%p289_p3), %v1472_v21, %v1471_v20  ;;  %v1475_v27 = vld [vmem:[%s2413_s3 + $0x140] sm:$0xff] (!%p289_p3)  ;;  %v1476_v28 = vld [vmem:[%s2413_s3 + $0x148] sm:$0xff] (!%p289_p3)  ;;  %v1795_v29 = vpack.c.bf16 (!%p289_p3), %v407_v26, %v406_v25  ;;  %v408_v32 = vld [vmem:[%s2413_s3 + $0x10] sm:$0xff] (!%p289_p3) }
  0x10   : > { %s2429_s22 = smov (!%p355_p5, %s2009_s22), 1  ;;  %s2431_s16 = smov (!%p367_p7, %s364_s16), 17  ;;  %v1859_v31 = vpack.c.bf16 %v1476_v28, %v1475_v27  ;;  %v409_v33 = vld [vmem:[%s2413_s3 + $0x18] sm:$0xff]  ;;  %v1477_v34 = vld [vmem:[%s2413_s3 + $0x150] sm:$0xff]  ;;  %v410_v40 = vld [vmem:[%s2413_s3 + $0x20] sm:$0xff] }
  0x11   : > { %s358_s12 = scalar_select %p357_p6, %s2005_s21, 17  ;;  %1786 = vmatpush3.bf16.msra.mxu1 %v1783_v8  ;;  %v1478_v35 = vld [vmem:[%s2413_s3 + $0x158] sm:$0xff]  ;;  %v1799_v38 = vpack.c.bf16 %v409_v33, %v408_v32  ;;  %v411_v41 = vld [vmem:[%s2413_s3 + $0x28] sm:$0xff]  ;;  %v1479_v42 = vld [vmem:[%s2413_s3 + $0x160] sm:$0xff] }
  0x12   : > { %s2138_s13 = smul.u32 54, %s2429_s22  ;;  %1850 = vmatpush3.bf16.msra.mxu0 %v1847_v12  ;;  %1788 = vmatprep.subr.bf16.mxu1 %v1787_v16  ;;  %v1863_v39 = vpack.c.bf16 %v1478_v35, %v1477_v34  ;;  %v1480_v43 = vld [vmem:[%s2413_s3 + $0x168] sm:$0xff]  ;;  %v1803_v46 = vpack.c.bf16 %v411_v41, %v410_v40  ;;  %v412_v48 = vld [vmem:[%s2413_s3 + $0x30] sm:$0xff]  ;;  %v413_v49 = vld [vmem:[%s2413_s3 + $0x38] sm:$0xff] }
  0x13   : > { %s1939_s14 = smul.u32 3, %s358_s12  ;;  %1852 = vmatprep.subr.bf16.mxu0 %v1851_v17  ;;  %v1867_v47 = vpack.c.bf16 %v1480_v43, %v1479_v42  ;;  %v1481_v50 = vld [vmem:[%s2413_s3 + $0x170] sm:$0xff]  ;;  %v1482_v51 = vld [vmem:[%s2413_s3 + $0x178] sm:$0xff]  ;;  %v1807_v52 = vpack.c.bf16 %v413_v49, %v412_v48  ;;  %v1445_v54 = vld [vmem:[%s2413_s3 + $0x80] sm:$0xff] }
  0x14   : > { %s1941_s9 = smul.u32 3, %s2431_s16  ;;  %v1871_v53 = vpack.c.bf16 %v1482_v51, %v1481_v50  ;;  %v1446_v55 = vld [vmem:[%s2413_s3 + $0x88] sm:$0xff]  ;;  %v1485_v56 = vld [vmem:[%s2413_s3 + $0x180] sm:$0xff]  ;;  %v1447_v60 = vld [vmem:[%s2413_s3 + $0x90] sm:$0xff] }
  0x15   : > { %s361_s7 = sadd.s32 %s2138_s13, %s1939_s14  ;;  %1790 = vmatpush3.bf16.msra.mxu1 %v1787_v16  ;;  %v1486_v57 = vld [vmem:[%s2413_s3 + $0x188] sm:$0xff]  ;;  %v1811_v58 = vpack.c.bf16 %v1446_v55, %v1445_v54  ;;  %v1448_v61 = vld [vmem:[%s2413_s3 + $0x98] sm:$0xff]  ;;  %v1487_v62 = vld [vmem:[%s2413_s3 + $0x190] sm:$0xff] }
  0x16   : > { %s1424_s8 = sshll.u32 %s361_s7, 3  ;;  %s371_s16 = sadd.s32 %s1941_s9, %s2138_s13  ;;  %1854 = vmatpush3.bf16.msra.mxu0 %v1851_v17  ;;  %1792 = vmatprep.subr.bf16.mxu1 %v1791_v22  ;;  %v1875_v59 = vpack.c.bf16 %v1486_v57, %v1485_v56  ;;  %v1488_v63 = vld [vmem:[%s2413_s3 + $0x198] sm:$0xff]  ;;  %v1815_v2 = vpack.c.bf16 %v1448_v61, %v1447_v60  ;;  %v1449_v4 = vld [vmem:[%s2413_s3 + $0xa0] sm:$0xff]  ;;  %v1450_v5 = vld [vmem:[%s2413_s3 + $0xa8] sm:$0xff] }
  0x17   : > { %s2156_s12 = scalar_lea.vmem %s2410_s0, %s1424_s8  ;;  %s1425_s19 = sshll.u32 %s371_s16, 3  ;;  %1856 = vmatprep.subr.bf16.mxu0 %v1855_v23  ;;  %v1879_v3 = vpack.c.bf16 %v1488_v63, %v1487_v62  ;;  %v1489_v6 = vld [vmem:[%s2413_s3 + $0x1a0] sm:$0xff]  ;;  %v1490_v7 = vld [vmem:[%s2413_s3 + $0x1a8] sm:$0xff]  ;;  %v1819_v10 = vpack.c.bf16 %v1450_v5, %v1449_v4  ;;  %v1451_v12 = vld [vmem:[%s2413_s3 + $0xb0] sm:$0xff] }
  0x18   : > { %v414_v24 = vld [vmem:[%s2156_s12 + $0x1] sm:$0xff]  ;;  %s2176_s10 = scalar_lea.vmem %s2411_s1, %s1425_s19  ;;  %s375_s9 = sadd.s32 2, %s2005_s21  ;;  %v415_v36 = vld [vmem:[%s2156_s12 + $0x9] sm:$0xff]  ;;  %v1883_v11 = vpack.c.bf16 %v1490_v7, %v1489_v6  ;;  %v1452_v13 = vld [vmem:[%s2413_s3 + $0xb8] sm:$0xff] }
  0x19   : > { %1624 = vmatprep.mubr.msk.f32.mxu1 %vm425_vm0, %v414_v24  ;;  %v776_v30 = vld [vmem:[%s2176_s10 + $0x1] sm:$0xff]  ;;  %p2193_p8 = scmp.lt.s32.totalorder %s375_s9, 17  ;;  %1794 = vmatpush3.bf16.msra.mxu1 %v1791_v22  ;;  %v777_v37 = vld [vmem:[%s2176_s10 + $0x9] sm:$0xff]  ;;  %v1492_v15 = vld [vmem:[%s2413_s3 + $0x1b8] sm:$0xff]  ;;  %v1823_v16 = vpack.c.bf16 %v1452_v13, %v1451_v12  ;;  %s2435_s21 = smov (!%p388_p9, %s2005_s21), 15 }
  0x1a   : > { %1700 = vmatprep.mubr.msk.f32.mxu0 %vm425_vm0, %v776_v30  ;;  %1858 = vmatpush3.bf16.msra.mxu0 %v1855_v23  ;;  %v404_v44 = vld [vmem:[%s2156_s12] sm:$0xff]  ;;  %v405_v0 = vld [vmem:[%s2156_s12 + $0x8] sm:$0xff]  ;;  %v1491_v14 = vld [vmem:[%s2413_s3 + $0x1b0] sm:$0xff]  ;;  %s1427_s30 = sshll.u32 %s2435_s21, 1  ;;  %s1428_s7 = sshll.u32 %s2429_s22, 5 }
  0x1b   : > { %1796 = vmatprep.subr.bf16.mxu1 %v1795_v29  ;;  %1860 = vmatprep.subr.bf16.mxu0 %v1859_v31  ;;  %s2433_s9 = smov (!%p2193_p8, %s375_s9), 17  ;;  %v870_v45 = vld [vmem:[%s2176_s10 + $0x2] sm:$0xff]  ;;  %v871_v1 = vld [vmem:[%s2176_s10 + $0xa] sm:$0xff]  ;;  %v1887_v17 = vpack.c.bf16 %v1492_v15, %v1491_v14  ;;  %v1458_v25 = vld [vmem:[%s2413_s3 + $0xd8] sm:$0xff] }
  0x1c   : > { %1625 = vmatmul.mubr.msk.f32.vlgmr.msra.gmra.mrb[0].mxu1 %vm425_vm0, %v415_v36  ;;  %s1942_s8 = smul.u32 3, %s2433_s9  ;;  %v588_v8 = vld [vmem:[%s2156_s12 + $0x2] sm:$0xff]  ;;  %v1457_v24 = vld [vmem:[%s2413_s3 + $0xd0] sm:$0xff]  ;;  %v1498_v27 = vld [vmem:[%s2413_s3 + $0x1d8] sm:$0xff] }
  0x1d   : > { %1798 = vmatpush3.bf16.msra.mxu1 %v1795_v29  ;;  %1701 = vmatmul.mubr.msk.f32.vlgmr.msra.gmra.mrb[0].mxu0 %vm425_vm0, %v777_v37  ;;  %v1455_v18 = vld [vmem:[%s2413_s3 + $0xc0] sm:$0xff]  ;;  %v1456_v19 = vld [vmem:[%s2413_s3 + $0xc8] sm:$0xff]  ;;  %v1497_v26 = vld [vmem:[%s2413_s3 + $0x1d0] sm:$0xff]  ;;  %v1831_v30 = vpack.c.bf16 %v1458_v25, %v1457_v24 }
  0x1e   : > { %1862 = vmatpush3.bf16.msra.mxu0 %v1859_v31  ;;  %1800 = vmatprep.subr.bf16.mxu1 %v1799_v38  ;;  %s382_s20 = sadd.s32 %s1942_s8, %s2138_s13  ;;  %v1495_v20 = vld [vmem:[%s2413_s3 + $0x1c0] sm:$0xff]  ;;  %v1496_v21 = vld [vmem:[%s2413_s3 + $0x1c8] sm:$0xff]  ;;  %v1827_v22 = vpack.c.bf16 %v1456_v19, %v1455_v18  ;;  %v1895_v31 = vpack.c.bf16 %v1498_v27, %v1497_v26  ;;  %v1461_v40 = vld [vmem:[%s2413_s3 + $0xf0] sm:$0xff] }
  0x1f   : > { %1864 = vmatprep.subr.bf16.mxu0 %v1863_v39  ;;  %1643 = vmatprep.mubr.msk.f32.mxu1 %vm425_vm0, %v404_v44  ;;  %s1426_s11 = sshll.u32 %s382_s20, 3  ;;  %v1891_v23 = vpack.c.bf16 %v1496_v21, %v1495_v20  ;;  %v589_v28 = vld [vmem:[%s2156_s12 + $0xa] sm:$0xff]  ;;  %v1459_v32 = vld [vmem:[%s2413_s3 + $0xe0] sm:$0xff]  ;;  %v1462_v41 = vld [vmem:[%s2413_s3 + $0xf8] sm:$0xff] }
  0x20   : > { %1719 = vmatprep.mubr.msk.f32.mxu0 %vm425_vm0, %v870_v45  ;;  %s2261_s16 = scalar_lea.vmem %s2412_s2, %s1426_s11  ;;  %v1460_v33 = vld [vmem:[%s2413_s3 + $0xe8] sm:$0xff]  ;;  %v1499_v34 = vld [vmem:[%s2413_s3 + $0x1e0] sm:$0xff]  ;;  %v1501_v42 = vld [vmem:[%s2413_s3 + $0x1f0] sm:$0xff]  ;;  %v1839_v44 = vpack.c.bf16 %v1462_v41, %v1461_v40  ;;  %s392_s11 = sadd.s32 %s1428_s7, %s1427_s30 }
  0x21   : > { %1802 = vmatpush3.bf16.msra.mxu1 %v1799_v38  ;;  %v964_v9 = vld [vmem:[%s2261_s16] sm:$0xff]  ;;  %v965_v29 = vld [vmem:[%s2261_s16 + $0x8] sm:$0xff]  ;;  %v1835_v38 = vpack.c.bf16 %v1460_v33, %v1459_v32  ;;  %v1502_v43 = vld [vmem:[%s2413_s3 + $0x1f8] sm:$0xff]  ;;  %s1429_s15 = sshll.u32 %s392_s11, 3 }
  0x22   : > { %1866 = vmatpush3.bf16.msra.mxu0 %v1863_v39  ;;  %1804 = vmatprep.subr.bf16.mxu1 %v1803_v46  ;;  %v1500_v35 = vld [vmem:[%s2413_s3 + $0x1e8] sm:$0xff]  ;;  %v682_v36 = vld [vmem:[%s2176_s10] sm:$0xff]  ;;  %v1903_v45 = vpack.c.bf16 %v1502_v43, %v1501_v42  ;;  %v1507_v49 = vld [vmem:[%s2413_s3 + $0x210] sm:$0xff]  ;;  %s394_s13 = scalar_lea.vmem %s2415_s5, %s1429_s15  ;;  %s403_s22 = scalar_lea.vmem %s2416_s6, %s1429_s15 }
  0x23   : > { %1868 = vmatprep.subr.bf16.mxu0 %v1867_v47  ;;  %v1058_v37 = vld [vmem:[%s2261_s16 + $0x1] sm:$0xff]  ;;  %v1899_v39 = vpack.c.bf16 %v1500_v35, %v1499_v34  ;;  %v1508_v50 = vld [vmem:[%s2413_s3 + $0x218] sm:$0xff]  ;;  %v1153_v61 = vld [vmem:[%s2261_s16 + $0xa] sm:$0xff] }
  0x24   : > { %v683_v51 = vld [vmem:[%s2176_s10 + $0x8] sm:$0xff]  ;;  %v1509_v55 = vld [vmem:[%s2413_s3 + $0x220] sm:$0xff] }
  0x25   : > { %1806 = vmatpush3.bf16.msra.mxu1 %v1803_v46  ;;  %v1505_v46 = vld [vmem:[%s2413_s3 + $0x200] sm:$0xff]  ;;  %v1510_v56 = vld [vmem:[%s2413_s3 + $0x228] sm:$0xff] }
  0x26   : > { %1870 = vmatpush3.bf16.msra.mxu0 %v1867_v47  ;;  %1808 = vmatprep.subr.bf16.mxu1 %v1807_v52  ;;  %v1506_v47 = vld [vmem:[%s2413_s3 + $0x208] sm:$0xff]  ;;  %v1915_v57 = vpack.c.bf16 %v1510_v56, %v1509_v55  ;;  %v1255_v7 = vld [vmem:[%s394_s13] sm:$0xff] }
  0x27   : > { %1872 = vmatprep.subr.bf16.mxu0 %v1871_v53  ;;  %v1907_v48 = vpack.c.bf16 %v1506_v47, %v1505_v46  ;;  %v1152_v54 = vld [vmem:[%s2261_s16 + $0x2] sm:$0xff] }
  0x28   : > { %v1256_v4 = vld [vmem:[%s394_s13 + $0x8] sm:$0xff] }
  0x29   : > { %1810 = vmatpush3.bf16.msra.mxu1 %v1807_v52  ;;  %v1059_v52 = vld [vmem:[%s2261_s16 + $0x9] sm:$0xff] }
  0x2a   : > { %1874 = vmatpush3.bf16.msra.mxu0 %v1871_v53  ;;  %1812 = vmatprep.subr.bf16.mxu1 %v1811_v58  ;;  %v1911_v53 = vpack.c.bf16 %v1508_v50, %v1507_v49 }
  0x2b   : > { %1876 = vmatprep.subr.bf16.mxu0 %v1875_v59 }
  0x2c   : > { %1644 = vmatmul.mubr.msk.f32.vlgmr.msra.gmra.mrb[0].mxu1 %vm425_vm0, %v405_v0 }
  0x2d   : > { %1814 = vmatpush3.bf16.msra.mxu1 %v1811_v58  ;;  %1720 = vmatmul.mubr.msk.f32.vlgmr.msra.gmra.mrb[0].mxu0 %vm425_vm0, %v871_v1  ;;  %v1511_v58 = vld [vmem:[%s2413_s3 + $0x230] sm:$0xff]  ;;  %v1515_v1 = vld [vmem:[%s2414_s4] ss:$0 sm:$0xff] }
  0x2e   : > { %1878 = vmatpush3.bf16.msra.mxu0 %v1875_v59  ;;  %1816 = vmatprep.subr.bf16.mxu1 %v1815_v2  ;;  %v1512_v59 = vld [vmem:[%s2413_s3 + $0x238] sm:$0xff] }
  0x2f   : > { %1880 = vmatprep.subr.bf16.mxu0 %v1879_v3  ;;  %1662 = vmatprep.mubr.msk.f32.mxu1 %vm425_vm0, %v588_v8  ;;  %v1919_v60 = vpack.c.bf16 %v1512_v59, %v1511_v58 }
  0x30   : > { %1738 = vmatprep.mubr.msk.f32.mxu0 %vm425_vm0, %v964_v9 }
  0x31   : > { %1818 = vmatpush3.bf16.msra.mxu1 %v1815_v2 }
  0x32   : > { %1882 = vmatpush3.bf16.msra.mxu0 %v1879_v3  ;;  %1820 = vmatprep.subr.bf16.mxu1 %v1819_v10 }
  0x33   : > { %1884 = vmatprep.subr.bf16.mxu0 %v1883_v11 }
  0x35   : > { %1822 = vmatpush3.bf16.msra.mxu1 %v1819_v10 }
  0x36   : > { %1886 = vmatpush3.bf16.msra.mxu0 %v1883_v11  ;;  %1824 = vmatprep.subr.bf16.mxu1 %v1823_v16 }
  0x37   : > { %1888 = vmatprep.subr.bf16.mxu0 %v1887_v17 }
  0x39   : > { %1826 = vmatpush3.bf16.msra.mxu1 %v1823_v16 }
  0x3a   : > { %1890 = vmatpush3.bf16.msra.mxu0 %v1887_v17  ;;  %1828 = vmatprep.subr.bf16.mxu1 %v1827_v22 }
  0x3b   : > { %1892 = vmatprep.subr.bf16.mxu0 %v1891_v23 }
  0x3c   : > { %1663 = vmatmul.mubr.msk.f32.vlgmr.msra.gmra.mrb[0].mxu1 %vm425_vm0, %v589_v28 }
  0x3d   : > { %1830 = vmatpush3.bf16.msra.mxu1 %v1827_v22  ;;  %1739 = vmatmul.mubr.msk.f32.vlgmr.msra.gmra.mrb[0].mxu0 %vm425_vm0, %v965_v29 }
  0x3e   : > { %1894 = vmatpush3.bf16.msra.mxu0 %v1891_v23  ;;  %1832 = vmatprep.subr.bf16.mxu1 %v1831_v30 }
  0x3f   : > { %1896 = vmatprep.subr.bf16.mxu0 %v1895_v31  ;;  %1681 = vmatprep.mubr.msk.f32.mxu1 %vm425_vm0, %v682_v36 }
  0x40   : > { %1757 = vmatprep.mubr.msk.f32.mxu0 %vm425_vm0, %v1058_v37 }
  0x41   : > { %1834 = vmatpush3.bf16.msra.mxu1 %v1831_v30 }
  0x42   : > { %1898 = vmatpush3.bf16.msra.mxu0 %v1895_v31  ;;  %1836 = vmatprep.subr.bf16.mxu1 %v1835_v38 }
  0x43   : > { %1900 = vmatprep.subr.bf16.mxu0 %v1899_v39 }
  0x45   : > { %1838 = vmatpush3.bf16.msra.mxu1 %v1835_v38 }
  0x46   : > { %1902 = vmatpush3.bf16.msra.mxu0 %v1899_v39  ;;  %1840 = vmatprep.subr.bf16.mxu1 %v1839_v44 }
  0x47   : > { %1904 = vmatprep.subr.bf16.mxu0 %v1903_v45 }
  0x49   : > { %1842 = vmatpush3.bf16.msra.mxu1 %v1839_v44 }
  0x4a   : > { %1906 = vmatpush3.bf16.msra.mxu0 %v1903_v45 }
  0x4b   : > { %1908 = vmatprep.subr.bf16.mxu0 %v1907_v48 }
  0x4c   : > { %1682 = vmatmul.mubr.msk.f32.vlgmr.msra.gmra.mrb[0].mxu1 %vm425_vm0, %v683_v51 }
  0x4d   : > { %1758 = vmatmul.mubr.msk.f32.vlgmr.msra.gmra.mrb[0].mxu0 %vm425_vm0, %v1059_v52 }
  0x4e   : > { %1910 = vmatpush3.bf16.msra.mxu0 %v1907_v48  ;;  %1776 = vmatprep.mubr.msk.f32.mxu0 %vm425_vm0, %v1152_v54 }
  0x4f   : > { %1912 = vmatprep.subr.bf16.mxu0 %v1911_v53 }
  0x52   : > { %1914 = vmatpush3.bf16.msra.mxu0 %v1911_v53 }
  0x53   : > { %1916 = vmatprep.subr.bf16.mxu0 %v1915_v57 }
  0x56   : > { %1918 = vmatpush3.bf16.msra.mxu0 %v1915_v57 }
  0x57   : > { %1920 = vmatprep.subr.bf16.mxu0 %v1919_v60 }
  0x5a   : > { %1922 = vmatpush3.bf16.msra.mxu0 %v1919_v60 }
  0x5d   : > { %1777 = vmatmul.mubr.msk.f32.vlgmr.msra.gmra.mrb[0].mxu0 %vm425_vm0, %v1153_v61 }
 0x11f   : > { %v1683_v62 = vpop.f32.mrb[0].mxu1 }
 0x120   : > { %v765_v63 = vpop.f32.mrb[1].mxu1 }
 0x130   : > { %v1778_v0 = vpop.f32.mrb[0].mxu0 }
 0x131   : > { %v1923_v2 = vadd.f32 %v1778_v0, %v1683_v62  ;;  %v1235_v3 = vpop.f32.mrb[1].mxu0 }
 0x132   : > { %v1924_v5 = vadd.f32 %v1235_v3, %v765_v63 }
 0x133   : > { %v1254_v6 = vadd.f32 %v1923_v2, %v1515_v1 }
 0x134   : > { %v1253_v8 = vadd.f32 %v1924_v5, %v1515_v1 }
 0x135   : > { %v1258_v9 = vadd.f32 %v1256_v4, %v1254_v6 }
 0x136   : > { %v1257_v10 = vadd.f32 %v1255_v7, %v1253_v8 }
 0x137   : > { %1260 = vst.msk [vmem:[%s403_s22 + $0x8] sm:$0xff] %vm425_vm0, %v1258_v9 }
 0x138   : > { %1259 = vst.msk [vmem:[%s403_s22] sm:$0xff] %vm425_vm0, %v1257_v10 }
 0x139 PF: > { %s16_s25 = sadd.s32 1, %s2021_s25   ;;  %s2418_s21 = smov %s2013_s23 }
 0x13a   : > { %p13_p10 = scmp.ge.s32.totalorder %s16_s25, 34   ;;  %s2419_s22 = smov %s2017_s24 }
 0x13b   : > { %s2420_s23 = smov %s2423_s26  ;;  %s2421_s24 = smov %s2427_s27 }
 0x13c   :  { %15 = sbr.rel (!%p13_p10) target bundleno = 3 (0x3), region = 91 }

// kernel: fixed_deblur_generator.14
= control target key start
LH: loop header
LB: loop body
LE: loop exit
PB: predicated region body
PF: predicated region fallthrough
CT: control target
= control target key end

     0   :  { %s1966_s18 = smov 0   ;;  %s1968_s19 = smov 0   ;;  %s2315_s0 = inlined_call_operand.vmem [shape: f32[2,18,18,64], index: 0, kind: input, shape index: {}, may-alias: {0,1,2}]   ;;  %s2316_s1 = inlined_call_operand.vmem [shape: f32[2,18,18,64], index: 1, kind: input, shape index: {}, may-alias: {0,1,2}]   ;;  %s2317_s2 = inlined_call_operand.vmem [shape: f32[2,18,18,64], index: 2, kind: input, shape index: {}, may-alias: {0,1,2}]   ;;  %s2318_s3 = inlined_call_operand.vmem [shape: f32[9,64,64], index: 3, kind: input, shape index: {}]   ;;  %s2319_s4 = inlined_call_operand.vmem [shape: f32[1,64], index: 4, kind: input, shape index: {}]   ;;  %s2320_s5 = inlined_call_operand.vmem [shape: f32[2,16,16,64], index: 5, kind: output, shape index: {}]  }
   0x1   :  { %s1970_s20 = smov 0   ;;  %s1972_s21 = smov 0  }
   0x2   :  { %s1974_s22 = smov 0  }
   0x3 LB: > { %s24_s23 = sadd.s32 1, %s1926_s20  ;;  %s27_s24 = sadd.s32 1, %s1930_s21  ;;  %s1934_s22 = sphi %s1974_s22, %s15_s22   ;;  %s1930_s21 = sphi %s1972_s21, %s2325_s21   ;;  %s1926_s20 = sphi %s1970_s20, %s2324_s20   ;;  %s1922_s19 = sphi %s1968_s19, %s2323_s19   ;;  %s1918_s18 = sphi %s1966_s18, %s2322_s18  }
   0x4   : > { %p25_p0 = scmp.ge.s32.totalorder %s24_s23, 16  ;;  %p1339_p1 = scmp.ge.s32.totalorder %s1934_s22, 1 }
   0x5   : > { %p247_p2 = scmp.lt.s32.totalorder %s1934_s22, 33 }
   0x6   : > { %s2327_s23 = smov (%p25_p0, %s24_s23), 0  ;;  %s2329_s24 = smov (!%p25_p0, %s27_s24), %s1930_s21 }
   0x7   : > { %p248_p3 = pnand %p1339_p1, %p247_p2  ;;  %p29_p4 = scmp.ge.s32.totalorder %s2329_s24, 2 }
   0x8   : > { %v1346_v0 = vld [vmem:[%s2318_s3 + $0x40] sm:$0xff] (!%p248_p3)  ;;  %v1347_v1 = vld [vmem:[%s2318_s3 + $0x48] sm:$0xff] (!%p248_p3)  ;;  %p303_p5 = scmp.lt.s32.totalorder (!%p248_p3), %s1922_s19, 1  ;;  %p305_p6 = scmp.lt.s32.totalorder (!%p248_p3), %s1918_s18, 17  ;;  %v1348_v5 = vld [vmem:[%s2318_s3 + $0x50] sm:$0xff] (!%p248_p3)  ;;  %vm364_vm0 = vcmask (!%p248_p3), 523264  }
   0x9   : > { %s2331_s24 = smov (%p29_p4, %s2329_s24), 0  ;;  %251 = sbr.rel (%p248_p3) target bundleno = 313 (0x139), region = 40 }
   0xa   : > { %v1378_v2 = vld [vmem:[%s2318_s3 + $0x100] sm:$0xff] (!%p248_p3)  ;;  %v1692_v3 = vpack.c.bf16 (!%p248_p3), %v1347_v1, %v1346_v0  ;;  %v1379_v4 = vld [vmem:[%s2318_s3 + $0x108] sm:$0xff] (!%p248_p3)  ;;  %v1349_v6 = vld [vmem:[%s2318_s3 + $0x58] sm:$0xff] (!%p248_p3)  ;;  %s312_s12 = sadd.s32 (!%p248_p3), 1, %s1918_s18  ;;  %p336_p9 = scmp.lt.s32.totalorder (!%p248_p3), %s1918_s18, 15 }
   0xb   : > { %v1756_v7 = vpack.c.bf16 (!%p248_p3), %v1379_v4, %v1378_v2  ;;  %v1696_v8 = vpack.c.bf16 (!%p248_p3), %v1349_v6, %v1348_v5  ;;  %v1380_v9 = vld [vmem:[%s2318_s3 + $0x110] sm:$0xff] (!%p248_p3)  ;;  %v1381_v10 = vld [vmem:[%s2318_s3 + $0x118] sm:$0xff] (!%p248_p3)  ;;  %v1350_v11 = vld [vmem:[%s2318_s3 + $0x60] sm:$0xff] (!%p248_p3)  ;;  %p315_p7 = scmp.lt.s32.totalorder (!%p248_p3), %s312_s12, 17 }
   0xc   : > { %1693 = vmatprep.subr.bf16.mxu1 (!%p248_p3), %v1692_v3  ;;  %v1760_v12 = vpack.c.bf16 (!%p248_p3), %v1381_v10, %v1380_v9  ;;  %v1351_v13 = vld [vmem:[%s2318_s3 + $0x68] sm:$0xff] (!%p248_p3)  ;;  %v1382_v14 = vld [vmem:[%s2318_s3 + $0x120] sm:$0xff] (!%p248_p3)  ;;  %v1352_v18 = vld [vmem:[%s2318_s3 + $0x70] sm:$0xff] (!%p248_p3) }
   0xd   : > { %v1383_v15 = vld [vmem:[%s2318_s3 + $0x128] sm:$0xff] (!%p248_p3)  ;;  %1757 = vmatprep.subr.bf16.mxu0 (!%p248_p3), %v1756_v7  ;;  %1695 = vmatpush3.bf16.msra.mxu1 (!%p248_p3), %v1692_v3  ;;  %v1700_v16 = vpack.c.bf16 (!%p248_p3), %v1351_v13, %v1350_v11  ;;  %v1353_v19 = vld [vmem:[%s2318_s3 + $0x78] sm:$0xff] (!%p248_p3)  ;;  %v1384_v20 = vld [vmem:[%s2318_s3 + $0x130] sm:$0xff] (!%p248_p3) }
   0xe   : > { %1759 = vmatpush3.bf16.msra.mxu0 (!%p248_p3), %v1756_v7  ;;  %1697 = vmatprep.subr.bf16.mxu1 (!%p248_p3), %v1696_v8  ;;  %v1764_v17 = vpack.c.bf16 (!%p248_p3), %v1383_v15, %v1382_v14  ;;  %v1385_v21 = vld [vmem:[%s2318_s3 + $0x138] sm:$0xff] (!%p248_p3)  ;;  %v1704_v22 = vpack.c.bf16 (!%p248_p3), %v1353_v19, %v1352_v18  ;;  %v345_v25 = vld [vmem:[%s2318_s3] sm:$0xff] (!%p248_p3)  ;;  %v346_v26 = vld [vmem:[%s2318_s3 + $0x8] sm:$0xff] (!%p248_p3) }
   0xf   : > { %1761 = vmatprep.subr.bf16.mxu0 (!%p248_p3), %v1760_v12  ;;  %v1768_v23 = vpack.c.bf16 (!%p248_p3), %v1385_v21, %v1384_v20  ;;  %v1388_v27 = vld [vmem:[%s2318_s3 + $0x140] sm:$0xff] (!%p248_p3)  ;;  %v1389_v28 = vld [vmem:[%s2318_s3 + $0x148] sm:$0xff] (!%p248_p3)  ;;  %v1708_v29 = vpack.c.bf16 (!%p248_p3), %v346_v26, %v345_v25  ;;  %v347_v32 = vld [vmem:[%s2318_s3 + $0x10] sm:$0xff] (!%p248_p3) }
  0x10   : > { %s2333_s19 = smov (!%p303_p5, %s1922_s19), 1  ;;  %s2335_s12 = smov (!%p315_p7, %s312_s12), 17  ;;  %v1772_v31 = vpack.c.bf16 %v1389_v28, %v1388_v27  ;;  %v348_v33 = vld [vmem:[%s2318_s3 + $0x18] sm:$0xff]  ;;  %v1390_v34 = vld [vmem:[%s2318_s3 + $0x150] sm:$0xff]  ;;  %v349_v40 = vld [vmem:[%s2318_s3 + $0x20] sm:$0xff] }
  0x11   : > { %s306_s7 = scalar_select %p305_p6, %s1918_s18, 17  ;;  %1699 = vmatpush3.bf16.msra.mxu1 %v1696_v8  ;;  %v1391_v35 = vld [vmem:[%s2318_s3 + $0x158] sm:$0xff]  ;;  %v1712_v38 = vpack.c.bf16 %v348_v33, %v347_v32  ;;  %v350_v41 = vld [vmem:[%s2318_s3 + $0x28] sm:$0xff]  ;;  %v1392_v42 = vld [vmem:[%s2318_s3 + $0x160] sm:$0xff] }
  0x12   : > { %s2046_s8 = smul.u32 54, %s2333_s19  ;;  %1763 = vmatpush3.bf16.msra.mxu0 %v1760_v12  ;;  %1701 = vmatprep.subr.bf16.mxu1 %v1700_v16  ;;  %v1776_v39 = vpack.c.bf16 %v1391_v35, %v1390_v34  ;;  %v1393_v43 = vld [vmem:[%s2318_s3 + $0x168] sm:$0xff]  ;;  %v1716_v46 = vpack.c.bf16 %v350_v41, %v349_v40  ;;  %v351_v48 = vld [vmem:[%s2318_s3 + $0x30] sm:$0xff]  ;;  %v352_v49 = vld [vmem:[%s2318_s3 + $0x38] sm:$0xff] }
  0x13   : > { %s1852_s9 = smul.u32 3, %s306_s7  ;;  %1765 = vmatprep.subr.bf16.mxu0 %v1764_v17  ;;  %v1780_v47 = vpack.c.bf16 %v1393_v43, %v1392_v42  ;;  %v1394_v50 = vld [vmem:[%s2318_s3 + $0x170] sm:$0xff]  ;;  %v1395_v51 = vld [vmem:[%s2318_s3 + $0x178] sm:$0xff]  ;;  %v1720_v52 = vpack.c.bf16 %v352_v49, %v351_v48  ;;  %v1358_v54 = vld [vmem:[%s2318_s3 + $0x80] sm:$0xff] }
  0x14   : > { %s1854_s28 = smul.u32 3, %s2335_s12  ;;  %v1784_v53 = vpack.c.bf16 %v1395_v51, %v1394_v50  ;;  %v1359_v55 = vld [vmem:[%s2318_s3 + $0x88] sm:$0xff]  ;;  %v1398_v56 = vld [vmem:[%s2318_s3 + $0x180] sm:$0xff]  ;;  %v1360_v60 = vld [vmem:[%s2318_s3 + $0x90] sm:$0xff] }
  0x15   : > { %s309_s26 = sadd.s32 %s2046_s8, %s1852_s9  ;;  %1703 = vmatpush3.bf16.msra.mxu1 %v1700_v16  ;;  %v1399_v57 = vld [vmem:[%s2318_s3 + $0x188] sm:$0xff]  ;;  %v1724_v58 = vpack.c.bf16 %v1359_v55, %v1358_v54  ;;  %v1361_v61 = vld [vmem:[%s2318_s3 + $0x98] sm:$0xff]  ;;  %v1400_v62 = vld [vmem:[%s2318_s3 + $0x190] sm:$0xff]  ;;  %s1344_s9 = sshll.u32 %s2333_s19, 5 }
  0x16   : > { %s1340_s27 = sshll.u32 %s309_s26, 3  ;;  %s319_s12 = sadd.s32 %s1854_s28, %s2046_s8  ;;  %1767 = vmatpush3.bf16.msra.mxu0 %v1764_v17  ;;  %1705 = vmatprep.subr.bf16.mxu1 %v1704_v22  ;;  %v1788_v59 = vpack.c.bf16 %v1399_v57, %v1398_v56  ;;  %v1401_v63 = vld [vmem:[%s2318_s3 + $0x198] sm:$0xff]  ;;  %v1728_v2 = vpack.c.bf16 %v1361_v61, %v1360_v60  ;;  %v1362_v4 = vld [vmem:[%s2318_s3 + $0xa0] sm:$0xff]  ;;  %v1363_v5 = vld [vmem:[%s2318_s3 + $0xa8] sm:$0xff] }
  0x17   : > { %s2064_s6 = scalar_lea.vmem %s2315_s0, %s1340_s27  ;;  %s1341_s13 = sshll.u32 %s319_s12, 3  ;;  %1769 = vmatprep.subr.bf16.mxu0 %v1768_v23  ;;  %v1792_v3 = vpack.c.bf16 %v1401_v63, %v1400_v62  ;;  %v1402_v6 = vld [vmem:[%s2318_s3 + $0x1a0] sm:$0xff]  ;;  %v1403_v7 = vld [vmem:[%s2318_s3 + $0x1a8] sm:$0xff]  ;;  %v1732_v10 = vpack.c.bf16 %v1363_v5, %v1362_v4  ;;  %v1364_v12 = vld [vmem:[%s2318_s3 + $0xb0] sm:$0xff] }
  0x18   : > { %v353_v24 = vld [vmem:[%s2064_s6 + $0x1] sm:$0xff]  ;;  %s2084_s27 = scalar_lea.vmem %s2316_s1, %s1341_s13  ;;  %s323_s28 = sadd.s32 2, %s1918_s18  ;;  %v354_v36 = vld [vmem:[%s2064_s6 + $0x9] sm:$0xff]  ;;  %v1796_v11 = vpack.c.bf16 %v1403_v7, %v1402_v6  ;;  %v1365_v13 = vld [vmem:[%s2318_s3 + $0xb8] sm:$0xff] }
  0x19   : > { %1537 = vmatprep.mubr.msk.f32.mxu1 %vm364_vm0, %v353_v24  ;;  %v715_v30 = vld [vmem:[%s2084_s27 + $0x1] sm:$0xff]  ;;  %p2101_p8 = scmp.lt.s32.totalorder %s323_s28, 17  ;;  %1707 = vmatpush3.bf16.msra.mxu1 %v1704_v22  ;;  %v716_v37 = vld [vmem:[%s2084_s27 + $0x9] sm:$0xff]  ;;  %v1405_v15 = vld [vmem:[%s2318_s3 + $0x1b8] sm:$0xff]  ;;  %v1736_v16 = vpack.c.bf16 %v1365_v13, %v1364_v12  ;;  %s2339_s18 = smov (!%p336_p9, %s1918_s18), 15 }
  0x1a   : > { %1613 = vmatprep.mubr.msk.f32.mxu0 %vm364_vm0, %v715_v30  ;;  %1771 = vmatpush3.bf16.msra.mxu0 %v1768_v23  ;;  %v343_v44 = vld [vmem:[%s2064_s6] sm:$0xff]  ;;  %v344_v0 = vld [vmem:[%s2064_s6 + $0x8] sm:$0xff]  ;;  %v1404_v14 = vld [vmem:[%s2318_s3 + $0x1b0] sm:$0xff] }
  0x1b   : > { %1709 = vmatprep.subr.bf16.mxu1 %v1708_v29  ;;  %1773 = vmatprep.subr.bf16.mxu0 %v1772_v31  ;;  %s2337_s28 = smov (!%p2101_p8, %s323_s28), 17  ;;  %v809_v45 = vld [vmem:[%s2084_s27 + $0x2] sm:$0xff]  ;;  %v810_v1 = vld [vmem:[%s2084_s27 + $0xa] sm:$0xff]  ;;  %v1800_v17 = vpack.c.bf16 %v1405_v15, %v1404_v14  ;;  %v1371_v25 = vld [vmem:[%s2318_s3 + $0xd8] sm:$0xff] }
  0x1c   : > { %1538 = vmatmul.mubr.msk.f32.vlgmr.msra.gmra.mrb[0].mxu1 %vm364_vm0, %v354_v36  ;;  %s1855_s17 = smul.u32 3, %s2337_s28  ;;  %v527_v8 = vld [vmem:[%s2064_s6 + $0x2] sm:$0xff]  ;;  %v1370_v24 = vld [vmem:[%s2318_s3 + $0xd0] sm:$0xff]  ;;  %v1411_v27 = vld [vmem:[%s2318_s3 + $0x1d8] sm:$0xff]  ;;  %s1343_s28 = sshll.u32 %s2339_s18, 1 }
  0x1d   : > { %1711 = vmatpush3.bf16.msra.mxu1 %v1708_v29  ;;  %1614 = vmatmul.mubr.msk.f32.vlgmr.msra.gmra.mrb[0].mxu0 %vm364_vm0, %v716_v37  ;;  %v1368_v18 = vld [vmem:[%s2318_s3 + $0xc0] sm:$0xff]  ;;  %v1369_v19 = vld [vmem:[%s2318_s3 + $0xc8] sm:$0xff]  ;;  %v1410_v26 = vld [vmem:[%s2318_s3 + $0x1d0] sm:$0xff]  ;;  %v1744_v30 = vpack.c.bf16 %v1371_v25, %v1370_v24 }
  0x1e   : > { %1775 = vmatpush3.bf16.msra.mxu0 %v1772_v31  ;;  %1713 = vmatprep.subr.bf16.mxu1 %v1712_v38  ;;  %s330_s11 = sadd.s32 %s1855_s17, %s2046_s8  ;;  %v1408_v20 = vld [vmem:[%s2318_s3 + $0x1c0] sm:$0xff]  ;;  %v1409_v21 = vld [vmem:[%s2318_s3 + $0x1c8] sm:$0xff]  ;;  %v1740_v22 = vpack.c.bf16 %v1369_v19, %v1368_v18  ;;  %v1808_v31 = vpack.c.bf16 %v1411_v27, %v1410_v26  ;;  %v1374_v40 = vld [vmem:[%s2318_s3 + $0xf0] sm:$0xff] }
  0x1f   : > { %1777 = vmatprep.subr.bf16.mxu0 %v1776_v39  ;;  %1556 = vmatprep.mubr.msk.f32.mxu1 %vm364_vm0, %v343_v44  ;;  %s1342_s16 = sshll.u32 %s330_s11, 3  ;;  %v1804_v23 = vpack.c.bf16 %v1409_v21, %v1408_v20  ;;  %v528_v28 = vld [vmem:[%s2064_s6 + $0xa] sm:$0xff]  ;;  %v1372_v32 = vld [vmem:[%s2318_s3 + $0xe0] sm:$0xff]  ;;  %v1375_v41 = vld [vmem:[%s2318_s3 + $0xf8] sm:$0xff]  ;;  %s340_s11 = sadd.s32 %s1344_s9, %s1343_s28 }
  0x20   : > { %1632 = vmatprep.mubr.msk.f32.mxu0 %vm364_vm0, %v809_v45  ;;  %s2169_s7 = scalar_lea.vmem %s2317_s2, %s1342_s16  ;;  %v1373_v33 = vld [vmem:[%s2318_s3 + $0xe8] sm:$0xff]  ;;  %v1412_v34 = vld [vmem:[%s2318_s3 + $0x1e0] sm:$0xff]  ;;  %v1414_v42 = vld [vmem:[%s2318_s3 + $0x1f0] sm:$0xff]  ;;  %v1752_v44 = vpack.c.bf16 %v1375_v41, %v1374_v40  ;;  %s1345_s14 = sshll.u32 %s340_s11, 3 }
  0x21   : > { %1715 = vmatpush3.bf16.msra.mxu1 %v1712_v38  ;;  %v903_v9 = vld [vmem:[%s2169_s7] sm:$0xff]  ;;  %v904_v29 = vld [vmem:[%s2169_s7 + $0x8] sm:$0xff]  ;;  %v1748_v38 = vpack.c.bf16 %v1373_v33, %v1372_v32  ;;  %v1415_v43 = vld [vmem:[%s2318_s3 + $0x1f8] sm:$0xff]  ;;  %s342_s6 = scalar_lea.vmem %s2320_s5, %s1345_s14 }
  0x22   : > { %1779 = vmatpush3.bf16.msra.mxu0 %v1776_v39  ;;  %1717 = vmatprep.subr.bf16.mxu1 %v1716_v46  ;;  %v1413_v35 = vld [vmem:[%s2318_s3 + $0x1e8] sm:$0xff]  ;;  %v621_v36 = vld [vmem:[%s2084_s27] sm:$0xff]  ;;  %v1816_v45 = vpack.c.bf16 %v1415_v43, %v1414_v42  ;;  %v1420_v49 = vld [vmem:[%s2318_s3 + $0x210] sm:$0xff] }
  0x23   : > { %1781 = vmatprep.subr.bf16.mxu0 %v1780_v47  ;;  %v997_v37 = vld [vmem:[%s2169_s7 + $0x1] sm:$0xff]  ;;  %v1812_v39 = vpack.c.bf16 %v1413_v35, %v1412_v34  ;;  %v1421_v50 = vld [vmem:[%s2318_s3 + $0x218] sm:$0xff]  ;;  %v1092_v61 = vld [vmem:[%s2169_s7 + $0xa] sm:$0xff] }
  0x24   : > { %v622_v51 = vld [vmem:[%s2084_s27 + $0x8] sm:$0xff]  ;;  %v1422_v55 = vld [vmem:[%s2318_s3 + $0x220] sm:$0xff] }
  0x25   : > { %1719 = vmatpush3.bf16.msra.mxu1 %v1716_v46  ;;  %v1418_v46 = vld [vmem:[%s2318_s3 + $0x200] sm:$0xff]  ;;  %v1423_v56 = vld [vmem:[%s2318_s3 + $0x228] sm:$0xff] }
  0x26   : > { %1783 = vmatpush3.bf16.msra.mxu0 %v1780_v47  ;;  %1721 = vmatprep.subr.bf16.mxu1 %v1720_v52  ;;  %v1419_v47 = vld [vmem:[%s2318_s3 + $0x208] sm:$0xff]  ;;  %v1828_v57 = vpack.c.bf16 %v1423_v56, %v1422_v55 }
  0x27   : > { %1785 = vmatprep.subr.bf16.mxu0 %v1784_v53  ;;  %v1820_v48 = vpack.c.bf16 %v1419_v47, %v1418_v46  ;;  %v1091_v54 = vld [vmem:[%s2169_s7 + $0x2] sm:$0xff] }
  0x29   : > { %1723 = vmatpush3.bf16.msra.mxu1 %v1720_v52  ;;  %v998_v52 = vld [vmem:[%s2169_s7 + $0x9] sm:$0xff] }
  0x2a   : > { %1787 = vmatpush3.bf16.msra.mxu0 %v1784_v53  ;;  %1725 = vmatprep.subr.bf16.mxu1 %v1724_v58  ;;  %v1824_v53 = vpack.c.bf16 %v1421_v50, %v1420_v49 }
  0x2b   : > { %1789 = vmatprep.subr.bf16.mxu0 %v1788_v59 }
  0x2c   : > { %1557 = vmatmul.mubr.msk.f32.vlgmr.msra.gmra.mrb[0].mxu1 %vm364_vm0, %v344_v0 }
  0x2d   : > { %1727 = vmatpush3.bf16.msra.mxu1 %v1724_v58  ;;  %1633 = vmatmul.mubr.msk.f32.vlgmr.msra.gmra.mrb[0].mxu0 %vm364_vm0, %v810_v1  ;;  %v1424_v58 = vld [vmem:[%s2318_s3 + $0x230] sm:$0xff]  ;;  %v1428_v1 = vld [vmem:[%s2319_s4] ss:$0 sm:$0xff] }
  0x2e   : > { %1791 = vmatpush3.bf16.msra.mxu0 %v1788_v59  ;;  %1729 = vmatprep.subr.bf16.mxu1 %v1728_v2  ;;  %v1425_v59 = vld [vmem:[%s2318_s3 + $0x238] sm:$0xff] }
  0x2f   : > { %1793 = vmatprep.subr.bf16.mxu0 %v1792_v3  ;;  %1575 = vmatprep.mubr.msk.f32.mxu1 %vm364_vm0, %v527_v8  ;;  %v1832_v60 = vpack.c.bf16 %v1425_v59, %v1424_v58 }
  0x30   : > { %1651 = vmatprep.mubr.msk.f32.mxu0 %vm364_vm0, %v903_v9 }
  0x31   : > { %1731 = vmatpush3.bf16.msra.mxu1 %v1728_v2 }
  0x32   : > { %1795 = vmatpush3.bf16.msra.mxu0 %v1792_v3  ;;  %1733 = vmatprep.subr.bf16.mxu1 %v1732_v10 }
  0x33   : > { %1797 = vmatprep.subr.bf16.mxu0 %v1796_v11 }
  0x35   : > { %1735 = vmatpush3.bf16.msra.mxu1 %v1732_v10 }
  0x36   : > { %1799 = vmatpush3.bf16.msra.mxu0 %v1796_v11  ;;  %1737 = vmatprep.subr.bf16.mxu1 %v1736_v16 }
  0x37   : > { %1801 = vmatprep.subr.bf16.mxu0 %v1800_v17 }
  0x39   : > { %1739 = vmatpush3.bf16.msra.mxu1 %v1736_v16 }
  0x3a   : > { %1803 = vmatpush3.bf16.msra.mxu0 %v1800_v17  ;;  %1741 = vmatprep.subr.bf16.mxu1 %v1740_v22 }
  0x3b   : > { %1805 = vmatprep.subr.bf16.mxu0 %v1804_v23 }
  0x3c   : > { %1576 = vmatmul.mubr.msk.f32.vlgmr.msra.gmra.mrb[0].mxu1 %vm364_vm0, %v528_v28 }
  0x3d   : > { %1743 = vmatpush3.bf16.msra.mxu1 %v1740_v22  ;;  %1652 = vmatmul.mubr.msk.f32.vlgmr.msra.gmra.mrb[0].mxu0 %vm364_vm0, %v904_v29 }
  0x3e   : > { %1807 = vmatpush3.bf16.msra.mxu0 %v1804_v23  ;;  %1745 = vmatprep.subr.bf16.mxu1 %v1744_v30 }
  0x3f   : > { %1809 = vmatprep.subr.bf16.mxu0 %v1808_v31  ;;  %1594 = vmatprep.mubr.msk.f32.mxu1 %vm364_vm0, %v621_v36 }
  0x40   : > { %1670 = vmatprep.mubr.msk.f32.mxu0 %vm364_vm0, %v997_v37 }
  0x41   : > { %1747 = vmatpush3.bf16.msra.mxu1 %v1744_v30 }
  0x42   : > { %1811 = vmatpush3.bf16.msra.mxu0 %v1808_v31  ;;  %1749 = vmatprep.subr.bf16.mxu1 %v1748_v38 }
  0x43   : > { %1813 = vmatprep.subr.bf16.mxu0 %v1812_v39 }
  0x45   : > { %1751 = vmatpush3.bf16.msra.mxu1 %v1748_v38 }
  0x46   : > { %1815 = vmatpush3.bf16.msra.mxu0 %v1812_v39  ;;  %1753 = vmatprep.subr.bf16.mxu1 %v1752_v44 }
  0x47   : > { %1817 = vmatprep.subr.bf16.mxu0 %v1816_v45 }
  0x49   : > { %1755 = vmatpush3.bf16.msra.mxu1 %v1752_v44 }
  0x4a   : > { %1819 = vmatpush3.bf16.msra.mxu0 %v1816_v45 }
  0x4b   : > { %1821 = vmatprep.subr.bf16.mxu0 %v1820_v48 }
  0x4c   : > { %1595 = vmatmul.mubr.msk.f32.vlgmr.msra.gmra.mrb[0].mxu1 %vm364_vm0, %v622_v51 }
  0x4d   : > { %1671 = vmatmul.mubr.msk.f32.vlgmr.msra.gmra.mrb[0].mxu0 %vm364_vm0, %v998_v52 }
  0x4e   : > { %1823 = vmatpush3.bf16.msra.mxu0 %v1820_v48  ;;  %1689 = vmatprep.mubr.msk.f32.mxu0 %vm364_vm0, %v1091_v54 }
  0x4f   : > { %1825 = vmatprep.subr.bf16.mxu0 %v1824_v53 }
  0x52   : > { %1827 = vmatpush3.bf16.msra.mxu0 %v1824_v53 }
  0x53   : > { %1829 = vmatprep.subr.bf16.mxu0 %v1828_v57 }
  0x56   : > { %1831 = vmatpush3.bf16.msra.mxu0 %v1828_v57 }
  0x57   : > { %1833 = vmatprep.subr.bf16.mxu0 %v1832_v60 }
  0x5a   : > { %1835 = vmatpush3.bf16.msra.mxu0 %v1832_v60 }
  0x5d   : > { %1690 = vmatmul.mubr.msk.f32.vlgmr.msra.gmra.mrb[0].mxu0 %vm364_vm0, %v1092_v61 }
 0x11f   : > { %v1596_v62 = vpop.f32.mrb[0].mxu1 }
 0x120   : > { %v704_v63 = vpop.f32.mrb[1].mxu1 }
 0x130   : > { %v1691_v0 = vpop.f32.mrb[0].mxu0 }
 0x131   : > { %v1836_v2 = vadd.f32 %v1691_v0, %v1596_v62  ;;  %v1174_v3 = vpop.f32.mrb[1].mxu0 }
 0x132   : > { %v1837_v4 = vadd.f32 %v1174_v3, %v704_v63 }
 0x133   : > { %v1193_v5 = vadd.f32 %v1836_v2, %v1428_v1 }
 0x134   : > { %v1192_v6 = vadd.f32 %v1837_v4, %v1428_v1 }
 0x135   : > { %v1195_v7 = vmax.f32 %v1193_v5, 0.0 }
 0x136   : > { %v1194_v8 = vmax.f32 %v1192_v6, 0.0 }
 0x137   : > { %1197 = vst.msk [vmem:[%s342_s6 + $0x8] sm:$0xff] %vm364_vm0, %v1195_v7 }
 0x138   : > { %1196 = vst.msk [vmem:[%s342_s6] sm:$0xff] %vm364_vm0, %v1194_v8 }
 0x139 PF: > { %s15_s22 = sadd.s32 1, %s1934_s22   ;;  %s2322_s18 = smov %s1926_s20 }
 0x13a   : > { %p12_p10 = scmp.ge.s32.totalorder %s15_s22, 34   ;;  %s2323_s19 = smov %s1930_s21 }
 0x13b   : > { %s2324_s20 = smov %s2327_s23  ;;  %s2325_s21 = smov %s2331_s24 }
 0x13c   :  { %14 = sbr.rel (!%p12_p10) target bundleno = 3 (0x3), region = 84 }

// kernel: fixed_deblur_generator.23
= control target key start
LH: loop header
LB: loop body
LE: loop exit
PB: predicated region body
PF: predicated region fallthrough
CT: control target
= control target key end

     0   :  { %s1971_s18 = smov 0   ;;  %s1973_s19 = smov 0   ;;  %s2321_s0 = inlined_call_operand.vmem [shape: f32[2,18,18,64], index: 0, kind: input, shape index: {}, may-alias: {0,1,2}]   ;;  %s2322_s1 = inlined_call_operand.vmem [shape: f32[2,18,18,64], index: 1, kind: input, shape index: {}, may-alias: {0,1,2}]   ;;  %s2323_s2 = inlined_call_operand.vmem [shape: f32[2,18,18,64], index: 2, kind: input, shape index: {}, may-alias: {0,1,2}]   ;;  %s2324_s3 = inlined_call_operand.vmem [shape: f32[9,64,3], index: 3, kind: input, shape index: {}]   ;;  %s2325_s4 = inlined_call_operand.vmem [shape: f32[1,3], index: 4, kind: input, shape index: {}]   ;;  %s2326_s5 = inlined_call_operand.vmem [shape: f32[2,16,16,3], index: 5, kind: output, shape index: {}]  }
   0x1   :  { %s1975_s20 = smov 0   ;;  %s1977_s21 = smov 0  }
   0x2   :  { %s1979_s22 = smov 0  }
   0x3 LB: > { %s24_s23 = sadd.s32 1, %s1931_s20  ;;  %s27_s24 = sadd.s32 1, %s1935_s21  ;;  %s1939_s22 = sphi %s1979_s22, %s15_s22   ;;  %s1935_s21 = sphi %s1977_s21, %s2331_s21   ;;  %s1931_s20 = sphi %s1975_s20, %s2330_s20   ;;  %s1927_s19 = sphi %s1973_s19, %s2329_s19   ;;  %s1923_s18 = sphi %s1971_s18, %s2328_s18  }
   0x4   : > { %p25_p0 = scmp.ge.s32.totalorder %s24_s23, 16  ;;  %p1340_p1 = scmp.ge.s32.totalorder %s1939_s22, 1 }
   0x5   : > { %p247_p2 = scmp.lt.s32.totalorder %s1939_s22, 33 }
   0x6   : > { %s2333_s23 = smov (%p25_p0, %s24_s23), 0  ;;  %s2335_s24 = smov (!%p25_p0, %s27_s24), %s1935_s21 }
   0x7   : > { %p248_p3 = pnand %p1340_p1, %p247_p2  ;;  %p29_p4 = scmp.ge.s32.totalorder %s2335_s24, 2 }
   0x8   : > { %v1347_v0 = vld [vmem:[%s2324_s3 + $0x40] sm:$0xff] (!%p248_p3)  ;;  %v1348_v1 = vld [vmem:[%s2324_s3 + $0x48] sm:$0xff] (!%p248_p3)  ;;  %p303_p5 = scmp.lt.s32.totalorder (!%p248_p3), %s1927_s19, 1  ;;  %p305_p6 = scmp.lt.s32.totalorder (!%p248_p3), %s1923_s18, 17  ;;  %v1349_v5 = vld [vmem:[%s2324_s3 + $0x50] sm:$0xff] (!%p248_p3)  ;;  %vm364_vm0 = vcmask (!%p248_p3), 523264  }
   0x9   : > { %s2337_s24 = smov (%p29_p4, %s2335_s24), 0  ;;  %251 = sbr.rel (%p248_p3) target bundleno = 323 (0x143), region = 40 }
   0xa   : > { %v1379_v2 = vld [vmem:[%s2324_s3 + $0x100] sm:$0xff] (!%p248_p3)  ;;  %v1693_v3 = vpack.c.bf16 (!%p248_p3), %v1348_v1, %v1347_v0  ;;  %v1380_v4 = vld [vmem:[%s2324_s3 + $0x108] sm:$0xff] (!%p248_p3)  ;;  %v1350_v6 = vld [vmem:[%s2324_s3 + $0x58] sm:$0xff] (!%p248_p3)  ;;  %s312_s8 = sadd.s32 (!%p248_p3), 1, %s1923_s18  ;;  %s323_s28 = sadd.s32 (!%p248_p3), 2, %s1923_s18  ;;  %vm1196_vm1 = vcmask (!%p248_p3), 23552  }
   0xb   : > { %v1757_v7 = vpack.c.bf16 (!%p248_p3), %v1380_v4, %v1379_v2  ;;  %v1697_v8 = vpack.c.bf16 (!%p248_p3), %v1350_v6, %v1349_v5  ;;  %v1381_v9 = vld [vmem:[%s2324_s3 + $0x110] sm:$0xff] (!%p248_p3)  ;;  %v1382_v10 = vld [vmem:[%s2324_s3 + $0x118] sm:$0xff] (!%p248_p3)  ;;  %v1351_v11 = vld [vmem:[%s2324_s3 + $0x60] sm:$0xff] (!%p248_p3)  ;;  %p2064_p7 = scmp.lt.s32.totalorder (!%p248_p3), %s312_s8, 17  ;;  %p326_p8 = scmp.lt.s32.totalorder (!%p248_p3), %s323_s28, 17 }
   0xc   : > { %1694 = vmatprep.subr.bf16.mxu1 (!%p248_p3), %v1693_v3  ;;  %v1761_v12 = vpack.c.bf16 (!%p248_p3), %v1382_v10, %v1381_v9  ;;  %v1352_v13 = vld [vmem:[%s2324_s3 + $0x68] sm:$0xff] (!%p248_p3)  ;;  %v1383_v14 = vld [vmem:[%s2324_s3 + $0x120] sm:$0xff] (!%p248_p3)  ;;  %v1353_v18 = vld [vmem:[%s2324_s3 + $0x70] sm:$0xff] (!%p248_p3)  ;;  %p336_p9 = scmp.lt.s32.totalorder (!%p248_p3), %s1923_s18, 15 }
   0xd   : > { %v1384_v15 = vld [vmem:[%s2324_s3 + $0x128] sm:$0xff] (!%p248_p3)  ;;  %1758 = vmatprep.subr.bf16.mxu0 (!%p248_p3), %v1757_v7  ;;  %1696 = vmatpush3.bf16.msra.mxu1 (!%p248_p3), %v1693_v3  ;;  %v1701_v16 = vpack.c.bf16 (!%p248_p3), %v1352_v13, %v1351_v11  ;;  %v1354_v19 = vld [vmem:[%s2324_s3 + $0x78] sm:$0xff] (!%p248_p3)  ;;  %v1385_v20 = vld [vmem:[%s2324_s3 + $0x130] sm:$0xff] (!%p248_p3) }
   0xe   : > { %1760 = vmatpush3.bf16.msra.mxu0 (!%p248_p3), %v1757_v7  ;;  %1698 = vmatprep.subr.bf16.mxu1 (!%p248_p3), %v1697_v8  ;;  %v1765_v17 = vpack.c.bf16 (!%p248_p3), %v1384_v15, %v1383_v14  ;;  %v1386_v21 = vld [vmem:[%s2324_s3 + $0x138] sm:$0xff] (!%p248_p3)  ;;  %v1705_v22 = vpack.c.bf16 (!%p248_p3), %v1354_v19, %v1353_v18  ;;  %v345_v25 = vld [vmem:[%s2324_s3] sm:$0xff] (!%p248_p3)  ;;  %v346_v26 = vld [vmem:[%s2324_s3 + $0x8] sm:$0xff] (!%p248_p3) }
   0xf   : > { %1762 = vmatprep.subr.bf16.mxu0 (!%p248_p3), %v1761_v12  ;;  %v1769_v23 = vpack.c.bf16 (!%p248_p3), %v1386_v21, %v1385_v20  ;;  %v1389_v27 = vld [vmem:[%s2324_s3 + $0x140] sm:$0xff] (!%p248_p3)  ;;  %v1390_v28 = vld [vmem:[%s2324_s3 + $0x148] sm:$0xff] (!%p248_p3)  ;;  %v1709_v29 = vpack.c.bf16 (!%p248_p3), %v346_v26, %v345_v25  ;;  %v347_v31 = vld [vmem:[%s2324_s3 + $0x10] sm:$0xff] (!%p248_p3) }
  0x10   : > { %s2339_s19 = smov (!%p303_p5, %s1927_s19), 1  ;;  %s2341_s8 = smov (!%p2064_p7, %s312_s8), 17  ;;  %v1773_v30 = vpack.c.bf16 %v1390_v28, %v1389_v27  ;;  %v348_v32 = vld [vmem:[%s2324_s3 + $0x18] sm:$0xff]  ;;  %v1391_v34 = vld [vmem:[%s2324_s3 + $0x150] sm:$0xff]  ;;  %v349_v37 = vld [vmem:[%s2324_s3 + $0x20] sm:$0xff] }
  0x11   : > { %s306_s6 = scalar_select %p305_p6, %s1923_s18, 17  ;;  %1700 = vmatpush3.bf16.msra.mxu1 %v1697_v8  ;;  %v1392_v35 = vld [vmem:[%s2324_s3 + $0x158] sm:$0xff]  ;;  %v1713_v36 = vpack.c.bf16 %v348_v32, %v347_v31  ;;  %v350_v38 = vld [vmem:[%s2324_s3 + $0x28] sm:$0xff]  ;;  %v1393_v43 = vld [vmem:[%s2324_s3 + $0x160] sm:$0xff] }
  0x12   : > { %s2046_s7 = smul.u32 54, %s2339_s19  ;;  %1764 = vmatpush3.bf16.msra.mxu0 %v1761_v12  ;;  %1702 = vmatprep.subr.bf16.mxu1 %v1701_v16  ;;  %s2343_s28 = smov (!%p326_p8, %s323_s28), 17  ;;  %v1777_v41 = vpack.c.bf16 %v1392_v35, %v1391_v34  ;;  %v1394_v44 = vld [vmem:[%s2324_s3 + $0x168] sm:$0xff]  ;;  %v1717_v46 = vpack.c.bf16 %v350_v38, %v349_v37  ;;  %v351_v47 = vld [vmem:[%s2324_s3 + $0x30] sm:$0xff]  ;;  %v352_v48 = vld [vmem:[%s2324_s3 + $0x38] sm:$0xff] }
  0x13   : > { %s1853_s9 = smul.u32 3, %s306_s6  ;;  %1766 = vmatprep.subr.bf16.mxu0 %v1765_v17  ;;  %v1781_v49 = vpack.c.bf16 %v1394_v44, %v1393_v43  ;;  %v1395_v50 = vld [vmem:[%s2324_s3 + $0x170] sm:$0xff]  ;;  %v1396_v51 = vld [vmem:[%s2324_s3 + $0x178] sm:$0xff]  ;;  %v1721_v52 = vpack.c.bf16 %v352_v48, %v351_v47  ;;  %v1359_v53 = vld [vmem:[%s2324_s3 + $0x80] sm:$0xff]  ;;  %s2345_s18 = smov (!%p336_p9, %s1923_s18), 15 }
  0x14   : > { %s1855_s17 = smul.u32 3, %s2341_s8  ;;  %v1360_v54 = vld [vmem:[%s2324_s3 + $0x88] sm:$0xff]  ;;  %v1785_v55 = vpack.c.bf16 %v1396_v51, %v1395_v50  ;;  %v1399_v56 = vld [vmem:[%s2324_s3 + $0x180] sm:$0xff]  ;;  %v1361_v59 = vld [vmem:[%s2324_s3 + $0x90] sm:$0xff]  ;;  %s1344_s11 = sshll.u32 %s2345_s18, 1 }
  0x15   : > { %s309_s25 = sadd.s32 %s2046_s7, %s1853_s9  ;;  %1704 = vmatpush3.bf16.msra.mxu1 %v1701_v16  ;;  %s1856_s13 = smul.u32 3, %s2343_s28  ;;  %v1400_v57 = vld [vmem:[%s2324_s3 + $0x188] sm:$0xff]  ;;  %v1725_v58 = vpack.c.bf16 %v1360_v54, %v1359_v53  ;;  %v1362_v60 = vld [vmem:[%s2324_s3 + $0x98] sm:$0xff]  ;;  %v1401_v63 = vld [vmem:[%s2324_s3 + $0x190] sm:$0xff] }
  0x16   : > { %s1341_s27 = sshll.u32 %s309_s25, 3  ;;  %1768 = vmatpush3.bf16.msra.mxu0 %v1765_v17  ;;  %1706 = vmatprep.subr.bf16.mxu1 %v1705_v22  ;;  %s319_s9 = sadd.s32 %s1855_s17, %s2046_s7  ;;  %v1789_v61 = vpack.c.bf16 %v1400_v57, %v1399_v56  ;;  %v1402_v0 = vld [vmem:[%s2324_s3 + $0x198] sm:$0xff]  ;;  %v1729_v1 = vpack.c.bf16 %v1362_v60, %v1361_v59  ;;  %v1363_v4 = vld [vmem:[%s2324_s3 + $0xa0] sm:$0xff]  ;;  %v1364_v5 = vld [vmem:[%s2324_s3 + $0xa8] sm:$0xff] }
  0x17   : > { %s2072_s6 = scalar_lea.vmem %s2321_s0, %s1341_s27  ;;  %1770 = vmatprep.subr.bf16.mxu0 %v1769_v23  ;;  %s1342_s12 = sshll.u32 %s319_s9, 3  ;;  %v1793_v6 = vpack.c.bf16 %v1402_v0, %v1401_v63  ;;  %v1403_v8 = vld [vmem:[%s2324_s3 + $0x1a0] sm:$0xff]  ;;  %v1404_v9 = vld [vmem:[%s2324_s3 + $0x1a8] sm:$0xff]  ;;  %v1733_v10 = vpack.c.bf16 %v1364_v5, %v1363_v4  ;;  %v1365_v11 = vld [vmem:[%s2324_s3 + $0xb0] sm:$0xff] }
  0x18   : > { %v353_v24 = vld [vmem:[%s2072_s6 + $0x1] sm:$0xff]  ;;  %v354_v33 = vld [vmem:[%s2072_s6 + $0x9] sm:$0xff]  ;;  %s2111_s15 = scalar_lea.vmem %s2322_s1, %s1342_s12  ;;  %s330_s9 = sadd.s32 %s1856_s13, %s2046_s7  ;;  %v1366_v12 = vld [vmem:[%s2324_s3 + $0xb8] sm:$0xff]  ;;  %v1797_v13 = vpack.c.bf16 %v1404_v9, %v1403_v8 }
  0x19   : > { %1538 = vmatprep.mubr.msk.f32.mxu1 %vm364_vm0, %v353_v24  ;;  %1708 = vmatpush3.bf16.msra.mxu1 %v1705_v22  ;;  %v715_v39 = vld [vmem:[%s2111_s15 + $0x1] sm:$0xff]  ;;  %v716_v40 = vld [vmem:[%s2111_s15 + $0x9] sm:$0xff]  ;;  %s1343_s12 = sshll.u32 %s330_s9, 3  ;;  %v1406_v15 = vld [vmem:[%s2324_s3 + $0x1b8] sm:$0xff]  ;;  %v1737_v16 = vpack.c.bf16 %v1366_v12, %v1365_v11 }
  0x1a   : > { %1772 = vmatpush3.bf16.msra.mxu0 %v1769_v23  ;;  %1710 = vmatprep.subr.bf16.mxu1 %v1709_v29  ;;  %v343_v42 = vld [vmem:[%s2072_s6] sm:$0xff]  ;;  %v344_v62 = vld [vmem:[%s2072_s6 + $0x8] sm:$0xff]  ;;  %s2176_s9 = scalar_lea.vmem %s2323_s2, %s1343_s12  ;;  %v1405_v14 = vld [vmem:[%s2324_s3 + $0x1b0] sm:$0xff]  ;;  %s1345_s12 = sshll.u32 %s2339_s19, 5 }
  0x1b   : > { %1774 = vmatprep.subr.bf16.mxu0 %v1773_v30  ;;  %1614 = vmatprep.mubr.msk.f32.mxu0 %vm364_vm0, %v715_v39  ;;  %v809_v45 = vld [vmem:[%s2111_s15 + $0x2] sm:$0xff]  ;;  %v810_v3 = vld [vmem:[%s2111_s15 + $0xa] sm:$0xff]  ;;  %v1801_v19 = vpack.c.bf16 %v1406_v15, %v1405_v14  ;;  %v1372_v24 = vld [vmem:[%s2324_s3 + $0xd8] sm:$0xff] }
  0x1c   : > { %1539 = vmatmul.mubr.msk.f32.vlgmr.msra.gmra.mrb[0].mxu1 %vm364_vm0, %v354_v33  ;;  %v527_v2 = vld [vmem:[%s2072_s6 + $0x2] sm:$0xff]  ;;  %v1371_v23 = vld [vmem:[%s2324_s3 + $0xd0] sm:$0xff]  ;;  %v1412_v28 = vld [vmem:[%s2324_s3 + $0x1d8] sm:$0xff] }
  0x1d   : > { %1712 = vmatpush3.bf16.msra.mxu1 %v1709_v29  ;;  %1615 = vmatmul.mubr.msk.f32.vlgmr.msra.gmra.mrb[0].mxu0 %vm364_vm0, %v716_v40  ;;  %v903_v7 = vld [vmem:[%s2176_s9] sm:$0xff]  ;;  %v1370_v18 = vld [vmem:[%s2324_s3 + $0xc8] sm:$0xff]  ;;  %v1411_v27 = vld [vmem:[%s2324_s3 + $0x1d0] sm:$0xff]  ;;  %v1745_v29 = vpack.c.bf16 %v1372_v24, %v1371_v23 }
  0x1e   : > { %1714 = vmatprep.subr.bf16.mxu1 %v1713_v36  ;;  %1776 = vmatpush3.bf16.msra.mxu0 %v1773_v30  ;;  %v1369_v17 = vld [vmem:[%s2324_s3 + $0xc0] sm:$0xff]  ;;  %v1410_v21 = vld [vmem:[%s2324_s3 + $0x1c8] sm:$0xff]  ;;  %v1809_v34 = vpack.c.bf16 %v1412_v28, %v1411_v27  ;;  %v1375_v39 = vld [vmem:[%s2324_s3 + $0xf0] sm:$0xff] }
  0x1f   : > { %1557 = vmatprep.mubr.msk.f32.mxu1 %vm364_vm0, %v343_v42  ;;  %1778 = vmatprep.subr.bf16.mxu0 %v1777_v41  ;;  %v1409_v20 = vld [vmem:[%s2324_s3 + $0x1c0] sm:$0xff]  ;;  %v1741_v22 = vpack.c.bf16 %v1370_v18, %v1369_v17  ;;  %v528_v26 = vld [vmem:[%s2072_s6 + $0xa] sm:$0xff]  ;;  %v1376_v40 = vld [vmem:[%s2324_s3 + $0xf8] sm:$0xff] }
  0x20   : > { %1633 = vmatprep.mubr.msk.f32.mxu0 %vm364_vm0, %v809_v45  ;;  %v1805_v25 = vpack.c.bf16 %v1410_v21, %v1409_v20  ;;  %v621_v30 = vld [vmem:[%s2111_s15] sm:$0xff]  ;;  %v904_v31 = vld [vmem:[%s2176_s9 + $0x8] sm:$0xff]  ;;  %v1415_v42 = vld [vmem:[%s2324_s3 + $0x1f0] sm:$0xff]  ;;  %v1753_v44 = vpack.c.bf16 %v1376_v40, %v1375_v39 }
  0x21   : > { %1716 = vmatpush3.bf16.msra.mxu1 %v1713_v36  ;;  %v1373_v32 = vld [vmem:[%s2324_s3 + $0xe0] sm:$0xff]  ;;  %v1374_v33 = vld [vmem:[%s2324_s3 + $0xe8] sm:$0xff]  ;;  %v1416_v43 = vld [vmem:[%s2324_s3 + $0x1f8] sm:$0xff] }
  0x22   : > { %1718 = vmatprep.subr.bf16.mxu1 %v1717_v46  ;;  %1780 = vmatpush3.bf16.msra.mxu0 %v1777_v41  ;;  %v997_v35 = vld [vmem:[%s2176_s9 + $0x1] sm:$0xff]  ;;  %v1749_v38 = vpack.c.bf16 %v1374_v33, %v1373_v32  ;;  %v1817_v45 = vpack.c.bf16 %v1416_v43, %v1415_v42  ;;  %v1421_v50 = vld [vmem:[%s2324_s3 + $0x210] sm:$0xff]  ;;  %v1422_v51 = vld [vmem:[%s2324_s3 + $0x218] sm:$0xff] }
  0x23   : > { %1782 = vmatprep.subr.bf16.mxu0 %v1781_v49  ;;  %v1413_v36 = vld [vmem:[%s2324_s3 + $0x1e0] sm:$0xff]  ;;  %v1414_v37 = vld [vmem:[%s2324_s3 + $0x1e8] sm:$0xff]  ;;  %v1825_v53 = vpack.c.bf16 %v1422_v51, %v1421_v50  ;;  %v1426_v59 = vld [vmem:[%s2324_s3 + $0x238] sm:$0xff] }
  0x24   : > { %v1813_v41 = vpack.c.bf16 %v1414_v37, %v1413_v36  ;;  %v1420_v47 = vld [vmem:[%s2324_s3 + $0x208] sm:$0xff] }
  0x25   : > { %1720 = vmatpush3.bf16.msra.mxu1 %v1717_v46  ;;  %v1419_v46 = vld [vmem:[%s2324_s3 + $0x200] sm:$0xff]  ;;  %v1424_v56 = vld [vmem:[%s2324_s3 + $0x228] sm:$0xff] }
  0x26   : > { %1722 = vmatprep.subr.bf16.mxu1 %v1721_v52  ;;  %1784 = vmatpush3.bf16.msra.mxu0 %v1781_v49  ;;  %v1821_v48 = vpack.c.bf16 %v1420_v47, %v1419_v46  ;;  %v622_v49 = vld [vmem:[%s2111_s15 + $0x8] sm:$0xff] }
  0x27   : > { %1786 = vmatprep.subr.bf16.mxu0 %v1785_v55  ;;  %v1091_v54 = vld [vmem:[%s2176_s9 + $0x2] sm:$0xff] }
  0x29   : > { %1724 = vmatpush3.bf16.msra.mxu1 %v1721_v52  ;;  %v998_v52 = vld [vmem:[%s2176_s9 + $0x9] sm:$0xff] }
  0x2a   : > { %1726 = vmatprep.subr.bf16.mxu1 %v1725_v58  ;;  %1788 = vmatpush3.bf16.msra.mxu0 %v1785_v55  ;;  %v1423_v55 = vld [vmem:[%s2324_s3 + $0x220] sm:$0xff] }
  0x2b   : > { %1790 = vmatprep.subr.bf16.mxu0 %v1789_v61  ;;  %v1829_v57 = vpack.c.bf16 %v1424_v56, %v1423_v55 }
  0x2c   : > { %1558 = vmatmul.mubr.msk.f32.vlgmr.msra.gmra.mrb[0].mxu1 %vm364_vm0, %v344_v62 }
  0x2d   : > { %1728 = vmatpush3.bf16.msra.mxu1 %v1725_v58  ;;  %1576 = vmatprep.mubr.msk.f32.mxu1 %vm364_vm0, %v527_v2  ;;  %v1425_v58 = vld [vmem:[%s2324_s3 + $0x230] sm:$0xff] }
  0x2e   : > { %1634 = vmatmul.mubr.msk.f32.vlgmr.msra.gmra.mrb[0].mxu0 %vm364_vm0, %v810_v3  ;;  %1730 = vmatprep.subr.bf16.mxu1 %v1729_v1  ;;  %v1833_v60 = vpack.c.bf16 %v1426_v59, %v1425_v58 }
  0x2f   : > { %1792 = vmatpush3.bf16.msra.mxu0 %v1789_v61  ;;  %1652 = vmatprep.mubr.msk.f32.mxu0 %vm364_vm0, %v903_v7  ;;  %v1092_v61 = vld [vmem:[%s2176_s9 + $0xa] sm:$0xff]  ;;  %s340_s9 = sadd.s32 %s1345_s12, %s1344_s11 }
  0x30   : > { %1794 = vmatprep.subr.bf16.mxu0 %v1793_v6  ;;  %s1346_s14 = sshll.u32 %s340_s9, 3 }
  0x31   : > { %1732 = vmatpush3.bf16.msra.mxu1 %v1729_v1  ;;  %v1429_v1 = vld [vmem:[%s2325_s4] ss:$0 sm:$0xff]  ;;  %s342_s7 = scalar_lea.vmem %s2326_s5, %s1346_s14 }
  0x32   : > { %1734 = vmatprep.subr.bf16.mxu1 %v1733_v10 }
  0x33   : > { %1796 = vmatpush3.bf16.msra.mxu0 %v1793_v6 }
  0x34   : > { %1798 = vmatprep.subr.bf16.mxu0 %v1797_v13 }
  0x35   : > { %1736 = vmatpush3.bf16.msra.mxu1 %v1733_v10 }
  0x36   : > { %1738 = vmatprep.subr.bf16.mxu1 %v1737_v16 }
  0x37   : > { %1800 = vmatpush3.bf16.msra.mxu0 %v1797_v13 }
  0x38   : > { %1802 = vmatprep.subr.bf16.mxu0 %v1801_v19 }
  0x39   : > { %1740 = vmatpush3.bf16.msra.mxu1 %v1737_v16 }
  0x3a   : > { %1742 = vmatprep.subr.bf16.mxu1 %v1741_v22 }
  0x3b   : > { %1804 = vmatpush3.bf16.msra.mxu0 %v1801_v19 }
  0x3c   : > { %1806 = vmatprep.subr.bf16.mxu0 %v1805_v25  ;;  %1577 = vmatmul.mubr.msk.f32.vlgmr.msra.gmra.mrb[0].mxu1 %vm364_vm0, %v528_v26 }
  0x3d   : > { %1744 = vmatpush3.bf16.msra.mxu1 %v1741_v22  ;;  %1595 = vmatprep.mubr.msk.f32.mxu1 %vm364_vm0, %v621_v30 }
  0x3e   : > { %1653 = vmatmul.mubr.msk.f32.vlgmr.msra.gmra.mrb[0].mxu0 %vm364_vm0, %v904_v31  ;;  %1746 = vmatprep.subr.bf16.mxu1 %v1745_v29 }
  0x3f   : > { %1808 = vmatpush3.bf16.msra.mxu0 %v1805_v25  ;;  %1671 = vmatprep.mubr.msk.f32.mxu0 %vm364_vm0, %v997_v35 }
  0x40   : > { %1810 = vmatprep.subr.bf16.mxu0 %v1809_v34 }
  0x41   : > { %1748 = vmatpush3.bf16.msra.mxu1 %v1745_v29 }
  0x42   : > { %1750 = vmatprep.subr.bf16.mxu1 %v1749_v38 }
  0x43   : > { %1812 = vmatpush3.bf16.msra.mxu0 %v1809_v34 }
  0x44   : > { %1814 = vmatprep.subr.bf16.mxu0 %v1813_v41 }
  0x45   : > { %1752 = vmatpush3.bf16.msra.mxu1 %v1749_v38 }
  0x46   : > { %1754 = vmatprep.subr.bf16.mxu1 %v1753_v44 }
  0x47   : > { %1816 = vmatpush3.bf16.msra.mxu0 %v1813_v41 }
  0x48   : > { %1818 = vmatprep.subr.bf16.mxu0 %v1817_v45 }
  0x49   : > { %1756 = vmatpush3.bf16.msra.mxu1 %v1753_v44 }
  0x4b   : > { %1820 = vmatpush3.bf16.msra.mxu0 %v1817_v45 }
  0x4c   : > { %1596 = vmatmul.mubr.msk.f32.vlgmr.msra.gmra.mrb[0].mxu1 %vm364_vm0, %v622_v49  ;;  %1822 = vmatprep.subr.bf16.mxu0 %v1821_v48 }
  0x4e   : > { %1672 = vmatmul.mubr.msk.f32.vlgmr.msra.gmra.mrb[0].mxu0 %vm364_vm0, %v998_v52 }
  0x4f   : > { %1824 = vmatpush3.bf16.msra.mxu0 %v1821_v48  ;;  %1690 = vmatprep.mubr.msk.f32.mxu0 %vm364_vm0, %v1091_v54 }
  0x50   : > { %1826 = vmatprep.subr.bf16.mxu0 %v1825_v53 }
  0x53   : > { %1828 = vmatpush3.bf16.msra.mxu0 %v1825_v53 }
  0x54   : > { %1830 = vmatprep.subr.bf16.mxu0 %v1829_v57 }
  0x57   : > { %1832 = vmatpush3.bf16.msra.mxu0 %v1829_v57 }
  0x58   : > { %1834 = vmatprep.subr.bf16.mxu0 %v1833_v60 }
  0x5b   : > { %1836 = vmatpush3.bf16.msra.mxu0 %v1833_v60 }
  0x5e   : > { %1691 = vmatmul.mubr.msk.f32.vlgmr.msra.gmra.mrb[0].mxu0 %vm364_vm0, %v1092_v61 }
 0x11f   : > { %v1597_v62 = vpop.f32.mrb[0].mxu1 }
 0x120   : > { %v704_v63 = vpop.f32.mrb[1].mxu1 }
 0x131   : > { %v1692_v0 = vpop.f32.mrb[0].mxu0 }
 0x132   : > { %v1837_v2 = vadd.f32 %v1692_v0, %v1597_v62  ;;  %v1174_v3 = vpop.f32.mrb[1].mxu0 }
 0x133   : > { %v1838_v4 = vadd.f32 %v1174_v3, %v704_v63 }
 0x134   : > { %v1193_v5 = vadd.f32 %v1837_v2, %v1429_v1 }
 0x135   : > { %v1192_v6 = vadd.f32 %v1838_v4, %v1429_v1 }
 0x136   : > { %1897 = vtanh.f32 %v1193_v5 }
 0x137   : > { %1899 = vtanh.f32 %v1192_v6 }
 0x140   : > { %v1898_v7 = vpop.eup %1897 }
 0x141   : > { %v1900_v8 = vpop.eup %1899  ;;  %1198 = vst.msk [vmem:[%s342_s7 + $0x8] sm:$0xff] %vm1196_vm1, %v1898_v7 }
 0x142   : > { %1197 = vst.msk [vmem:[%s342_s7] sm:$0xff] %vm1196_vm1, %v1900_v8 }
 0x143 PF: > { %s15_s22 = sadd.s32 1, %s1939_s22   ;;  %s2328_s18 = smov %s1931_s20 }
 0x144   : > { %p12_p10 = scmp.ge.s32.totalorder %s15_s22, 34   ;;  %s2329_s19 = smov %s1935_s21 }
 0x145   : > { %s2330_s20 = smov %s2333_s23  ;;  %s2331_s21 = smov %s2337_s24 }
 0x146   :  { %14 = sbr.rel (!%p12_p10) target bundleno = 3 (0x3), region = 84 }

</bundles_post_ra>
